<compile_context>
chip_gen: v7x
topology: tpu7x:2x2x1
jax: 0.10.0
libtpu: 0.0.40
codegen_flags: <defaults>
</compile_context>

<pallas_src>
import math
from functools import partial

import jax
import jax.numpy as jnp
from jax import lax
from jax.experimental import pallas as pl
from jax.experimental.pallas import tpu as pltpu


# ------------------------- parameter init (matches PyTorch __init__) -------------------------

def gaussian_orthogonal_random_matrix(key, nb_rows, nb_columns, scaling=0):
    nb_full_blocks = nb_rows // nb_columns
    keys = jax.random.split(key, nb_full_blocks + 2)
    blocks = []
    for i in range(nb_full_blocks):
        unstructured = jax.random.normal(keys[i], (nb_columns, nb_columns), dtype=jnp.float32)
        q, _ = jnp.linalg.qr(unstructured)
        blocks.append(q.T)
    remaining = nb_rows - nb_full_blocks * nb_columns
    if remaining > 0:
        unstructured = jax.random.normal(keys[nb_full_blocks], (nb_columns, nb_columns),
                                         dtype=jnp.float32)
        q, _ = jnp.linalg.qr(unstructured)
        blocks.append(q.T[:remaining])
    final_matrix = jnp.concatenate(blocks, axis=0)
    if scaling == 0:
        multiplier = jnp.linalg.norm(
            jax.random.normal(keys[-1], (nb_rows, nb_columns), dtype=jnp.float32), axis=1)
    elif scaling == 1:
        multiplier = math.sqrt(float(nb_columns)) * jnp.ones((nb_rows,), dtype=jnp.float32)
    else:
        raise ValueError(f"Invalid scaling {scaling}")
    return multiplier[:, None] * final_matrix


# ------------------------------------- Pallas kernel -----------------------------------------

def _performer_kernel(q_ref, k_ref, v_ref, projT_ref, o_ref, kmax_ref, *,
                      eps, m_real, normalizer, ratio):
    """Two-phase kernel.

    Phase 0 (pl.program_id(0) == 0): running global max of the projected key logits (the
    is_query=False stabilizer of softmax_kernel) accumulated into kmax_ref.
    Phase 1: softmax_kernel(q, is_query=True), softmax_kernel(k, is_query=False), and
    linear_attention with the denominator fused via a ones column on v.  Output is written as a
    lane-dense (N, G*DV) tile per group.
    """
    phase = pl.program_id(0)
    grp = pl.program_id(1)
    g, n, d = k_ref.shape
    dv = v_ref.shape[-1]
    m_pad = projT_ref.shape[-1]
    gn = g * n

    # projT is pre-scaled by the data normalizer and pre-transposed to (d, m_pad) in the wrapper.
    projT_bf = projT_ref[...].astype(jnp.bfloat16)

    @pl.when(jnp.logical_and(phase == 0, grp == 0))
    def _():
        kmax_ref[...] = jnp.full((1, 1), -jnp.inf, dtype=jnp.float32)

    # ---------------- phase 0: running global max of k's projected logits ----------------
    @pl.when(phase == 0)
    def _():
        k_bf = k_ref[...].reshape(gn, d).astype(jnp.bfloat16)
        kd = jnp.dot(k_bf, projT_bf, preferred_element_type=jnp.float32)       # (gn, m_pad) f32
        if m_real < m_pad:
            col = lax.broadcasted_iota(jnp.int32, kd.shape, 1)
            kd = jnp.where(col < m_real, kd, -jnp.inf)   # padded feature cols must not win the max
        blk_max = jnp.max(jnp.max(kd, axis=0, keepdims=True), axis=1, keepdims=True)   # (1, 1)
        kmax_ref[...] = jnp.maximum(kmax_ref[...], blk_max)

    # ---------------- phase 1: feature maps + linear attention ----------------
    @pl.when(phase == 1)
    def _():
        q32 = q_ref[...].reshape(gn, d)                                          # f32
        k32 = k_ref[...].reshape(gn, d)

        # single MXU call for both projections: (2*gn, d) x (d, m_pad), bf16 feed, f32 accumulate
        qk_bf = jnp.concatenate([q32, k32], axis=0).astype(jnp.bfloat16)
        qkd = jnp.dot(qk_bf, projT_bf, preferred_element_type=jnp.float32)       # (2*gn, m_pad)
        qd = qkd[:gn]
        kd = qkd[gn:]

        half_norm2 = 0.5 * normalizer * normalizer
        diag_q = jnp.sum(q32 * q32, axis=-1, keepdims=True) * half_norm2         # (gn, 1) f32
        diag_k = jnp.sum(k32 * k32, axis=-1, keepdims=True) * half_norm2

        if m_real < m_pad:
            col = lax.broadcasted_iota(jnp.int32, (gn, m_pad), 1)
            feat_mask = col < m_real
            qd_for_max = jnp.where(feat_mask, qd, -jnp.inf)
        else:
            feat_mask = None
            qd_for_max = qd

        q_rowmax = jnp.max(qd_for_max, axis=-1, keepdims=True)    # is_query=True: per-row max
        kmax = kmax_ref[...]                                      # is_query=False: global max

        # exp / stabilizer math stays f32
        q_feat = ratio * (jnp.exp(qd - diag_q - q_rowmax) + eps)                 # (gn, m_pad)
        k_feat = ratio * (jnp.exp(kd - diag_k - kmax) + eps)
        if feat_mask is not None:
            # zeroing k's padded columns makes the padded ctx rows exactly 0, so q's padded
            # columns contribute nothing — no q-side zero mask needed.
            k_feat = jnp.where(feat_mask, k_feat, 0.0)

        q_feat_h = q_feat.reshape(g, n, m_pad).astype(jnp.bfloat16)
        k_feat_h = k_feat.reshape(g, n, m_pad).astype(jnp.bfloat16)
        v_ext = jnp.concatenate([v_ref[...], jnp.ones((g, n, 1), v_ref.dtype)],
                                axis=-1).astype(jnp.bfloat16)                    # (g, n, dv+1)

        # batched over heads: ctx = k_feat^T @ [v | 1]  -> (g, m_pad, dv+1); last col = k_cumsum
        ctx = lax.dot_general(k_feat_h, v_ext,
                              dimension_numbers=(((1,), (1,)), ((0,), (0,))),
                              preferred_element_type=jnp.float32)
        oe = lax.dot_general(q_feat_h, ctx.astype(jnp.bfloat16),
                             dimension_numbers=(((2,), (1,)), ((0,), (0,))),
                             preferred_element_type=jnp.float32)                 # (g, n, dv+1)

        d_inv = pl.reciprocal(oe[:, :, dv:dv + 1], approx=True)                  # EUP slot
        res = (oe[:, :, :dv] * d_inv).astype(o_ref.dtype)                        # (g, n, dv)

        # direct per-head stores into the lane-dense (n, g*dv) output tile (no concat)
        for hh in range(g):
            o_ref[0, :, hh * dv:(hh + 1) * dv] = res[hh]


# --------------------------------------- wrapper ----------------------------------------------

def _pick_group_size(bh, n, d, dv, m_pad, vmem_budget_bytes):
    """Largest divisor of bh that (a) keeps n_groups >= 2 when possible (pipelining / future
    megacore split) and (b) fits double-buffered blocks + in-kernel temporaries in the budget."""
    g_cap = bh if bh < 2 else bh // 2
    best = 1
    for g in range(1, g_cap + 1):
        if bh % g:
            continue
        gn = g * n
        # double-buffered q, k, v inputs + lane-dense output + projT (f32)
        blocks = 4 * 2 * (2 * gn * d + gn * dv + n * g * dv + d * m_pad)
        # in-kernel temporaries
        temps = 4 * (2 * gn * m_pad)            # qkd (f32)
        temps += 4 * (2 * gn * m_pad)           # q_feat / k_feat (f32)
        temps += 2 * (2 * gn * m_pad)           # bf16 copies of the feature maps
        temps += 4 * (g * m_pad * (dv + 1))     # ctx (f32)
        temps += 4 * (g * n * (dv + 1))         # oe (f32)
        temps += 2 * (g * n * (dv + 1))         # v_ext (bf16)
        temps += 4 * (gn * m_pad)               # iota mask / slack
        if blocks + temps <= vmem_budget_bytes:
            best = g
    return best


def _vmem_limit_bytes():
    try:
        cap = int(pltpu.get_tpu_info().vmem_capacity_bytes)
    except Exception:
        cap = 0
    if cap >= 96 * 1024 * 1024:
        return 64 * 1024 * 1024      # v5e / v6e (128 MiB parts): raise the scoped default
    return 32 * 1024 * 1024          # v7x (64 MiB / TC) or unknown: stay conservative


def performer_attention(q, k, v, projection_matrix, eps=1e-4):
    b, h, n, d = q.shape
    dv = v.shape[-1]
    m_real = projection_matrix.shape[0]
    m_pad = ((m_real + 127) // 128) * 128
    bh = b * h

    normalizer = float(d) ** (-0.25)
    ratio = float(m_real) ** (-0.5)

    # Hoisted once: scale by the data normalizer, transpose to (d, m), zero-pad features to m_pad.
    projT = (normalizer * projection_matrix.astype(jnp.float32)).T               # (d, m_real)
    projT = jnp.pad(projT, ((0, 0), (0, m_pad - m_real)))                        # (d, m_pad)

    qf = q.reshape(bh, n, d)
    kf = k.reshape(bh, n, d)
    vf = v.reshape(bh, n, dv)

    vmem_limit = _vmem_limit_bytes()
    g = _pick_group_size(bh, n, d, dv, m_pad, vmem_budget_bytes=vmem_limit // 3)
    n_groups = bh // g

    # grid = (phase, group); phase 0 = global k-max pass, phase 1 = attention.
    # q / v / output index maps collapse to block 0 during phase 0 (no wasted HBM traffic).
    out_flat = pl.pallas_call(
        partial(_performer_kernel, eps=eps, m_real=m_real,
                normalizer=normalizer, ratio=ratio),
        out_shape=jax.ShapeDtypeStruct((n_groups, n, g * dv), q.dtype),
        grid=(2, n_groups),
        in_specs=[
            pl.BlockSpec((g, n, d), lambda p, i: (i * p, 0, 0)),      # q (phase 1 only)
            pl.BlockSpec((g, n, d), lambda p, i: (i, 0, 0)),          # k (both phases)
            pl.BlockSpec((g, n, dv), lambda p, i: (i * p, 0, 0)),     # v (phase 1 only)
            pl.BlockSpec((d, m_pad), lambda p, i: (0, 0)),            # projT (grid-invariant)
        ],
        out_specs=pl.BlockSpec((1, n, g * dv), lambda p, i: (i * p, 0, 0)),
        scratch_shapes=[pltpu.VMEM((1, 1), jnp.float32)],             # running global k-max
        compiler_params=pltpu.CompilerParams(
            dimension_semantics=("arbitrary", "arbitrary"),
            vmem_limit_bytes=vmem_limit),
    )(qf, kf, vf, projT)

    # un-interleave the lane-dense (n, g*dv) tiles back to (b, h, n, dv)
    out = out_flat.reshape(n_groups, n, g, dv).transpose(0, 2, 1, 3).reshape(b, h, n, dv)
    return out


# ------------------------------- pure-JAX reference (for check) -------------------------------

def performer_reference(q, k, v, proj, eps=1e-4):
    d = q.shape[-1]
    m = proj.shape[0]
    normalizer = d ** (-0.25)
    ratio = m ** (-0.5)

    def feats(data, is_query):
        dd = jnp.einsum('bhid,jd->bhij', normalizer * data, proj,
                        precision=jax.lax.Precision.HIGHEST)
        diag = jnp.sum(data ** 2, axis=-1, keepdims=True) / 2.0 * normalizer ** 2
        mx = jnp.max(dd, axis=-1, keepdims=True) if is_query else jnp.max(dd)
        return ratio * (jnp.exp(dd - diag - mx) + eps)

    qf = feats(q, True)
    kf = feats(k, False)
    k_cumsum = kf.sum(axis=-2)
    d_inv = 1.0 / jnp.einsum('bhnd,bhd->bhn', qf, k_cumsum,
                             precision=jax.lax.Precision.HIGHEST)
    context = jnp.einsum('bhnd,bhne->bhde', kf, v, precision=jax.lax.Precision.HIGHEST)
    return jnp.einsum('bhde,bhnd,bhn->bhne', context, qf, d_inv,
                      precision=jax.lax.Precision.HIGHEST)


# ----------------------------------------- main ------------------------------------------------

if __name__ == "__main__":
    B, H, N, DIM_HEADS = 2, 4, 64, 32
    DV = DIM_HEADS
    NB_FEATURES = int(DIM_HEADS * math.log(DIM_HEADS))   # 110, as in Performer.__init__

    key = jax.random.PRNGKey(0)
    kq, kk, kv, kp = jax.random.split(key, 4)
    q = jax.random.normal(kq, (B, H, N, DIM_HEADS), dtype=jnp.float32)
    k = jax.random.normal(kk, (B, H, N, DIM_HEADS), dtype=jnp.float32)
    v = jax.random.normal(kv, (B, H, N, DV), dtype=jnp.float32)

    projection_matrix = gaussian_orthogonal_random_matrix(
        kp, NB_FEATURES, DIM_HEADS, scaling=0)            # (M, D) buffer, deterministic

    out = performer_attention(q, k, v, projection_matrix)
    out = jax.block_until_ready(out)

    ref = performer_reference(q, k, v, projection_matrix)
    assert out.shape == (B, H, N, DV)
    # tolerance sized for the bf16 MXU feed (exp/diag/max math stays f32); ref is f32 HIGHEST
    assert bool(jnp.allclose(out, ref, rtol=2e-2, atol=1e-2)), "mismatch vs reference"

    print("KERNEL_OK")
</pallas_src>

<mosaic_0001>
module attributes {stable_mosaic.version = 11 : i64} {
  func.func @_performer_kernel(%arg0: i32, %arg1: i32, %arg2: memref<4x64x32xf32, #tpu.memory_space<vmem>>, %arg3: memref<4x64x32xf32, #tpu.memory_space<vmem>>, %arg4: memref<4x64x32xf32, #tpu.memory_space<vmem>>, %arg5: memref<32x128xf32, #tpu.memory_space<vmem>>, %arg6: memref<1x64x128xf32, #tpu.memory_space<vmem>>, %arg7: memref<1x1xf32, #tpu.memory_space<vmem>>) attributes {dimension_semantics = [#tpu.dimension_semantics<arbitrary>, #tpu.dimension_semantics<arbitrary>], iteration_bounds = array<i64: 2, 2>, scalar_prefetch = 0 : i64, scratch_operands = 1 : i64, tpu.core_type = #tpu.core_type<tc>, window_params = [{transform_indices = @transform_0, window_bounds = array<i64: 4, 64, 32>}, {transform_indices = @transform_1, window_bounds = array<i64: 4, 64, 32>}, {transform_indices = @transform_2, window_bounds = array<i64: 4, 64, 32>}, {pipeline_mode = #tpu.pipeline_mode<synchronous>, transform_indices = @transform_3, window_bounds = array<i64: 32, 128>}, {transform_indices = @transform_4, window_bounds = array<i64: 1, 64, 128>}]} {
    %c0 = arith.constant 0 : index
    %c0_0 = arith.constant 0 : index
    %0 = vector.load %arg5[%c0, %c0_0] : memref<32x128xf32, #tpu.memory_space<vmem>>, vector<32x128xf32>
    %1 = arith.truncf %0 : vector<32x128xf32> to vector<32x128xbf16>
    %c0_i32 = arith.constant 0 : i32
    %2 = arith.cmpi eq, %arg0, %c0_i32 : i32
    %c0_i32_1 = arith.constant 0 : i32
    %3 = arith.cmpi eq, %arg1, %c0_i32_1 : i32
    %4 = arith.andi %2, %3 : i1
    %5 = arith.extui %4 : i1 to i32
    %c0_i32_2 = arith.constant 0 : i32
    %6 = arith.cmpi ne, %5, %c0_i32_2 : i32
    scf.if %6 {
      %cst = arith.constant 0xFF800000 : f32
      %13 = vector.broadcast %cst : f32 to vector<1x1xf32>
      %c0_6 = arith.constant 0 : index
      %c0_7 = arith.constant 0 : index
      %14 = vector.load %arg7[%c0_6, %c0_7] : memref<1x1xf32, #tpu.memory_space<vmem>>, vector<1x1xf32>
      tpu.vector_store %arg7[%c0_6, %c0_7], %13 {strides = array<i32>} : memref<1x1xf32, #tpu.memory_space<vmem>>, vector<1x1xf32>,
    } else {
    }
    %c0_i32_3 = arith.constant 0 : i32
    %7 = arith.cmpi eq, %arg0, %c0_i32_3 : i32
    %8 = arith.extui %7 : i1 to i32
    %c0_i32_4 = arith.constant 0 : i32
    %9 = arith.cmpi ne, %8, %c0_i32_4 : i32
    scf.if %9 {
      %c0_6 = arith.constant 0 : index
      %c0_7 = arith.constant 0 : index
      %c0_8 = arith.constant 0 : index
      %13 = vector.load %arg3[%c0_6, %c0_7, %c0_8] : memref<4x64x32xf32, #tpu.memory_space<vmem>>, vector<4x64x32xf32>
      %14 = vector.shape_cast %13 : vector<4x64x32xf32> to vector<256x32xf32>
      %15 = arith.truncf %14 : vector<256x32xf32> to vector<256x32xbf16>
      %cst = arith.constant dense<0.000000e+00> : vector<256x128xf32>
      %16 = tpu.matmul %15, %1, %cst {dimension_numbers = #tpu.dot_dimension_numbers<[1], [0], [0], [1], [0, 0, 1, 1], [], []>} : vector<256x32xbf16>, vector<32x128xbf16>, vector<256x128xf32> -> vector<256x128xf32>
      %17 = tpu.iota {dimensions = array<i32: 1>} : vector<256x128xi32>
      %c110_i32 = arith.constant 110 : i32
      %18 = vector.broadcast %c110_i32 : i32 to vector<256x128xi32>
      %19 = arith.cmpi slt, %17, %18 : vector<256x128xi32>
      %cst_9 = arith.constant 0xFF800000 : f32
      %20 = vector.broadcast %cst_9 : f32 to vector<256x128xf32>
      %21 = arith.select %19, %16, %20 : vector<256x128xi1>, vector<256x128xf32>
      %cst_10 = arith.constant dense<0xFF800000> : vector<128xf32>
      %22 = vector.multi_reduction <maximumf>, %21, %cst_10 [0] : vector<256x128xf32> to vector<128xf32>
      %23 = vector.shape_cast %22 : vector<128xf32> to vector<1x128xf32>
      %cst_11 = arith.constant dense<0xFF800000> : vector<1xf32>
      %24 = vector.multi_reduction <maximumf>, %23, %cst_11 [1] : vector<1x128xf32> to vector<1xf32>
      %25 = vector.shape_cast %24 : vector<1xf32> to vector<1x1xf32>
      %c0_12 = arith.constant 0 : index
      %c0_13 = arith.constant 0 : index
      %26 = vector.load %arg7[%c0_12, %c0_13] : memref<1x1xf32, #tpu.memory_space<vmem>>, vector<1x1xf32>
      %27 = arith.maximumf %26, %25 : vector<1x1xf32>
      %c0_14 = arith.constant 0 : index
      %c0_15 = arith.constant 0 : index
      %28 = vector.load %arg7[%c0_14, %c0_15] : memref<1x1xf32, #tpu.memory_space<vmem>>, vector<1x1xf32>
      tpu.vector_store %arg7[%c0_14, %c0_15], %27 {strides = array<i32>} : memref<1x1xf32, #tpu.memory_space<vmem>>, vector<1x1xf32>,
    } else {
    }
    %c1_i32 = arith.constant 1 : i32
    %10 = arith.cmpi eq, %arg0, %c1_i32 : i32
    %11 = arith.extui %10 : i1 to i32
    %c0_i32_5 = arith.constant 0 : i32
    %12 = arith.cmpi ne, %11, %c0_i32_5 : i32
    scf.if %12 {
      %c0_6 = arith.constant 0 : index
      %c0_7 = arith.constant 0 : index
      %c0_8 = arith.constant 0 : index
      %13 = vector.load %arg2[%c0_6, %c0_7, %c0_8] : memref<4x64x32xf32, #tpu.memory_space<vmem>>, vector<4x64x32xf32>
      %14 = vector.shape_cast %13 : vector<4x64x32xf32> to vector<256x32xf32>
      %c0_9 = arith.constant 0 : index
      %c0_10 = arith.constant 0 : index
      %c0_11 = arith.constant 0 : index
      %15 = vector.load %arg3[%c0_9, %c0_10, %c0_11] : memref<4x64x32xf32, #tpu.memory_space<vmem>>, vector<4x64x32xf32>
      %16 = vector.shape_cast %15 : vector<4x64x32xf32> to vector<256x32xf32>
      %17 = tpu.concatenate %14, %16 in 0 : vector<256x32xf32>, vector<256x32xf32> -> vector<512x32xf32>
      %18 = arith.truncf %17 : vector<512x32xf32> to vector<512x32xbf16>
      %cst = arith.constant dense<0.000000e+00> : vector<512x128xf32>
      %19 = tpu.matmul %18, %1, %cst {dimension_numbers = #tpu.dot_dimension_numbers<[1], [0], [0], [1], [0, 0, 1, 1], [], []>} : vector<512x32xbf16>, vector<32x128xbf16>, vector<512x128xf32> -> vector<512x128xf32>
      %20 = vector.extract_strided_slice %19 {offsets = [0, 0], sizes = [256, 128], strides = [1, 1]} : vector<512x128xf32> to vector<256x128xf32>
      %21 = vector.extract_strided_slice %19 {offsets = [256, 0], sizes = [256, 128], strides = [1, 1]} : vector<512x128xf32> to vector<256x128xf32>
      %22 = arith.mulf %14, %14 : vector<256x32xf32>
      %cst_12 = arith.constant dense<0.000000e+00> : vector<256xf32>
      %23 = vector.multi_reduction <add>, %22, %cst_12 [1] : vector<256x32xf32> to vector<256xf32>
      %24 = vector.shape_cast %23 : vector<256xf32> to vector<256x1xf32>
      %cst_13 = arith.constant 0.0883883461 : f32
      %25 = vector.broadcast %cst_13 : f32 to vector<256x1xf32>
      %26 = arith.mulf %24, %25 : vector<256x1xf32>
      %27 = arith.mulf %16, %16 : vector<256x32xf32>
      %cst_14 = arith.constant dense<0.000000e+00> : vector<256xf32>
      %28 = vector.multi_reduction <add>, %27, %cst_14 [1] : vector<256x32xf32> to vector<256xf32>
      %29 = vector.shape_cast %28 : vector<256xf32> to vector<256x1xf32>
      %cst_15 = arith.constant 0.0883883461 : f32
      %30 = vector.broadcast %cst_15 : f32 to vector<256x1xf32>
      %31 = arith.mulf %29, %30 : vector<256x1xf32>
      %32 = tpu.iota {dimensions = array<i32: 1>} : vector<256x128xi32>
      %c110_i32 = arith.constant 110 : i32
      %33 = vector.broadcast %c110_i32 : i32 to vector<256x128xi32>
      %34 = arith.cmpi slt, %32, %33 : vector<256x128xi32>
      %cst_16 = arith.constant 0xFF800000 : f32
      %35 = vector.broadcast %cst_16 : f32 to vector<256x128xf32>
      %36 = arith.select %34, %20, %35 : vector<256x128xi1>, vector<256x128xf32>
      %cst_17 = arith.constant dense<0xFF800000> : vector<256xf32>
      %37 = vector.multi_reduction <maximumf>, %36, %cst_17 [1] : vector<256x128xf32> to vector<256xf32>
      %38 = vector.shape_cast %37 : vector<256xf32> to vector<256x1xf32>
      %c0_18 = arith.constant 0 : index
      %c0_19 = arith.constant 0 : index
      %39 = vector.load %arg7[%c0_18, %c0_19] : memref<1x1xf32, #tpu.memory_space<vmem>>, vector<1x1xf32>
      %40 = vector.broadcast %26 : vector<256x1xf32> to vector<256x128xf32>
      %41 = arith.subf %20, %40 : vector<256x128xf32>
      %42 = vector.broadcast %38 : vector<256x1xf32> to vector<256x128xf32>
      %43 = arith.subf %41, %42 : vector<256x128xf32>
      %44 = math.exp %43 : vector<256x128xf32>
      %cst_20 = arith.constant 9.99999974E-5 : f32
      %45 = vector.broadcast %cst_20 : f32 to vector<256x128xf32>
      %46 = arith.addf %44, %45 : vector<256x128xf32>
      %cst_21 = arith.constant 0.0953462571 : f32
      %47 = vector.broadcast %cst_21 : f32 to vector<256x128xf32>
      %48 = arith.mulf %47, %46 : vector<256x128xf32>
      %49 = vector.broadcast %31 : vector<256x1xf32> to vector<256x128xf32>
      %50 = arith.subf %21, %49 : vector<256x128xf32>
      %51 = vector.broadcast %39 : vector<1x1xf32> to vector<256x128xf32>
      %52 = arith.subf %50, %51 : vector<256x128xf32>
      %53 = math.exp %52 : vector<256x128xf32>
      %cst_22 = arith.constant 9.99999974E-5 : f32
      %54 = vector.broadcast %cst_22 : f32 to vector<256x128xf32>
      %55 = arith.addf %53, %54 : vector<256x128xf32>
      %cst_23 = arith.constant 0.0953462571 : f32
      %56 = vector.broadcast %cst_23 : f32 to vector<256x128xf32>
      %57 = arith.mulf %56, %55 : vector<256x128xf32>
      %cst_24 = arith.constant 0.000000e+00 : f32
      %58 = vector.broadcast %cst_24 : f32 to vector<256x128xf32>
      %59 = arith.select %34, %57, %58 : vector<256x128xi1>, vector<256x128xf32>
      %60 = vector.shape_cast %48 : vector<256x128xf32> to vector<4x64x128xf32>
      %61 = arith.truncf %60 : vector<4x64x128xf32> to vector<4x64x128xbf16>
      %62 = vector.shape_cast %59 : vector<256x128xf32> to vector<4x64x128xf32>
      %63 = arith.truncf %62 : vector<4x64x128xf32> to vector<4x64x128xbf16>
      %c0_25 = arith.constant 0 : index
      %c0_26 = arith.constant 0 : index
      %c0_27 = arith.constant 0 : index
      %64 = vector.load %arg4[%c0_25, %c0_26, %c0_27] : memref<4x64x32xf32, #tpu.memory_space<vmem>>, vector<4x64x32xf32>
      %cst_28 = arith.constant 1.000000e+00 : f32
      %65 = vector.broadcast %cst_28 : f32 to vector<4x64x1xf32>
      %66 = tpu.concatenate %64, %65 in 2 : vector<4x64x32xf32>, vector<4x64x1xf32> -> vector<4x64x33xf32>
      %67 = arith.truncf %66 : vector<4x64x33xf32> to vector<4x64x33xbf16>
      %cst_29 = arith.constant dense<0.000000e+00> : vector<4x128x33xf32>
      %68 = tpu.matmul %63, %67, %cst_29 {dimension_numbers = #tpu.dot_dimension_numbers<[1], [1], [2], [2], [0, 0, 0, 2, 1, 2], [0], [0]>} : vector<4x64x128xbf16>, vector<4x64x33xbf16>, vector<4x128x33xf32> -> vector<4x128x33xf32>
      %69 = arith.truncf %68 : vector<4x128x33xf32> to vector<4x128x33xbf16>
      %cst_30 = arith.constant dense<0.000000e+00> : vector<4x64x33xf32>
      %70 = tpu.matmul %61, %69, %cst_30 {dimension_numbers = #tpu.dot_dimension_numbers<[2], [1], [1], [2], [0, 0, 0, 1, 1, 2], [0], [0]>} : vector<4x64x128xbf16>, vector<4x128x33xbf16>, vector<4x64x33xf32> -> vector<4x64x33xf32>
      %71 = vector.extract_strided_slice %70 {offsets = [0, 0, 32], sizes = [4, 64, 1], strides = [1, 1, 1]} : vector<4x64x33xf32> to vector<4x64x1xf32>
      %72 = tpu.reciprocal %71 {approx = true} : vector<4x64x1xf32> -> vector<4x64x1xf32>
      %73 = vector.extract_strided_slice %70 {offsets = [0, 0, 0], sizes = [4, 64, 32], strides = [1, 1, 1]} : vector<4x64x33xf32> to vector<4x64x32xf32>
      %74 = vector.broadcast %72 : vector<4x64x1xf32> to vector<4x64x32xf32>
      %75 = arith.mulf %73, %74 : vector<4x64x32xf32>
      %76 = vector.extract_strided_slice %75 {offsets = [0, 0, 0], sizes = [1, 64, 32], strides = [1, 1, 1]} : vector<4x64x32xf32> to vector<1x64x32xf32>
      %77 = vector.shape_cast %76 : vector<1x64x32xf32> to vector<64x32xf32>
      %c0_31 = arith.constant 0 : index
      %c0_32 = arith.constant 0 : index
      %c0_33 = arith.constant 0 : index
      %78 = vector.load %arg6[%c0_31, %c0_32, %c0_33] : memref<1x64x128xf32, #tpu.memory_space<vmem>>, vector<1x64x32xf32>
      %79 = vector.shape_cast %78 : vector<1x64x32xf32> to vector<64x32xf32>
      %80 = vector.shape_cast %77 : vector<64x32xf32> to vector<1x64x32xf32>
      tpu.vector_store %arg6[%c0_31, %c0_32, %c0_33], %80 {strides = array<i32>} : memref<1x64x128xf32, #tpu.memory_space<vmem>>, vector<1x64x32xf32>,
      %81 = vector.extract_strided_slice %75 {offsets = [1, 0, 0], sizes = [1, 64, 32], strides = [1, 1, 1]} : vector<4x64x32xf32> to vector<1x64x32xf32>
      %82 = vector.shape_cast %81 : vector<1x64x32xf32> to vector<64x32xf32>
      %c0_34 = arith.constant 0 : index
      %c0_35 = arith.constant 0 : index
      %c32 = arith.constant 32 : index
      %83 = vector.load %arg6[%c0_34, %c0_35, %c32] : memref<1x64x128xf32, #tpu.memory_space<vmem>>, vector<1x64x32xf32>
      %84 = vector.shape_cast %83 : vector<1x64x32xf32> to vector<64x32xf32>
      %85 = vector.shape_cast %82 : vector<64x32xf32> to vector<1x64x32xf32>
      tpu.vector_store %arg6[%c0_34, %c0_35, %c32], %85 {strides = array<i32>} : memref<1x64x128xf32, #tpu.memory_space<vmem>>, vector<1x64x32xf32>,
      %86 = vector.extract_strided_slice %75 {offsets = [2, 0, 0], sizes = [1, 64, 32], strides = [1, 1, 1]} : vector<4x64x32xf32> to vector<1x64x32xf32>
      %87 = vector.shape_cast %86 : vector<1x64x32xf32> to vector<64x32xf32>
      %c0_36 = arith.constant 0 : index
      %c0_37 = arith.constant 0 : index
      %c64 = arith.constant 64 : index
      %88 = vector.load %arg6[%c0_36, %c0_37, %c64] : memref<1x64x128xf32, #tpu.memory_space<vmem>>, vector<1x64x32xf32>
      %89 = vector.shape_cast %88 : vector<1x64x32xf32> to vector<64x32xf32>
      %90 = vector.shape_cast %87 : vector<64x32xf32> to vector<1x64x32xf32>
      tpu.vector_store %arg6[%c0_36, %c0_37, %c64], %90 {strides = array<i32>} : memref<1x64x128xf32, #tpu.memory_space<vmem>>, vector<1x64x32xf32>,
      %91 = vector.extract_strided_slice %75 {offsets = [3, 0, 0], sizes = [1, 64, 32], strides = [1, 1, 1]} : vector<4x64x32xf32> to vector<1x64x32xf32>
      %92 = vector.shape_cast %91 : vector<1x64x32xf32> to vector<64x32xf32>
      %c0_38 = arith.constant 0 : index
      %c0_39 = arith.constant 0 : index
      %c96 = arith.constant 96 : index
      %93 = vector.load %arg6[%c0_38, %c0_39, %c96] : memref<1x64x128xf32, #tpu.memory_space<vmem>>, vector<1x64x32xf32>
      %94 = vector.shape_cast %93 : vector<1x64x32xf32> to vector<64x32xf32>
      %95 = vector.shape_cast %92 : vector<64x32xf32> to vector<1x64x32xf32>
      tpu.vector_store %arg6[%c0_38, %c0_39, %c96], %95 {strides = array<i32>} : memref<1x64x128xf32, #tpu.memory_space<vmem>>, vector<1x64x32xf32>,
    } else {
    }
    return
  }
  func.func @transform_0(%arg0: i32, %arg1: i32) -> (i32, i32, i32) {
    %0 = arith.muli %arg1, %arg0 : i32
    %c0_i32 = arith.constant 0 : i32
    %c0_i32_0 = arith.constant 0 : i32
    %c0_i32_1 = arith.constant 0 : i32
    return %0, %c0_i32, %c0_i32_0 : i32, i32, i32
  }
  func.func @transform_1(%arg0: i32, %arg1: i32) -> (i32, i32, i32) {
    %c0_i32 = arith.constant 0 : i32
    %c0_i32_0 = arith.constant 0 : i32
    %c0_i32_1 = arith.constant 0 : i32
    return %arg1, %c0_i32, %c0_i32_0 : i32, i32, i32
  }
  func.func @transform_2(%arg0: i32, %arg1: i32) -> (i32, i32, i32) {
    %0 = arith.muli %arg1, %arg0 : i32
    %c0_i32 = arith.constant 0 : i32
    %c0_i32_0 = arith.constant 0 : i32
    %c0_i32_1 = arith.constant 0 : i32
    return %0, %c0_i32, %c0_i32_0 : i32, i32, i32
  }
  func.func @transform_3(%arg0: i32, %arg1: i32) -> (i32, i32) {
    %c0_i32 = arith.constant 0 : i32
    %c0_i32_0 = arith.constant 0 : i32
    %c0_i32_1 = arith.constant 0 : i32
    return %c0_i32, %c0_i32_0 : i32, i32
  }
  func.func @transform_4(%arg0: i32, %arg1: i32) -> (i32, i32, i32) {
    %0 = arith.muli %arg1, %arg0 : i32
    %c0_i32 = arith.constant 0 : i32
    %c0_i32_0 = arith.constant 0 : i32
    %c0_i32_1 = arith.constant 0 : i32
    return %0, %c0_i32, %c0_i32_0 : i32, i32, i32
  }
}

</mosaic_0001>

<bundles_post_ra>
// kernel: tpu_custom_call.1
= control target key start
LH: loop header
LB: loop body
LE: loop exit
PB: predicated region body
PF: predicated region fallthrough
CT: control target
= control target key end

     0   :  { %s5811_s0 = inlined_call_operand.vmem [shape: f32[8,64,32], index: 0, kind: input, shape index: {}]   ;;  %s5812_s1 = inlined_call_operand.vmem [shape: f32[8,64,32], index: 1, kind: input, shape index: {}]   ;;  %s5813_s2 = inlined_call_operand.vmem [shape: f32[8,64,32], index: 2, kind: input, shape index: {}]   ;;  %s5814_s3 = inlined_call_operand.vmem [shape: f32[32,128], index: 3, kind: input, shape index: {}]   ;;  %s5815_s4 = inlined_call_operand.hbm [shape: f32[2,64,128], index: 4, kind: output, shape index: {}]  }
   0x1   :  { %5825 = sst [smem:[#allocation14_spill]] %s5814_s3 }
   0x2   :  { %9 = vsyncpa [#allocation4], 0 }
   0x3   :  { %11 = vsyncpa [#allocation4 + $0x1], 0  ;;  %s4376_s15 = smov 0   ;;  %s4378_s16 = smov 0  }
   0x4   :  { %s4380_s17 = smov 0   ;;  %s4382_s18 = smov 0  }
   0x5   :  { %s4384_s19 = smov 0   ;;  %s4386_s20 = smov 0  }
   0x6   :  { %s4388_s21 = smov 0   ;;  %s4390_s22 = smov 0  }
   0x7 LB: > { %s3385_s23 = sadd.s32 4294967295, %s4340_s22   ;;  %s3386_s24 = sadd.s32 4294967294, %s4340_s22   ;;  %s4340_s22 = sphi %s4390_s22, %s17_s22   ;;  %s4336_s21 = sphi %s4388_s21, %s5852_s21   ;;  %s4332_s20 = sphi %s4386_s20, %s5851_s20   ;;  %s4328_s19 = sphi %s4384_s19, %s5850_s19   ;;  %s4324_s18 = sphi %s4382_s18, %s5849_s18   ;;  %s4320_s17 = sphi %s4380_s17, %s5848_s17   ;;  %s4316_s16 = sphi %s4378_s16, %s5847_s16   ;;  %s4312_s15 = sphi %s4376_s15, %s5846_s15  }
   0x8   : > { %s26_s25 = sadd.s32 1, %s4332_s20  ;;  %s29_s26 = sadd.s32 1, %s4336_s21 }
   0x9   : > { %p27_p0 = scmp.ge.s32.totalorder %s26_s25, 2  ;;  %s136_s27 = smul.u32 %s4332_s20, %s4336_s21 }
   0xa   : > { %p151_p1 = scmp.ne.s32.totalorder %s4320_s17, %s4316_s16  ;;  %p152_p2 = scmp.eq.s32.totalorder %s3385_s23, 3 }
   0xb   : > { %s5854_s25 = smov (%p27_p0, %s26_s25), 0  ;;  %s5856_s26 = smov (!%p27_p0, %s29_s26), %s4336_s21 }
   0xc   : > { %p157_p3 = scmp.ne.s32.totalorder %s4316_s16, %s4312_s15  ;;  %p31_p4 = scmp.ge.s32.totalorder %s5856_s26, 2 }
   0xd   : > { %p158_p5 = scmp.eq.s32.totalorder %s3386_s24, 3  ;;  %p4429_p6 = por %p152_p2, %p151_p1 }
   0xe   : > { %p3389_p7 = scmp.ge.s32.totalorder %s4340_s22, 1  ;;  %s5858_s26 = smov (%p31_p4, %s5856_s26), 0 }
   0xf   : > { %5827 = sst [smem:[#allocation6_spill]] %s5858_s26  ;;  %p4436_p8 = por %p158_p5, %p157_p3 }
  0x10   : > { %p213_p9 = scmp.lt.s32.totalorder %s4340_s22, 5  ;;  %s137_s30 = smul.u32 %s5858_s26, %s5854_s25 }
  0x11   : > { %s141_s6 = sadd.s32 1, %s4320_s17 }
  0x12   : > { %p214_p10 = pnand %p3389_p7, %p213_p9  ;;  %s138_s5 = ssub.s32 %s136_s27, %s137_s30 }
  0x13   : > { %p139_p11 = scmp.eq.s32.totalorder %s138_s5, 0  ;;  %s5816_s8 = sand.u32 (!%p214_p10), 1, %s4316_s16  }
  0x14   : > { %217 = sbr.rel (%p214_p10) target bundleno = 1740 (0x6cc), region = 36  ;;  %s5829_s3 = sld [smem:[#allocation14_spill]] (!%p214_p10) }
  0x15   : > { %s4445_s7 = scalar_select %p139_p11, %s4320_s17, %s141_s6  }
  0x16   : > { %s4450_s9 = smul.u32 (!%p214_p10), %s4324_s18, %s4328_s19  ;;  %s3390_s24 = sshll.u32 (!%p214_p10), %s5816_s8, 6 }
  0x17   : > { %s3394_s27 = sshll.u32 (!%p214_p10), %s4324_s18, 2  ;;  %p287_p0 = scmp.eq.s32.totalorder (!%p214_p10), %s4328_s19, 0 }
  0x18   : > { %s3391_s6 = sshll.u32 (!%p214_p10), %s4450_s9, 2  ;;  %p264_p13 = scmp.lt.s32.totalorder (!%p214_p10), %s3394_s27, 7 }
  0x19   : > { %p256_p12 = scmp.lt.s32.totalorder (!%p214_p10), %s3391_s6, 7  ;;  %p288_p1 = scmp.eq.s32.totalorder (!%p214_p10), %s4324_s18, 0 }
  0x1a   : > { %v281_v0 = vld [vmem:[%s5829_s3] sm:$0xff] (!%p214_p10)  ;;  %v282_v1 = vld [vmem:[%s5829_s3 + $0x8] sm:$0xff] (!%p214_p10)  ;;  %v283_v2 = vld [vmem:[%s5829_s3 + $0x10] sm:$0xff] (!%p214_p10)  ;;  %s4489_s18 = scalar_lea.vmem (!%p214_p10), [#allocation3], %s3390_s24 }
  0x1b   : > { %v284_v3 = vld [vmem:[%s5829_s3 + $0x18] sm:$0xff]  ;;  %v4467_v4 = vpack.c.bf16 %v282_v1, %v281_v0  ;;  %s5860_s6 = smov (!%p256_p12, %s3391_s6), 7  ;;  %s5862_s27 = smov (!%p264_p13, %s3394_s27), 7 }
  0x1c   : > { %v4470_v5 = vpack.c.bf16 %v284_v3, %v283_v2  ;;  %s3488_s10 = sshll.u32 %s5860_s6, 6  ;;  %p289_p2 = pnand %p288_p1, %p287_p0 }
  0x1d   : > { %s4477_s13 = scalar_lea.vmem %s5811_s0, %s3488_s10  ;;  %s3489_s14 = sshll.u32 %s5862_s27, 6  ;;  %vm293_vm0 = vcmask (!%p289_p2), 0   ;;  %v4342_v6 = vmov (!%p289_p2), -inf  }
  0x1e   : > { %s4482_s5 = scalar_lea.vmem %s5812_s1, %s3489_s14  ;;  %s4487_s26 = scalar_lea.vmem %s5813_s2, %s3488_s10  ;;  %294 = vst.msk [vmem:[#allocation2] sm:$0x1] (!%p289_p2), %vm293_vm0, %v4342_v6 }
  0x1f   : > { %292 = sbr.rel (%p289_p2) target bundleno = 38 (0x26), region = 40 }
  0x26 PF: > { %p3400_p3 = scmp.ne.s32.totalorder %s4328_s19, 0 }
  0x27   : > { %3640 = vmatprep.subr.bf16.mxu0 (!%p3400_p3), %v4467_v4  ;;  %3936 = vmatprep.subr.bf16.mxu1 (!%p3400_p3), %v4467_v4  ;;  %v298_v7 = vld [vmem:[%s4482_s5] sm:$0xff] (!%p3400_p3)  ;;  %v299_v8 = vld [vmem:[%s4482_s5 + $0x8] sm:$0xff] (!%p3400_p3)  ;;  %vm346_vm1 = vcmask (!%p3400_p3), 261120   ;;  %v300_v9 = vld [vmem:[%s4482_s5 + $0x10] sm:$0xff] (!%p3400_p3)  ;;  %v556_v55 = vlaneseq (!%p3400_p3)  ;;  %vm632_vm3 = vcmask (!%p3400_p3), 0  }
  0x28   : > { %297 = sbr.rel (%p3400_p3) target bundleno = 458 (0x1ca), region = 44  ;;  %3641 = vmatpush3.bf16.msra.mxu0 (!%p3400_p3), %v4467_v4  ;;  %3938 = vmatpush3.bf16.msra.mxu1 (!%p3400_p3), %v4467_v4  ;;  %v330_v10 = vpack.c.bf16 (!%p3400_p3), %v299_v8, %v298_v7  ;;  %v301_v11 = vld [vmem:[%s4482_s5 + $0x18] sm:$0xff] (!%p3400_p3)  ;;  %v314_v12 = vld [vmem:[%s4482_s5 + $0x80] sm:$0xff] (!%p3400_p3)  ;;  %v315_v13 = vld [vmem:[%s4482_s5 + $0x88] sm:$0xff] (!%p3400_p3) }
  0x29   : > { %3642 = vmatprep.subr.bf16.mxu0 (!%p3400_p3), %v4470_v5  ;;  %3937 = vmatprep.subr.bf16.mxu1 (!%p3400_p3), %v4470_v5  ;;  %v338_v14 = vpack.c.bf16 (!%p3400_p3), %v315_v13, %v314_v12  ;;  %v316_v15 = vld [vmem:[%s4482_s5 + $0x90] sm:$0xff] (!%p3400_p3)  ;;  %v317_v16 = vld [vmem:[%s4482_s5 + $0x98] sm:$0xff] (!%p3400_p3)  ;;  %v302_v17 = vld [vmem:[%s4482_s5 + $0x20] sm:$0xff] (!%p3400_p3)  ;;  %v331_v19 = vpack.c.bf16 (!%p3400_p3), %v301_v11, %v300_v9  ;;  %v4548_v60 = vand.u32 (!%p3400_p3), 127, %v556_v55 }
  0x2a   : > { %3644 = vmatprep.mubr.msk.bf16.mxu0 (!%p3400_p3), %vm346_vm1, %v330_v10  ;;  %v303_v18 = vld [vmem:[%s4482_s5 + $0x28] sm:$0xff] (!%p3400_p3)  ;;  %v339_v20 = vpack.c.bf16 (!%p3400_p3), %v317_v16, %v316_v15  ;;  %v318_v21 = vld [vmem:[%s4482_s5 + $0xa0] sm:$0xff] (!%p3400_p3)  ;;  %v304_v25 = vld [vmem:[%s4482_s5 + $0x30] sm:$0xff] (!%p3400_p3) }
  0x2b   : > { %3660 = vmatprep.mubr.msk.bf16.mxu1 (!%p3400_p3), %vm346_vm1, %v338_v14  ;;  %v319_v22 = vld [vmem:[%s4482_s5 + $0xa8] sm:$0xff] (!%p3400_p3)  ;;  %v332_v23 = vpack.c.bf16 (!%p3400_p3), %v303_v18, %v302_v17  ;;  %v305_v26 = vld [vmem:[%s4482_s5 + $0x38] sm:$0xff] (!%p3400_p3)  ;;  %v320_v27 = vld [vmem:[%s4482_s5 + $0xb0] sm:$0xff] (!%p3400_p3)  ;;  %vm558_vm2 = vcmp.lt.s32.totalorder (!%p3400_p3), %v4548_v60, 110 }
  0x2c   : > { %3643 = vmatpush3.bf16.msra.mxu0 (!%p3400_p3), %v4470_v5  ;;  %3939 = vmatpush3.bf16.msra.mxu1 (!%p3400_p3), %v4470_v5  ;;  %v340_v24 = vpack.c.bf16 (!%p3400_p3), %v319_v22, %v318_v21  ;;  %v321_v28 = vld [vmem:[%s4482_s5 + $0xb8] sm:$0xff] (!%p3400_p3)  ;;  %v306_v29 = vld [vmem:[%s4482_s5 + $0x40] sm:$0xff] (!%p3400_p3)  ;;  %v307_v30 = vld [vmem:[%s4482_s5 + $0x48] sm:$0xff] (!%p3400_p3)  ;;  %v333_v33 = vpack.c.bf16 (!%p3400_p3), %v305_v26, %v304_v25 }
  0x2d   : > { %v322_v31 = vld [vmem:[%s4482_s5 + $0xc0] sm:$0xff] (!%p3400_p3)  ;;  %v323_v32 = vld [vmem:[%s4482_s5 + $0xc8] sm:$0xff] (!%p3400_p3)  ;;  %v341_v34 = vpack.c.bf16 (!%p3400_p3), %v321_v28, %v320_v27  ;;  %v334_v35 = vpack.c.bf16 (!%p3400_p3), %v307_v30, %v306_v29  ;;  %v308_v37 = vld [vmem:[%s4482_s5 + $0x50] sm:$0xff] (!%p3400_p3) }
  0x2e   : > { %v342_v36 = vpack.c.bf16 (!%p3400_p3), %v323_v32, %v322_v31  ;;  %v309_v38 = vld [vmem:[%s4482_s5 + $0x58] sm:$0xff] (!%p3400_p3)  ;;  %v324_v39 = vld [vmem:[%s4482_s5 + $0xd0] sm:$0xff] (!%p3400_p3)  ;;  %v310_v41 = vld [vmem:[%s4482_s5 + $0x60] sm:$0xff] (!%p3400_p3) }
  0x2f   : > { %3645 = vmatmul.mubr.msk.bf16.vlgmr.msra.gmra.mrb[0].mxu0 %vm346_vm1, %v331_v19  ;;  %3661 = vmatmul.mubr.msk.bf16.vlgmr.msra.gmra.mrb[0].mxu1 %vm346_vm1, %v339_v20  ;;  %v325_v40 = vld [vmem:[%s4482_s5 + $0xd8] sm:$0xff]  ;;  %v311_v42 = vld [vmem:[%s4482_s5 + $0x68] sm:$0xff]  ;;  %v326_v43 = vld [vmem:[%s4482_s5 + $0xe0] sm:$0xff]  ;;  %v335_v45 = vpack.c.bf16 %v309_v38, %v308_v37 }
  0x30   : > { %3648 = vmatprep.mubr.msk.bf16.mxu0 %vm346_vm1, %v332_v23  ;;  %3664 = vmatprep.mubr.msk.bf16.mxu1 %vm346_vm1, %v340_v24  ;;  %v327_v44 = vld [vmem:[%s4482_s5 + $0xe8] sm:$0xff]  ;;  %v343_v46 = vpack.c.bf16 %v325_v40, %v324_v39  ;;  %v336_v47 = vpack.c.bf16 %v311_v42, %v310_v41  ;;  %v312_v49 = vld [vmem:[%s4482_s5 + $0x70] sm:$0xff]  ;;  %v313_v50 = vld [vmem:[%s4482_s5 + $0x78] sm:$0xff] }
  0x31   : > { %v344_v48 = vpack.c.bf16 %v327_v44, %v326_v43  ;;  %v328_v51 = vld [vmem:[%s4482_s5 + $0xf0] sm:$0xff]  ;;  %v329_v52 = vld [vmem:[%s4482_s5 + $0xf8] sm:$0xff]  ;;  %v337_v53 = vpack.c.bf16 %v313_v50, %v312_v49 }
  0x32   : > { %v345_v54 = vpack.c.bf16 %v329_v52, %v328_v51 }
  0x37   : > { %3649 = vmatmul.mubr.msk.bf16.gmra.mrb[4].mxu0 %vm346_vm1, %v333_v33  ;;  %3665 = vmatmul.mubr.msk.bf16.gmra.mrb[4].mxu1 %vm346_vm1, %v341_v34 }
  0x38   : > { %3652 = vmatprep.mubr.msk.bf16.mxu0 %vm346_vm1, %v334_v35  ;;  %3668 = vmatprep.mubr.msk.bf16.mxu1 %vm346_vm1, %v342_v36 }
  0x3f   : > { %3653 = vmatmul.mubr.msk.bf16.gmra.mrb[8].mxu0 %vm346_vm1, %v335_v45  ;;  %3669 = vmatmul.mubr.msk.bf16.gmra.mrb[8].mxu1 %vm346_vm1, %v343_v46 }
  0x40   : > { %3656 = vmatprep.mubr.msk.bf16.mxu0 %vm346_vm1, %v336_v47  ;;  %3672 = vmatprep.mubr.msk.bf16.mxu1 %vm346_vm1, %v344_v48 }
  0x47   : > { %3657 = vmatmul.mubr.msk.bf16.gmra.mrb[12].mxu0 %vm346_vm1, %v337_v53  ;;  %3673 = vmatmul.mubr.msk.bf16.gmra.mrb[12].mxu1 %vm346_vm1, %v345_v54 }
 0x102   : > { %v3646_v56 = vpop.f32.mrb[0].mxu0  ;;  %v3662_v57 = vpop.f32.mrb[0].mxu1 }
 0x103   : > { %v429_v58 = vpop.f32.mrb[1].mxu0  ;;  %v493_v59 = vpop.f32.mrb[1].mxu1  ;;  %v561_v3 = vsel %vm558_vm2, %v3646_v56, -inf  ;;  %v577_v44 = vsel %vm558_vm2, %v3662_v57, -inf }
 0x104   : > { %v3647_v61 = vpop.f32.mrb[2].mxu0  ;;  %v3663_v62 = vpop.f32.mrb[2].mxu1  ;;  %v559_v9 = vsel %vm558_vm2, %v429_v58, -inf  ;;  %v575_v49 = vsel %vm558_vm2, %v493_v59, -inf }
 0x105   : > { %v432_v63 = vpop.f32.mrb[3].mxu0  ;;  %v496_v0 = vpop.f32.mrb[3].mxu1  ;;  %v562_v14 = vsel %vm558_vm2, %v3647_v61, -inf  ;;  %v578_v50 = vsel %vm558_vm2, %v3663_v62, -inf }
 0x106   : > { %v560_v19 = vsel %vm558_vm2, %v432_v63, -inf  ;;  %v576_v55 = vsel %vm558_vm2, %v496_v0, -inf }
 0x10a   : > { %v3650_v1 = vpop.f32.mrb[4].mxu0  ;;  %v3666_v2 = vpop.f32.mrb[4].mxu1 }
 0x10b   : > { %v565_v6 = vsel %vm558_vm2, %v3650_v1, -inf  ;;  %v445_v7 = vpop.f32.mrb[5].mxu0  ;;  %v509_v8 = vpop.f32.mrb[5].mxu1  ;;  %v581_v59 = vsel %vm558_vm2, %v3666_v2, -inf }
 0x10c   : > { %v593_v10 = vmax.f32 %v561_v3, %v565_v6  ;;  %v563_v11 = vsel %vm558_vm2, %v445_v7, -inf  ;;  %v3651_v12 = vpop.f32.mrb[6].mxu0  ;;  %v3667_v13 = vpop.f32.mrb[6].mxu1  ;;  %v579_v61 = vsel %vm558_vm2, %v509_v8, -inf }
 0x10d   : > { %v591_v15 = vmax.f32 %v559_v9, %v563_v11  ;;  %v566_v16 = vsel %vm558_vm2, %v3651_v12, -inf  ;;  %v448_v17 = vpop.f32.mrb[7].mxu0  ;;  %v512_v18 = vpop.f32.mrb[7].mxu1  ;;  %v582_v1 = vsel %vm558_vm2, %v3667_v13, -inf }
 0x10e   : > { %v594_v20 = vmax.f32 %v562_v14, %v566_v16  ;;  %v564_v21 = vsel %vm558_vm2, %v448_v17, -inf  ;;  %v580_v3 = vsel %vm558_vm2, %v512_v18, -inf }
 0x10f   : > { %v592_v22 = vmax.f32 %v560_v19, %v564_v21 }
 0x112   : > { %v3654_v23 = vpop.f32.mrb[8].mxu0  ;;  %v3670_v24 = vpop.f32.mrb[8].mxu1 }
 0x113   : > { %v569_v25 = vsel %vm558_vm2, %v3654_v23, -inf  ;;  %v461_v26 = vpop.f32.mrb[9].mxu0  ;;  %v525_v27 = vpop.f32.mrb[9].mxu1  ;;  %v585_v7 = vsel %vm558_vm2, %v3670_v24, -inf }
 0x114   : > { %v597_v28 = vmax.f32 %v593_v10, %v569_v25  ;;  %v567_v29 = vsel %vm558_vm2, %v461_v26, -inf  ;;  %v3655_v30 = vpop.f32.mrb[10].mxu0  ;;  %v3671_v31 = vpop.f32.mrb[10].mxu1  ;;  %v583_v8 = vsel %vm558_vm2, %v525_v27, -inf }
 0x115   : > { %v595_v32 = vmax.f32 %v591_v15, %v567_v29  ;;  %v570_v33 = vsel %vm558_vm2, %v3655_v30, -inf  ;;  %v464_v34 = vpop.f32.mrb[11].mxu0  ;;  %v528_v35 = vpop.f32.mrb[11].mxu1  ;;  %v586_v14 = vsel %vm558_vm2, %v3671_v31, -inf }
 0x116   : > { %v598_v36 = vmax.f32 %v594_v20, %v570_v33  ;;  %v568_v37 = vsel %vm558_vm2, %v464_v34, -inf  ;;  %v584_v17 = vsel %vm558_vm2, %v528_v35, -inf  ;;  %v630_v35 = vld [vmem:[#allocation2] sm:$0x1] }
 0x117   : > { %v596_v38 = vmax.f32 %v592_v22, %v568_v37 }
 0x11a   : > { %v3658_v39 = vpop.f32.mrb[12].mxu0  ;;  %v3674_v40 = vpop.f32.mrb[12].mxu1 }
 0x11b   : > { %v573_v41 = vsel %vm558_vm2, %v3658_v39, -inf  ;;  %v477_v42 = vpop.f32.mrb[13].mxu0  ;;  %v541_v43 = vpop.f32.mrb[13].mxu1  ;;  %v589_v2 = vsel %vm558_vm2, %v3674_v40, -inf }
 0x11c   : > { %v601_v45 = vmax.f32 %v597_v28, %v573_v41  ;;  %v571_v46 = vsel %vm558_vm2, %v477_v42, -inf  ;;  %v3659_v47 = vpop.f32.mrb[14].mxu0  ;;  %v3675_v48 = vpop.f32.mrb[14].mxu1  ;;  %v587_v12 = vsel %vm558_vm2, %v541_v43, -inf }
 0x11d   : > { %v599_v51 = vmax.f32 %v595_v32, %v571_v46  ;;  %v574_v52 = vsel %vm558_vm2, %v3659_v47, -inf  ;;  %v480_v53 = vpop.f32.mrb[15].mxu0  ;;  %v544_v54 = vpop.f32.mrb[15].mxu1  ;;  %v590_v21 = vsel %vm558_vm2, %v3675_v48, -inf }
 0x11e   : > { %v605_v56 = vmax.f32 %v601_v45, %v577_v44  ;;  %v602_v57 = vmax.f32 %v598_v36, %v574_v52  ;;  %v572_v58 = vsel %vm558_vm2, %v480_v53, -inf  ;;  %v588_v24 = vsel %vm558_vm2, %v544_v54, -inf }
 0x11f   : > { %v603_v62 = vmax.f32 %v599_v51, %v575_v49  ;;  %v600_v63 = vmax.f32 %v596_v38, %v572_v58 }
 0x120   : > { %v606_v0 = vmax.f32 %v602_v57, %v578_v50  ;;  %v609_v6 = vmax.f32 %v605_v56, %v581_v59 }
 0x121   : > { %v604_v9 = vmax.f32 %v600_v63, %v576_v55  ;;  %v607_v10 = vmax.f32 %v603_v62, %v579_v61 }
 0x122   : > { %v613_v11 = vmax.f32 %v609_v6, %v585_v7  ;;  %v610_v13 = vmax.f32 %v606_v0, %v582_v1 }
 0x123   : > { %v611_v15 = vmax.f32 %v607_v10, %v583_v8  ;;  %v608_v16 = vmax.f32 %v604_v9, %v580_v3 }
 0x124   : > { %v617_v18 = vmax.f32 %v613_v11, %v589_v2  ;;  %v614_v19 = vmax.f32 %v610_v13, %v586_v14 }
 0x125   : > { %v615_v20 = vmax.f32 %v611_v15, %v587_v12  ;;  %v612_v22 = vmax.f32 %v608_v16, %v584_v17 }
 0x126   : > { %v618_v23 = vmax.f32 %v614_v19, %v590_v21 }
 0x127   : > { %v616_v25 = vmax.f32 %v612_v22, %v588_v24 }
 0x128   : > { %v620_v26 = vmax.f32 %v617_v18, %v618_v23 }
 0x129   : > { %v619_v27 = vmax.f32 %v615_v20, %v616_v25 }
 0x12b   : > { %v621_v28 = vmax.f32 %v619_v27, %v620_v26 }
 0x12d   : > { %v622_v29 = vrot.slane %v621_v28, 4 }
 0x12f   : > { %v623_v30 = vmax.f32 %v621_v28, %v622_v29 }
 0x131   : > { %v624_v31 = vrot.slane %v623_v30, 2 }
 0x133   : > { %v625_v32 = vmax.f32 %v623_v30, %v624_v31 }
 0x135   : > { %v626_v33 = vrot.slane %v625_v32, 1 }
 0x137   : > { %v627_v34 = vmax.f32 %v625_v32, %v626_v33 }
 0x139   : > { %628 = vmax.xlane.f32.xlu0 %v627_v34 }
 0x1c6   : > { %v629_v36 = vpop.xlane.xlu0 %628 }
 0x1c7   : > { %v631_v37 = vmax.f32 %v630_v35, %v629_v36 }
 0x1c9   : > { %633 = vst.msk [vmem:[#allocation2] sm:$0x1] %vm632_vm3, %v631_v37 }
 0x1ca PF: > { %p3417_p4 = scmp.ne.s32.totalorder %s4328_s19, 1 }
 0x1cc   : > { %637 = sbr.rel (%p3417_p4) target bundleno = 1714 (0x6b2), region = 48 }
 0x1d3   : > { %3676 = vmatprep.subr.bf16.mxu0 %v4467_v4  ;;  %v638_v60 = vld [vmem:[%s4477_s13] sm:$0xff]  ;;  %v639_v38 = vld [vmem:[%s4477_s13 + $0x8] sm:$0xff]  ;;  %vm734_vm4 = vcmask 261120   ;;  %v640_v40 = vld [vmem:[%s4477_s13 + $0x10] sm:$0xff]  ;;  %v4343_v42 = vmov 0   ;;  %vm2093_vm6 = vcmask 523264  }
 0x1d4   : > { %3677 = vmatpush3.bf16.msra.mxu0 %v4467_v4  ;;  %v702_v39 = vpack.c.bf16 %v639_v38, %v638_v60  ;;  %v641_v41 = vld [vmem:[%s4477_s13 + $0x18] sm:$0xff]  ;;  %4019 = vset.pattern.permute.xlu0 %v4343_v42  ;;  %v642_v43 = vld [vmem:[%s4477_s13 + $0x20] sm:$0xff]  ;;  %v643_v44 = vld [vmem:[%s4477_s13 + $0x28] sm:$0xff]  ;;  %s4345_s3 = smov 32   ;;  %s4346_s19 = smov 64   ;;  %vm3182_vm7 = vcmask 523520  }
 0x1d5   : > { %3678 = vmatprep.subr.bf16.mxu0 %v4470_v5  ;;  %v703_v45 = vpack.c.bf16 %v641_v41, %v640_v40  ;;  %v704_v4 = vpack.c.bf16 %v643_v44, %v642_v43  ;;  %v644_v46 = vld [vmem:[%s4477_s13 + $0x30] sm:$0xff]  ;;  %v645_v47 = vld [vmem:[%s4477_s13 + $0x38] sm:$0xff]  ;;  %v646_v48 = vld [vmem:[%s4477_s13 + $0x40] sm:$0xff]  ;;  %vm3223_vm8 = vcmask 785920   ;;  %vm3264_vm9 = vcmask 1048320  }
 0x1d6   : > { %3680 = vmatprep.mubr.msk.bf16.mxu0 %vm734_vm4, %v702_v39  ;;  %v647_v49 = vld [vmem:[%s4477_s13 + $0x48] sm:$0xff]  ;;  %v4634_v50 = vld [vmem:[%s4482_s5] sm:$0xff]  ;;  %v4637_v51 = vld [vmem:[%s4482_s5 + $0x10] sm:$0xff]  ;;  %v705_v53 = vpack.c.bf16 %v645_v47, %v644_v46 }
 0x1d7   : > { %v4640_v52 = vld [vmem:[%s4482_s5 + $0x18] sm:$0xff]  ;;  %v4645_v54 = vld [vmem:[%s4482_s5 + $0x8] sm:$0xff]  ;;  %v1282_v55 = vmul.f32 %v4637_v51, %v4637_v51  ;;  %v706_v57 = vpack.c.bf16 %v647_v49, %v646_v48  ;;  %v4656_v62 = vld [vmem:[%s4482_s5 + $0x20] sm:$0xff] }
 0x1d8   : > { %3679 = vmatpush3.bf16.msra.mxu0 %v4470_v5  ;;  %v1280_v5 = vmul.f32 %v4634_v50, %v4634_v50  ;;  %v1283_v56 = vmul.f32 %v4640_v52, %v4640_v52  ;;  %v1281_v59 = vmul.f32 %v4645_v54, %v4645_v54  ;;  %v4659_v63 = vld [vmem:[%s4482_s5 + $0x28] sm:$0xff]  ;;  %v1284_v6 = vmul.f32 %v4656_v62, %v4656_v62  ;;  %v648_v7 = vld [vmem:[%s4477_s13 + $0x50] sm:$0xff]  ;;  %v649_v9 = vld [vmem:[%s4477_s13 + $0x58] sm:$0xff] }
 0x1d9   : > { %v1318_v61 = vsel %vm734_vm4, %v1282_v55, 0.0  ;;  %v1285_v0 = vmul.f32 %v4659_v63, %v4659_v63  ;;  %v650_v2 = vld [vmem:[%s4477_s13 + $0x60] sm:$0xff]  ;;  %v651_v10 = vld [vmem:[%s4477_s13 + $0x68] sm:$0xff]  ;;  %v4674_v8 = vld [vmem:[%s4482_s5 + $0x30] sm:$0xff]  ;;  %v707_v14 = vpack.c.bf16 %v649_v9, %v648_v7 }
 0x1da   : > { %v1312_v58 = vsel %vm734_vm4, %v1280_v5, 0.0  ;;  %1319 = vadd.xlane.f32.xlu1 %v1318_v61  ;;  %v1315_v1 = vsel %vm734_vm4, %v1281_v59, 0.0  ;;  %v1321_v3 = vsel %vm734_vm4, %v1283_v56, 0.0  ;;  %v4677_v11 = vld [vmem:[%s4482_s5 + $0x38] sm:$0xff]  ;;  %v1324_v12 = vsel %vm734_vm4, %v1284_v6, 0.0  ;;  %v4686_v18 = vld [vmem:[%s4482_s5 + $0x40] sm:$0xff] }
 0x1db   : > { %3681 = vmatmul.mubr.msk.bf16.vlgmr.msra.gmra.mrb[0].mxu0 %vm734_vm4, %v703_v45  ;;  %1313 = vadd.xlane.f32.xlu0 %v1312_v58  ;;  %v1286_v13 = vmul.f32 %v4674_v8, %v4674_v8  ;;  %v1327_v15 = vsel %vm734_vm4, %v1285_v0, 0.0  ;;  %v1287_v16 = vmul.f32 %v4677_v11, %v4677_v11  ;;  %v708_v17 = vpack.c.bf16 %v651_v10, %v650_v2  ;;  %v652_v22 = vld [vmem:[%s4477_s13 + $0x70] sm:$0xff]  ;;  %v653_v23 = vld [vmem:[%s4477_s13 + $0x78] sm:$0xff]  ;;  %v654_v24 = vld [vmem:[%s4477_s13 + $0x80] sm:$0xff] }
 0x1dc   : > { %3684 = vmatprep.mubr.msk.bf16.mxu0 %vm734_vm4, %v704_v4  ;;  %v1288_v21 = vmul.f32 %v4686_v18, %v4686_v18  ;;  %v655_v25 = vld [vmem:[%s4477_s13 + $0x88] sm:$0xff]  ;;  %v709_v27 = vpack.c.bf16 %v653_v23, %v652_v22  ;;  %v4705_v31 = vld [vmem:[%s4482_s5 + $0x50] sm:$0xff]  ;;  %v657_v35 = vld [vmem:[%s4477_s13 + $0x98] sm:$0xff]  ;;  %v718_v22 = vpack.c.bf16 %v4645_v54, %v4634_v50  ;;  %v719_v50 = vpack.c.bf16 %v4640_v52, %v4637_v51 }
 0x1dd   : > { %v1330_v19 = vsel %vm734_vm4, %v1286_v13, 0.0  ;;  %v1333_v20 = vsel %vm734_vm4, %v1287_v16, 0.0  ;;  %v4699_v26 = vld [vmem:[%s4482_s5 + $0x48] sm:$0xff]  ;;  %v710_v30 = vpack.c.bf16 %v655_v25, %v654_v24  ;;  %v1290_v33 = vmul.f32 %v4705_v31, %v4705_v31  ;;  %v656_v34 = vld [vmem:[%s4477_s13 + $0x90] sm:$0xff]  ;;  %v658_v36 = vld [vmem:[%s4477_s13 + $0xa0] sm:$0xff] }
 0x1de   : > { %1322 = vadd.xlane.f32.xlu1 %v1321_v3  ;;  %v1336_v28 = vsel %vm734_vm4, %v1288_v21, 0.0  ;;  %v1289_v29 = vmul.f32 %v4699_v26, %v4699_v26  ;;  %v659_v37 = vld [vmem:[%s4477_s13 + $0xa8] sm:$0xff]  ;;  %v4717_v60 = vld [vmem:[%s4482_s5 + $0x58] sm:$0xff]  ;;  %v711_v38 = vpack.c.bf16 %v657_v35, %v656_v34  ;;  %v4723_v42 = vld [vmem:[%s4482_s5 + $0x60] sm:$0xff] }
 0x1df   : > { %1316 = vadd.xlane.f32.xlu0 %v1315_v1  ;;  %v1342_v39 = vsel %vm734_vm4, %v1290_v33, 0.0  ;;  %v1291_v40 = vmul.f32 %v4717_v60, %v4717_v60  ;;  %v712_v41 = vpack.c.bf16 %v659_v37, %v658_v36  ;;  %v1292_v44 = vmul.f32 %v4723_v42, %v4723_v42  ;;  %v660_v45 = vld [vmem:[%s4477_s13 + $0xb0] sm:$0xff]  ;;  %v661_v4 = vld [vmem:[%s4477_s13 + $0xb8] sm:$0xff]  ;;  %v662_v46 = vld [vmem:[%s4477_s13 + $0xc0] sm:$0xff] }
 0x1e0   : > { %v1339_v32 = vsel %vm734_vm4, %v1289_v29, 0.0  ;;  %v663_v47 = vld [vmem:[%s4477_s13 + $0xc8] sm:$0xff]  ;;  %v713_v49 = vpack.c.bf16 %v661_v4, %v660_v45  ;;  %v3450_v56 = vld [vmem:[#allocation2] ss:$0 sm:$0xff]  ;;  %v664_v61 = vld [vmem:[%s4477_s13 + $0xd0] sm:$0xff]  ;;  %v720_v29 = vpack.c.bf16 %v4659_v63, %v4656_v62  ;;  %v721_v62 = vpack.c.bf16 %v4677_v11, %v4674_v8 }
 0x1e1   : > { %v1345_v43 = vsel %vm734_vm4, %v1291_v40, 0.0  ;;  %v4735_v48 = vld [vmem:[%s4482_s5 + $0x68] sm:$0xff]  ;;  %v1348_v5 = vsel %vm734_vm4, %v1292_v44, 0.0  ;;  %v714_v55 = vpack.c.bf16 %v663_v47, %v662_v46  ;;  %v665_v1 = vld [vmem:[%s4477_s13 + $0xd8] sm:$0xff]  ;;  %v666_v3 = vld [vmem:[%s4477_s13 + $0xe0] sm:$0xff] }
 0x1e2   : > { %1328 = vadd.xlane.f32.xlu1 %v1327_v15  ;;  %v667_v0 = vld [vmem:[%s4477_s13 + $0xe8] sm:$0xff]  ;;  %v4753_v6 = vld [vmem:[%s4482_s5 + $0x78] sm:$0xff]  ;;  %v715_v7 = vpack.c.bf16 %v665_v1, %v664_v61  ;;  %v668_v15 = vld [vmem:[%s4477_s13 + $0xf0] sm:$0xff]  ;;  %v724_v47 = vpack.c.bf16 %v4735_v48, %v4723_v42 }
 0x1e3   : > { %3685 = vmatmul.mubr.msk.bf16.gmra.mrb[4].mxu0 %vm734_vm4, %v705_v53  ;;  %1325 = vadd.xlane.f32.xlu0 %v1324_v12  ;;  %v1293_v53 = vmul.f32 %v4735_v48, %v4735_v48  ;;  %v1295_v2 = vmul.f32 %v4753_v6, %v4753_v6  ;;  %v716_v10 = vpack.c.bf16 %v667_v0, %v666_v3  ;;  %v4759_v12 = vld [vmem:[%s4482_s5 + $0x80] sm:$0xff]  ;;  %v669_v16 = vld [vmem:[%s4477_s13 + $0xf8] sm:$0xff]  ;;  %v4777_v23 = vld [vmem:[%s4482_s5 + $0x90] sm:$0xff] }
 0x1e4   : > { %3688 = vmatprep.mubr.msk.bf16.mxu0 %vm734_vm4, %v706_v57  ;;  %v4741_v57 = vld [vmem:[%s4482_s5 + $0x70] sm:$0xff]  ;;  %v1298_v25 = vmul.f32 %v4777_v23, %v4777_v23  ;;  %v4813_v34 = vld [vmem:[%s4482_s5 + $0xe0] sm:$0xff]  ;;  %v693_v8 = vld [vmem:[%s4482_s5 + $0xb8] sm:$0xff] }
 0x1e5   : > { %v1351_v58 = vsel %vm734_vm4, %v1293_v53, 0.0  ;;  %v1294_v59 = vmul.f32 %v4741_v57, %v4741_v57  ;;  %v1357_v13 = vsel %vm734_vm4, %v1295_v2, 0.0  ;;  %v4810_v63 = vld [vmem:[%s4482_s5 + $0xb0] sm:$0xff]  ;;  %v694_v45 = vld [vmem:[%s4482_s5 + $0xc0] sm:$0xff]  ;;  %v699_v61 = vld [vmem:[%s4482_s5 + $0xe8] sm:$0xff] }
 0x1e6   : > { %1334 = vadd.xlane.f32.xlu1 %v1333_v20  ;;  %v1366_v54 = vsel %vm734_vm4, %v1298_v25, 0.0  ;;  %v1302_v36 = vmul.f32 %v4810_v63, %v4810_v63  ;;  %v700_v11 = vld [vmem:[%s4482_s5 + $0xf0] sm:$0xff]  ;;  %v1304_v4 = vmul.f32 %v694_v45, %v694_v45  ;;  %v1309_v3 = vmul.f32 %v699_v61, %v699_v61 }
 0x1e7   : > { %1331 = vadd.xlane.f32.xlu0 %v1330_v19  ;;  %v1354_v9 = vsel %vm734_vm4, %v1294_v59, 0.0  ;;  %v717_v19 = vpack.c.bf16 %v669_v16, %v668_v15  ;;  %v1310_v44 = vmul.f32 %v700_v11, %v700_v11  ;;  %v729_v2 = vpack.c.bf16 %v693_v8, %v4810_v63 }
 0x1e8   : > { %v1378_v40 = vsel %vm734_vm4, %v1302_v36, 0.0 }
 0x1e9   : > { %v1402_v46 = vsel %vm734_vm4, %v1310_v44, 0.0 }
 0x1ea   : > { %1337 = vadd.xlane.f32.xlu1 %v1336_v28 }
 0x1eb   : > { %3689 = vmatmul.mubr.msk.bf16.gmra.mrb[8].mxu0 %vm734_vm4, %v707_v14  ;;  %v1296_v14 = vmul.f32 %v4759_v12, %v4759_v12 }
 0x1ec   : > { %3692 = vmatprep.mubr.msk.bf16.mxu0 %vm734_vm4, %v708_v17  ;;  %v4769_v17 = vld [vmem:[%s4482_s5 + $0x88] sm:$0xff] }
 0x1ed   : > { %v1360_v20 = vsel %vm734_vm4, %v1296_v14, 0.0  ;;  %v1297_v21 = vmul.f32 %v4769_v17, %v4769_v17  ;;  %v726_v48 = vpack.c.bf16 %v4769_v17, %v4759_v12  ;;  %v732_v14 = vpack.c.bf16 %v699_v61, %v4813_v34 }
 0x1ee   : > { %1340 = vadd.xlane.f32.xlu1 %v1339_v32  ;;  %v4798_v32 = vld [vmem:[%s4482_s5 + $0xa8] sm:$0xff] }
 0x1ef   : > { %v1363_v24 = vsel %vm734_vm4, %v1297_v21, 0.0  ;;  %v1301_v51 = vmul.f32 %v4798_v32, %v4798_v32 }
 0x1f1   : > { %v1375_v35 = vsel %vm734_vm4, %v1301_v51, 0.0 }
 0x1f2   : > { %1343 = vadd.xlane.f32.xlu1 %v1342_v39  ;;  %v722_v39 = vpack.c.bf16 %v4699_v26, %v4686_v18  ;;  %v723_v18 = vpack.c.bf16 %v4717_v60, %v4705_v31  ;;  %v696_v31 = vld [vmem:[%s4482_s5 + $0xd0] sm:$0xff]  ;;  %v725_v60 = vpack.c.bf16 %v4753_v6, %v4741_v57  ;;  %v701_v6 = vld [vmem:[%s4482_s5 + $0xf8] sm:$0xff] }
 0x1f3   : > { %3693 = vmatmul.mubr.msk.bf16.gmra.mrb[12].mxu0 %vm734_vm4, %v709_v27  ;;  %v4785_v27 = vld [vmem:[%s4482_s5 + $0xa0] sm:$0xff]  ;;  %v1306_v42 = vmul.f32 %v696_v31, %v696_v31  ;;  %v733_v15 = vpack.c.bf16 %v701_v6, %v700_v11 }
 0x1f4   : > { %3696 = vmatprep.mubr.msk.bf16.mxu0 %vm734_vm4, %v710_v30  ;;  %v1300_v28 = vmul.f32 %v4785_v27, %v4785_v27  ;;  %v4795_v30 = vld [vmem:[%s4482_s5 + $0x98] sm:$0xff]  ;;  %v728_v0 = vpack.c.bf16 %v4798_v32, %v4785_v27 }
 0x1f5   : > { %v1299_v52 = vmul.f32 %v4795_v30, %v4795_v30  ;;  %v727_v57 = vpack.c.bf16 %v4795_v30, %v4777_v23 }
 0x1f6   : > { %1346 = vadd.xlane.f32.xlu1 %v1345_v43  ;;  %v1372_v33 = vsel %vm734_vm4, %v1300_v28, 0.0 }
 0x1f7   : > { %v1369_v37 = vsel %vm734_vm4, %v1299_v52, 0.0 }
 0x1fa   : > { %1349 = vadd.xlane.f32.xlu1 %v1348_v5  ;;  %v1384_v5 = vsel %vm734_vm4, %v1304_v4, 0.0 }
 0x1fb   : > { %3697 = vmatmul.mubr.msk.bf16.gmra.mrb[16].mxu0 %vm734_vm4, %v711_v38  ;;  %v1308_v38 = vmul.f32 %v4813_v34, %v4813_v34 }
 0x1fc   : > { %3700 = vmatprep.mubr.msk.bf16.mxu0 %vm734_vm4, %v712_v41  ;;  %v1303_v41 = vmul.f32 %v693_v8, %v693_v8 }
 0x1fd   : > { %1770 = vperm.xlu0 %4019, %v3450_v56   ;;  %v1396_v43 = vsel %vm734_vm4, %v1308_v38, 0.0  ;;  %v697_v56 = vld [vmem:[%s4482_s5 + $0xd8] sm:$0xff] }
 0x1fe   : > { %1352 = vadd.xlane.f32.xlu1 %v1351_v58  ;;  %v1381_v26 = vsel %vm734_vm4, %v1303_v41, 0.0  ;;  %v1390_v58 = vsel %vm734_vm4, %v1306_v42, 0.0  ;;  %v1307_v59 = vmul.f32 %v697_v56, %v697_v56  ;;  %v1998_v42 = vld [vmem:[%s4487_s26 + $0x8] sm:$0xff] }
 0x200   : > { %v1393_v1 = vsel %vm734_vm4, %v1307_v59, 0.0 }
 0x202   : > { %1355 = vadd.xlane.f32.xlu1 %v1354_v9  ;;  %v1311_v9 = vmul.f32 %v701_v6, %v701_v6 }
 0x203   : > { %3701 = vmatmul.mubr.msk.bf16.gmra.mrb[20].mxu0 %vm734_vm4, %v713_v49  ;;  %v695_v49 = vld [vmem:[%s4482_s5 + $0xc8] sm:$0xff] }
 0x204   : > { %3704 = vmatprep.mubr.msk.bf16.mxu0 %vm734_vm4, %v714_v55  ;;  %v1305_v53 = vmul.f32 %v695_v49, %v695_v49  ;;  %v730_v12 = vpack.c.bf16 %v695_v49, %v694_v45 }
 0x206   : > { %1358 = vadd.xlane.f32.xlu1 %v1357_v13  ;;  %v1387_v55 = vsel %vm734_vm4, %v1305_v53, 0.0  ;;  %v731_v13 = vpack.c.bf16 %v697_v56, %v696_v31 }
 0x20a   : > { %1361 = vadd.xlane.f32.xlu1 %v1360_v20 }
 0x20b   : > { %3705 = vmatmul.mubr.msk.bf16.gmra.mrb[24].mxu0 %vm734_vm4, %v715_v7  ;;  %v1399_v7 = vsel %vm734_vm4, %v1309_v3, 0.0 }
 0x20c   : > { %3708 = vmatprep.mubr.msk.bf16.mxu0 %vm734_vm4, %v716_v10  ;;  %v1405_v10 = vsel %vm734_vm4, %v1311_v9, 0.0 }
 0x20e   : > { %1364 = vadd.xlane.f32.xlu1 %v1363_v24 }
 0x212   : > { %1367 = vadd.xlane.f32.xlu1 %v1366_v54 }
 0x213   : > { %3709 = vmatmul.mubr.msk.bf16.gmra.mrb[28].mxu0 %vm734_vm4, %v717_v19 }
 0x214   : > { %3712 = vmatprep.mubr.msk.bf16.mxu0 %vm734_vm4, %v718_v22 }
 0x216   : > { %1373 = vadd.xlane.f32.xlu1 %v1372_v33 }
 0x21a   : > { %1376 = vadd.xlane.f32.xlu1 %v1375_v35 }
 0x21b   : > { %3713 = vmatmul.mubr.msk.bf16.gmra.mrb[32].mxu0 %vm734_vm4, %v719_v50 }
 0x21c   : > { %3716 = vmatprep.mubr.msk.bf16.mxu0 %vm734_vm4, %v720_v29  ;;  %1370 = vadd.xlane.f32.xlu0 %v1369_v37 }
 0x21e   : > { %1379 = vadd.xlane.f32.xlu1 %v1378_v40 }
 0x220   : > { %1397 = vadd.xlane.f32.xlu0 %v1396_v43 }
 0x222   : > { %1382 = vadd.xlane.f32.xlu1 %v1381_v26 }
 0x223   : > { %3717 = vmatmul.mubr.msk.bf16.gmra.mrb[36].mxu0 %vm734_vm4, %v721_v62 }
 0x224   : > { %3720 = vmatprep.mubr.msk.bf16.mxu0 %vm734_vm4, %v722_v39  ;;  %1403 = vadd.xlane.f32.xlu0 %v1402_v46 }
 0x226   : > { %1385 = vadd.xlane.f32.xlu1 %v1384_v5 }
 0x22a   : > { %1388 = vadd.xlane.f32.xlu1 %v1387_v55  ;;  %v1997_v55 = vld [vmem:[%s4487_s26] sm:$0xff] }
 0x22b   : > { %3721 = vmatmul.mubr.msk.bf16.gmra.mrb[40].mxu0 %vm734_vm4, %v723_v18  ;;  %v2029_v56 = vsel %vm734_vm4, %v1997_v55, 1.0 }
 0x22c   : > { %3724 = vmatprep.mubr.msk.bf16.mxu0 %vm734_vm4, %v724_v47 }
 0x22e   : > { %1391 = vadd.xlane.f32.xlu1 %v1390_v58  ;;  %v2030_v58 = vsel %vm734_vm4, %v1998_v42, 1.0 }
 0x22f   : > { %v2061_v59 = vpack.c.bf16 %v2030_v58, %v2029_v56 }
 0x231   : > { %3744 = vmatprep.subr.bf16.mxu1 %v2061_v59 }
 0x232   : > { %1394 = vadd.xlane.f32.xlu1 %v1393_v1  ;;  %v2000_v1 = vld [vmem:[%s4487_s26 + $0x18] sm:$0xff]  ;;  %3745 = vmatpush3.bf16.msra.mxu1 %v2061_v59 }
 0x233   : > { %3725 = vmatmul.mubr.msk.bf16.gmra.mrb[44].mxu0 %vm734_vm4, %v725_v60  ;;  %v2032_v6 = vsel %vm734_vm4, %v2000_v1, 1.0  ;;  %v2004_v1 = vld [vmem:[%s4487_s26 + $0x38] sm:$0xff] }
 0x234   : > { %3728 = vmatprep.mubr.msk.bf16.mxu0 %vm734_vm4, %v726_v48 }
 0x236   : > { %1400 = vadd.xlane.f32.xlu1 %v1399_v7 }
 0x23a   : > { %1406 = vadd.xlane.f32.xlu1 %v1405_v10 }
 0x23b   : > { %3729 = vmatmul.mubr.msk.bf16.gmra.mrb[48].mxu0 %vm734_vm4, %v727_v57  ;;  %v1999_v57 = vld [vmem:[%s4487_s26 + $0x10] sm:$0xff] }
 0x23c   : > { %3732 = vmatprep.mubr.msk.bf16.mxu0 %vm734_vm4, %v728_v0  ;;  %v2031_v0 = vsel %vm734_vm4, %v1999_v57, 1.0  ;;  %v2003_v57 = vld [vmem:[%s4487_s26 + $0x30] sm:$0xff] }
 0x23d   : > { %v2062_v9 = vpack.c.bf16 %v2032_v6, %v2031_v0 }
 0x23f   : > { %3746 = vmatprep.subr.bf16.mxu1 %v2062_v9 }
 0x240   : > { %3747 = vmatpush3.bf16.msra.mxu1 %v2062_v9  ;;  %v2035_v9 = vsel %vm734_vm4, %v2003_v57, 1.0  ;;  %v1440_v57 = vlaneseq }
 0x243   : > { %3733 = vmatmul.mubr.msk.bf16.gmra.mrb[52].mxu0 %vm734_vm4, %v729_v2 }
 0x244   : > { %3736 = vmatprep.mubr.msk.bf16.mxu0 %vm734_vm4, %v730_v12 }
 0x24b   : > { %3737 = vmatmul.mubr.msk.bf16.gmra.mrb[56].mxu0 %vm734_vm4, %v731_v13  ;;  %v2001_v13 = vld [vmem:[%s4487_s26 + $0x20] sm:$0xff] }
 0x24c   : > { %3740 = vmatprep.mubr.msk.bf16.mxu0 %vm734_vm4, %v732_v14  ;;  %v2002_v14 = vld [vmem:[%s4487_s26 + $0x28] sm:$0xff] }
 0x24d   : > { %v2034_v55 = vsel %vm734_vm4, %v2002_v14, 1.0 }
 0x253   : > { %3741 = vmatmul.mubr.msk.bf16.gmra.mrb[60].mxu0 %vm734_vm4, %v733_v15  ;;  %v2033_v15 = vsel %vm734_vm4, %v2001_v13, 1.0  ;;  %v2036_v13 = vsel %vm734_vm4, %v2004_v1, 1.0 }
 0x254   : > { %v2063_v58 = vpack.c.bf16 %v2034_v55, %v2033_v15 }
 0x256   : > { %3748 = vmatprep.subr.bf16.mxu1 %v2063_v58 }
 0x257   : > { %3749 = vmatpush3.bf16.msra.mxu1 %v2063_v58 }
 0x267   : > { %v4868_v16 = vpop.xlane.xlu1 %1319 }
 0x268   : > { %v1314_v45 = vpop.xlane.xlu0 %1313  ;;  %v1410_v42 = vmul.f32 0.088388346, %v4868_v16  ;;  %v2064_v16 = vpack.c.bf16 %v2036_v13, %v2035_v9 }
 0x269   : > { %v1408_v0 = vmul.f32 0.088388346, %v1314_v45 }
 0x26a   : > { %3750 = vmatprep.subr.bf16.mxu1 %v2064_v16 }
 0x26b   : > { %v4870_v17 = vpop.xlane.xlu1 %1322  ;;  %3751 = vmatpush3.bf16.msra.mxu1 %v2064_v16 }
 0x26c   : > { %v1317_v47 = vpop.xlane.xlu0 %1316  ;;  %v1411_v59 = vmul.f32 0.088388346, %v4870_v17 }
 0x26f   : > { %v4872_v19 = vpop.xlane.xlu1 %1328 }
 0x270   : > { %v1326_v48 = vpop.xlane.xlu0 %1325  ;;  %v1413_v13 = vmul.f32 0.088388346, %v4872_v19 }
 0x273   : > { %v4874_v20 = vpop.xlane.xlu1 %1334 }
 0x274   : > { %v1332_v10 = vpop.xlane.xlu0 %1331 }
 0x277   : > { %v4876_v21 = vpop.xlane.xlu1 %1337 }
 0x27b   : > { %v4882_v24 = vpop.xlane.xlu1 %1340 }
 0x27f   : > { %v4888_v50 = vpop.xlane.xlu1 %1343 }
 0x283   : > { %v4898_v32 = vpop.xlane.xlu1 %1346 }
 0x287   : > { %v4908_v63 = vpop.xlane.xlu1 %1349 }
 0x28b   : > { %v4914_v36 = vpop.xlane.xlu1 %1352 }
 0x28f   : > { %v4920_v39 = vpop.xlane.xlu1 %1355 }
 0x293   : > { %v4930_v43 = vpop.xlane.xlu1 %1358 }
 0x297   : > { %v4940_v46 = vpop.xlane.xlu1 %1361 }
 0x29b   : > { %v4946_v53 = vpop.xlane.xlu1 %1364 }
 0x29f   : > { %v4956_v61 = vpop.xlane.xlu1 %1367 }
 0x2a3   : > { %v4975_v56 = vpop.xlane.xlu1 %1373 }
 0x2ae   : > { %v4878_v22 = vpop.f32.mrb[0].mxu0 }
 0x2af   : > { %v4880_v23 = vpop.f32.mrb[1].mxu0 }
 0x2b0   : > { %v4884_v25 = vpop.f32.mrb[2].mxu0 }
 0x2b1   : > { %v4886_v27 = vpop.f32.mrb[3].mxu0 }
 0x2b6   : > { %v4890_v54 = vpop.f32.mrb[4].mxu0 }
 0x2b7   : > { %v4892_v28 = vpop.f32.mrb[5].mxu0 }
 0x2b8   : > { %v4894_v29 = vpop.f32.mrb[6].mxu0 }
 0x2b9   : > { %v4896_v30 = vpop.f32.mrb[7].mxu0 }
 0x2be   : > { %v4900_v33 = vpop.f32.mrb[8].mxu0 }
 0x2bf   : > { %v4902_v51 = vpop.f32.mrb[9].mxu0 }
 0x2c0   : > { %v4904_v52 = vpop.f32.mrb[10].mxu0 }
 0x2c1   : > { %v4906_v62 = vpop.f32.mrb[11].mxu0 }
 0x2c6   : > { %v4910_v34 = vpop.f32.mrb[12].mxu0 }
 0x2c7   : > { %v4912_v35 = vpop.f32.mrb[13].mxu0 }
 0x2c8   : > { %v4916_v37 = vpop.f32.mrb[14].mxu0 }
 0x2c9   : > { %v4918_v38 = vpop.f32.mrb[15].mxu0 }
 0x2ce   : > { %v4922_v8 = vpop.f32.mrb[16].mxu0 }
 0x2cf   : > { %v4924_v11 = vpop.f32.mrb[17].mxu0 }
 0x2d0   : > { %v4926_v40 = vpop.f32.mrb[18].mxu0 }
 0x2d1   : > { %v4928_v41 = vpop.f32.mrb[19].mxu0 }
 0x2d6   : > { %v4932_v44 = vpop.f32.mrb[20].mxu0 }
 0x2d7   : > { %5830 = vst [vmem:[#allocation7_spill] sm:$0xff] %v4932_v44  ;;  %v4934_v18 = vpop.f32.mrb[21].mxu0 }
 0x2d8   : > { %v4936_v26 = vpop.f32.mrb[22].mxu0 }
 0x2d9   : > { %5831 = vst [vmem:[#allocation8_spill] sm:$0xff] %v4936_v26  ;;  %v4938_v4 = vpop.f32.mrb[23].mxu0  ;;  %v1409_v26 = vmul.f32 0.088388346, %v1317_v47 }
 0x2da   : > { %5832 = vst [vmem:[#allocation9_spill] sm:$0xff] %v4938_v4 }
 0x2de   : > { %v4942_v49 = vpop.f32.mrb[24].mxu0 }
 0x2df   : > { %v4944_v5 = vpop.f32.mrb[25].mxu0 }
 0x2e0   : > { %v4948_v31 = vpop.f32.mrb[26].mxu0 }
 0x2e1   : > { %v4950_v60 = vpop.f32.mrb[27].mxu0 }
 0x2e6   : > { %v4960_v3 = vpop.f32.mrb[28].mxu0 }
 0x2e7   : > { %5833 = vst [vmem:[#allocation10_spill] sm:$0xff] %v4960_v3  ;;  %v4964_v7 = vpop.f32.mrb[29].mxu0  ;;  %v1377_v3 = vpop.xlane.xlu1 %1376 }
 0x2e8   : > { %5834 = vst [vmem:[#allocation11_spill] sm:$0xff] %v4964_v7  ;;  %v4966_v2 = vpop.f32.mrb[30].mxu0 }
 0x2e9   : > { %5835 = vst [vmem:[#allocation12_spill] sm:$0xff] %v4966_v2  ;;  %v4968_v12 = vpop.f32.mrb[31].mxu0  ;;  %v4980_v2 = vpop.permute.xlu0 %1770 }
 0x2ea   : > { %5836 = vst [vmem:[#allocation13_spill] sm:$0xff] %v4968_v12 }
 0x2ee   : > { %v3714_v6 = vpop.f32.mrb[32].mxu0 }
 0x2ef   : > { %v1734_v14 = vsub.f32 %v3714_v6, %v1410_v42  ;;  %v993_v12 = vpop.f32.mrb[33].mxu0  ;;  %v1412_v42 = vmul.f32 0.088388346, %v1326_v48  ;;  %v1380_v48 = vpop.xlane.xlu1 %1379 }
 0x2f0   : > { %v1732_v4 = vsub.f32 %v993_v12, %v1408_v0  ;;  %v3715_v15 = vpop.f32.mrb[34].mxu0  ;;  %v1371_v12 = vpop.xlane.xlu0 %1370  ;;  %v1414_v0 = vmul.f32 0.088388346, %v1332_v10 }
 0x2f1   : > { %v1735_v55 = vsub.f32 %v3715_v15, %v1411_v59  ;;  %v996_v17 = vpop.f32.mrb[35].mxu0  ;;  %v1775_v7 = vsub.f32 %v1734_v14, %v4980_v2  ;;  %v1415_v59 = vmul.f32 0.088388346, %v4874_v20  ;;  %v4991_v15 = vand.u32 127, %v1440_v57 }
 0x2f2   : > { %v1733_v45 = vsub.f32 %v996_v17, %v1409_v26  ;;  %v1773_v44 = vsub.f32 %v1732_v4, %v4980_v2  ;;  %v1416_v4 = vmul.f32 0.088388346, %v4876_v21  ;;  %v1418_v20 = vmul.f32 0.088388346, %v4888_v50 }
 0x2f3   : > { %v1776_v58 = vsub.f32 %v1735_v55, %v4980_v2  ;;  %v1809_v1 = vmul.f32 1.442695, %v1775_v7  ;;  %v1419_v17 = vmul.f32 0.088388346, %v4898_v32  ;;  %v5003_v57 = vmul.f32 0.088388346, %v4914_v36 }
 0x2f4   : > { %v1774_v6 = vsub.f32 %v1733_v45, %v4980_v2  ;;  %v1805_v47 = vmul.f32 1.442695, %v1773_v44  ;;  %v4994_v44 = vmul.f32 0.088388346, %v4882_v24  ;;  %v1398_v19 = vpop.xlane.xlu0 %1397  ;;  %v4999_v45 = vmul.f32 0.088388346, %v4908_v63 }
 0x2f5   : > { %v1811_v9 = vmul.f32 1.442695, %v1776_v58  ;;  %4022 = vpow2.f32 %v1809_v1  ;;  %v5006_v24 = vmul.f32 0.088388346, %v4920_v39  ;;  %v5013_v32 = vmul.f32 0.088388346, %v4940_v46  ;;  %v1383_v46 = vpop.xlane.xlu1 %1382 }
 0x2f6   : > { %v1807_v26 = vmul.f32 1.442695, %v1774_v6  ;;  %v3718_v14 = vpop.f32.mrb[36].mxu0  ;;  %4024 = vpow2.f32 %v1805_v47  ;;  %v5010_v6 = vmul.f32 0.088388346, %v4930_v43  ;;  %vm1442_vm5 = vcmp.lt.s32.totalorder %v4991_v15, 110 }
 0x2f7   : > { %4026 = vpow2.f32 %v1811_v9  ;;  %v1738_v16 = vsub.f32 %v3718_v14, %v1414_v0  ;;  %v1009_v7 = vpop.f32.mrb[37].mxu0  ;;  %v5018_v36 = vmul.f32 0.088388346, %v4946_v53  ;;  %v5021_v39 = vmul.f32 0.088388346, %v4956_v61 }
 0x2f8   : > { %4028 = vpow2.f32 %v1807_v26  ;;  %v1736_v10 = vsub.f32 %v1009_v7, %v1412_v42  ;;  %v3719_v55 = vpop.f32.mrb[38].mxu0  ;;  %v5024_v43 = vmul.f32 0.088388346, %v4975_v56  ;;  %v1404_v53 = vpop.xlane.xlu0 %1403 }
 0x2f9   : > { %v1779_v21 = vsub.f32 %v1738_v16, %v4980_v2  ;;  %v1739_v58 = vsub.f32 %v3719_v55, %v1415_v59  ;;  %v1012_v1 = vpop.f32.mrb[39].mxu0  ;;  %v5029_v16 = vmul.f32 0.088388346, %v1371_v12  ;;  %v5031_v55 = vmul.f32 0.088388346, %v1380_v48 }
 0x2fa   : > { %v1777_v50 = vsub.f32 %v1736_v10, %v4980_v2  ;;  %v1737_v42 = vsub.f32 %v1012_v1, %v1413_v13  ;;  %v5026_v13 = vmul.f32 0.088388346, %v1377_v3  ;;  %v5035_v1 = vmul.f32 0.088388346, %v1383_v46 }
 0x2fb   : > { %v1817_v63 = vmul.f32 1.442695, %v1779_v21  ;;  %v1780_v47 = vsub.f32 %v1739_v58, %v4980_v2  ;;  %v5033_v21 = vmul.f32 0.088388346, %v1398_v19 }
 0x2fc   : > { %v1813_v59 = vmul.f32 1.442695, %v1777_v50  ;;  %v1778_v0 = vsub.f32 %v1737_v42, %v4980_v2 }
 0x2fd   : > { %4030 = vpow2.f32 %v1817_v63  ;;  %v1819_v9 = vmul.f32 1.442695, %v1780_v47 }
 0x2fe   : > { %4032 = vpow2.f32 %v1813_v59  ;;  %v1815_v26 = vmul.f32 1.442695, %v1778_v0  ;;  %v3722_v14 = vpop.f32.mrb[40].mxu0  ;;  %v5038_v0 = vmul.f32 0.088388346, %v1404_v53 }
 0x2ff   : > { %v4023_v7 = vpop.eup %4022  ;;  %4034 = vpow2.f32 %v1819_v9  ;;  %v1742_v61 = vsub.f32 %v3722_v14, %v1418_v20  ;;  %v1025_v10 = vpop.f32.mrb[41].mxu0 }
 0x300   : > { %v4025_v56 = vpop.eup %4024  ;;  %4036 = vpow2.f32 %v1815_v26  ;;  %v1740_v3 = vsub.f32 %v1025_v10, %v1416_v4  ;;  %v3723_v58 = vpop.f32.mrb[42].mxu0  ;;  %v1871_v50 = vadd.f32 0.0001, %v4023_v7 }
 0x301   : > { %v4027_v42 = vpop.eup %4026  ;;  %v1783_v12 = vsub.f32 %v1742_v61, %v4980_v2  ;;  %v1743_v63 = vsub.f32 %v3723_v58, %v1419_v17  ;;  %v1028_v47 = vpop.f32.mrb[43].mxu0  ;;  %v1869_v59 = vadd.f32 0.0001, %v4025_v56 }
 0x302   : > { %v4029_v20 = vpop.eup %4028  ;;  %v1872_v48 = vadd.f32 0.0001, %v4027_v42  ;;  %v1781_v19 = vsub.f32 %v1740_v3, %v4980_v2  ;;  %v1741_v9 = vsub.f32 %v1028_v47, %v4994_v44  ;;  %v1903_v26 = vmul.f32 0.09534626, %v1871_v50  ;;  %v1386_v10 = vpop.xlane.xlu1 %1385  ;;  %v2005_v47 = vld [vmem:[%s4487_s26 + $0x40] sm:$0xff] }
 0x303   : > { %v1870_v4 = vadd.f32 0.0001, %v4029_v20  ;;  %v1825_v14 = vmul.f32 1.442695, %v1783_v12  ;;  %v1784_v46 = vsub.f32 %v1743_v63, %v4980_v2  ;;  %v1901_v7 = vmul.f32 0.09534626, %v1869_v59 }
 0x304   : > { %v1904_v61 = vmul.f32 0.09534626, %v1872_v48  ;;  %v1821_v17 = vmul.f32 1.442695, %v1781_v19  ;;  %v1782_v56 = vsub.f32 %v1741_v9, %v4980_v2  ;;  %v5044_v53 = vmul.f32 0.088388346, %v1386_v10 }
 0x305   : > { %v1902_v58 = vmul.f32 0.09534626, %v1870_v4  ;;  %4038 = vpow2.f32 %v1825_v14  ;;  %v1827_v42 = vmul.f32 1.442695, %v1784_v46  ;;  %v1935_v44 = vsel %vm1442_vm5, %v1903_v26, 0.0 }
 0x306   : > { %4040 = vpow2.f32 %v1821_v17  ;;  %v1823_v3 = vmul.f32 1.442695, %v1782_v56  ;;  %v3726_v50 = vpop.f32.mrb[44].mxu0  ;;  %v1933_v12 = vsel %vm1442_vm5, %v1901_v7, 0.0  ;;  %v1936_v63 = vsel %vm1442_vm5, %v1904_v61, 0.0 }
 0x307   : > { %v4031_v59 = vpop.eup %4030  ;;  %4042 = vpow2.f32 %v1827_v42  ;;  %v1746_v20 = vsub.f32 %v3726_v50, %v5006_v24  ;;  %v1041_v48 = vpop.f32.mrb[45].mxu0  ;;  %v1934_v19 = vsel %vm1442_vm5, %v1902_v58, 0.0  ;;  %v1982_v9 = vpack.c.bf16 %v1936_v63, %v1935_v44 }
 0x308   : > { %v4033_v26 = vpop.eup %4032  ;;  %v1875_v4 = vadd.f32 0.0001, %v4031_v59  ;;  %4044 = vpow2.f32 %v1823_v3  ;;  %v1744_v14 = vsub.f32 %v1041_v48, %v4999_v45  ;;  %v3727_v46 = vpop.f32.mrb[46].mxu0  ;;  %v1981_v7 = vpack.c.bf16 %v1934_v19, %v1933_v12  ;;  %v2006_v59 = vld [vmem:[%s4487_s26 + $0x48] sm:$0xff] }
 0x309   : > { %v4035_v10 = vpop.eup %4034  ;;  %v1873_v61 = vadd.f32 0.0001, %v4033_v26  ;;  %v1787_v17 = vsub.f32 %v1746_v20, %v4980_v2  ;;  %v1747_v56 = vsub.f32 %v3727_v46, %v5010_v6  ;;  %v1044_v24 = vpop.f32.mrb[47].mxu0  ;;  %v2037_v50 = vsel %vm734_vm4, %v2005_v47, 1.0 }
 0x30a   : > { %v1389_v42 = vpop.xlane.xlu1 %1388  ;;  %v4037_v58 = vpop.eup %4036  ;;  %v1907_v44 = vmul.f32 0.09534626, %v1875_v4  ;;  %v1876_v63 = vadd.f32 0.0001, %v4035_v10  ;;  %v1785_v3 = vsub.f32 %v1744_v14, %v4980_v2  ;;  %v1745_v45 = vsub.f32 %v1044_v24, %v5003_v57  ;;  %2077 = vxpose.xlu0.c.b16.start [1/4] (short) %v1981_v7, 128 }
 0x30b   : > { %v1905_v12 = vmul.f32 0.09534626, %v1873_v61  ;;  %v1874_v48 = vadd.f32 0.0001, %v4037_v58  ;;  %v1833_v19 = vmul.f32 1.442695, %v1787_v17  ;;  %v1788_v20 = vsub.f32 %v1747_v56, %v4980_v2 }
 0x30c   : > { %v1908_v26 = vmul.f32 0.09534626, %v1876_v63  ;;  %v1829_v6 = vmul.f32 1.442695, %v1785_v3  ;;  %v1786_v46 = vsub.f32 %v1745_v45, %v4980_v2  ;;  %v1939_v47 = vsel %vm1442_vm5, %v1907_v44, 0.0 }
 0x30d   : > { %v1906_v4 = vmul.f32 0.09534626, %v1874_v48  ;;  %4046 = vpow2.f32 %v1833_v19  ;;  %v1835_v10 = vmul.f32 1.442695, %v1788_v20  ;;  %v1937_v57 = vsel %vm1442_vm5, %v1905_v12, 0.0 }
 0x30e   : > { %4048 = vpow2.f32 %v1829_v6  ;;  %v1831_v14 = vmul.f32 1.442695, %v1786_v46  ;;  %2078 = vxpose.xlu0.c.b16.cont [2/4] (short) %v1982_v9, 128  ;;  %v3730_v7 = vpop.f32.mrb[48].mxu0  ;;  %v1940_v61 = vsel %vm1442_vm5, %v1908_v26, 0.0  ;;  %v2038_v17 = vsel %vm734_vm4, %v2006_v59, 1.0  ;;  %v1392_v3 = vpop.xlane.xlu1 %1391 }
 0x30f   : > { %v4039_v56 = vpop.eup %4038  ;;  %4050 = vpow2.f32 %v1835_v10  ;;  %v1750_v24 = vsub.f32 %v3730_v7, %v5021_v39  ;;  %v1057_v58 = vpop.f32.mrb[49].mxu0  ;;  %v1938_v44 = vsel %vm1442_vm5, %v1906_v4, 0.0  ;;  %v1984_v63 = vpack.c.bf16 %v1940_v61, %v1939_v47 }
 0x310   : > { %v4041_v45 = vpop.eup %4040  ;;  %v1879_v12 = vadd.f32 0.0001, %v4039_v56  ;;  %4052 = vpow2.f32 %v1831_v14  ;;  %v1748_v9 = vsub.f32 %v1057_v58, %v5013_v32  ;;  %v3731_v48 = vpop.f32.mrb[50].mxu0  ;;  %v1983_v19 = vpack.c.bf16 %v1938_v44, %v1937_v57 }
 0x311   : > { %v4043_v20 = vpop.eup %4042  ;;  %v1791_v59 = vsub.f32 %v1750_v24, %v4980_v2  ;;  %v1751_v26 = vsub.f32 %v3731_v48, %v5029_v16  ;;  %v1060_v6 = vpop.f32.mrb[51].mxu0  ;;  %v1877_v39 = vadd.f32 0.0001, %v4041_v45  ;;  %v5078_v46 = vpack.c.bf16 %v2038_v17, %v2037_v50 }
 0x312   : > { %v4045_v10 = vpop.eup %4044  ;;  %v1911_v4 = vmul.f32 0.09534626, %v1879_v12  ;;  %v1880_v47 = vadd.f32 0.0001, %v4043_v20  ;;  %v1789_v7 = vsub.f32 %v1748_v9, %v4980_v2  ;;  %v1749_v14 = vsub.f32 %v1060_v6, %v5018_v36  ;;  %2079 = vxpose.xlu0.c.b16.cont [3/4] (short) %v1983_v19, 128  ;;  %v1395_v45 = vpop.xlane.xlu1 %1394 }
 0x313   : > { %v1841_v32 = vmul.f32 1.442695, %v1791_v59  ;;  %v1792_v57 = vsub.f32 %v1751_v26, %v4980_v2  ;;  %v1878_v61 = vadd.f32 0.0001, %v4045_v10  ;;  %v1909_v56 = vmul.f32 0.09534626, %v1877_v39  ;;  %3768 = vmatprep.subr.bf16.mxu1 %v5078_v46 }
 0x314   : > { %v1912_v16 = vmul.f32 0.09534626, %v1880_v47  ;;  %v1837_v24 = vmul.f32 1.442695, %v1789_v7  ;;  %v1790_v50 = vsub.f32 %v1749_v14, %v4980_v2  ;;  %v5085_v17 = vmul.f32 0.088388346, %v1389_v42 }
 0x315   : > { %4054 = vpow2.f32 %v1841_v32  ;;  %v1843_v58 = vmul.f32 1.442695, %v1792_v57  ;;  %v1910_v44 = vmul.f32 0.09534626, %v1878_v61  ;;  %v1943_v36 = vsel %vm1442_vm5, %v1911_v4, 0.0 }
 0x316   : > { %4056 = vpow2.f32 %v1837_v24  ;;  %v1839_v12 = vmul.f32 1.442695, %v1790_v50  ;;  %2080 = vxpose.xlu0.c.b16.end [4/4] (short) %v1984_v63, 128  ;;  %v3734_v9 = vpop.f32.mrb[52].mxu0  ;;  %v1941_v48 = vsel %vm1442_vm5, %v1909_v56, 0.0  ;;  %v1944_v19 = vsel %vm1442_vm5, %v1912_v16, 0.0 }
 0x317   : > { %v4047_v20 = vpop.eup %4046  ;;  %4058 = vpow2.f32 %v1843_v58  ;;  %v1754_v42 = vsub.f32 %v3734_v9, %v5031_v55  ;;  %v1073_v59 = vpop.f32.mrb[53].mxu0  ;;  %v1942_v26 = vsel %vm1442_vm5, %v1910_v44, 0.0  ;;  %v1986_v6 = vpack.c.bf16 %v1944_v19, %v1943_v36 }
 0x318   : > { %v4049_v39 = vpop.eup %4048  ;;  %v1883_v10 = vadd.f32 0.0001, %v4047_v20  ;;  %4060 = vpow2.f32 %v1839_v12  ;;  %v1752_v63 = vsub.f32 %v1073_v59, %v5024_v43  ;;  %v3735_v4 = vpop.f32.mrb[54].mxu0  ;;  %v1985_v47 = vpack.c.bf16 %v1942_v26, %v1941_v48 }
 0x319   : > { %v4051_v7 = vpop.eup %4050  ;;  %v1881_v14 = vadd.f32 0.0001, %v4049_v39  ;;  %v1795_v32 = vsub.f32 %v1754_v42, %v4980_v2  ;;  %v1755_v57 = vsub.f32 %v3735_v4, %v5035_v1  ;;  %v1076_v61 = vpop.f32.mrb[55].mxu0  ;;  %v1434_v55 = vmul.f32 0.088388346, %v1392_v3 }
 0x31a   : > { %v4053_v56 = vpop.eup %4052  ;;  %v1915_v16 = vmul.f32 0.09534626, %v1883_v10  ;;  %v1884_v24 = vadd.f32 0.0001, %v4051_v7  ;;  %v1793_v50 = vsub.f32 %v1752_v63, %v4980_v2  ;;  %v1753_v58 = vsub.f32 %v1076_v61, %v5026_v13  ;;  %2215 = vxpose.xlu1.c.b16.start [1/4] (short) %v1985_v47, 128  ;;  %v1401_v9 = vpop.xlane.xlu1 %1400 }
 0x31b   : > { %v1913_v44 = vmul.f32 0.09534626, %v1881_v14  ;;  %v1882_v43 = vadd.f32 0.0001, %v4053_v56  ;;  %v1849_v36 = vmul.f32 1.442695, %v1795_v32  ;;  %v1796_v12 = vsub.f32 %v1755_v57, %v4980_v2 }
 0x31c   : > { %v1916_v48 = vmul.f32 0.09534626, %v1884_v24  ;;  %v1845_v19 = vmul.f32 1.442695, %v1793_v50  ;;  %v1794_v1 = vsub.f32 %v1753_v58, %v4980_v2  ;;  %v1435_v20 = vmul.f32 0.088388346, %v1395_v45 }
 0x31d   : > { %v1914_v3 = vmul.f32 0.09534626, %v1882_v43  ;;  %4062 = vpow2.f32 %v1849_v36  ;;  %v1851_v42 = vmul.f32 1.442695, %v1796_v12  ;;  %v1947_v59 = vsel %vm1442_vm5, %v1915_v16, 0.0 }
 0x31e   : > { %4064 = vpow2.f32 %v1845_v19  ;;  %v1847_v13 = vmul.f32 1.442695, %v1794_v1  ;;  %2216 = vxpose.xlu1.c.b16.cont [2/4] (short) %v1986_v6, 128  ;;  %v3738_v26 = vpop.f32.mrb[56].mxu0  ;;  %v1945_v39 = vsel %vm1442_vm5, %v1913_v44, 0.0  ;;  %v1948_v10 = vsel %vm1442_vm5, %v1916_v48, 0.0 }
 0x31f   : > { %v4055_v63 = vpop.eup %4054  ;;  %4066 = vpow2.f32 %v1851_v42  ;;  %v1758_v4 = vsub.f32 %v3738_v26, %v1434_v55  ;;  %v1089_v45 = vpop.f32.mrb[57].mxu0  ;;  %v1946_v47 = vsel %vm1442_vm5, %v1914_v3, 0.0  ;;  %v1988_v7 = vpack.c.bf16 %v1948_v10, %v1947_v59 }
 0x320   : > { %v4057_v14 = vpop.eup %4056  ;;  %v1887_v32 = vadd.f32 0.0001, %v4055_v63  ;;  %4068 = vpow2.f32 %v1847_v13  ;;  %v1756_v6 = vsub.f32 %v1089_v45, %v5044_v53  ;;  %v3739_v57 = vpop.f32.mrb[58].mxu0  ;;  %v1987_v61 = vpack.c.bf16 %v1946_v47, %v1945_v39 }
 0x321   : > { %v4059_v56 = vpop.eup %4058  ;;  %v1885_v16 = vadd.f32 0.0001, %v4057_v14  ;;  %v1799_v24 = vsub.f32 %v1758_v4, %v4980_v2  ;;  %v1759_v50 = vsub.f32 %v3739_v57, %v1435_v20  ;;  %v1092_v58 = vpop.f32.mrb[59].mxu0  ;;  %v1437_v44 = vmul.f32 0.088388346, %v1401_v9 }
 0x322   : > { %v1407_v55 = vpop.xlane.xlu1 %1406  ;;  %v4061_v43 = vpop.eup %4060  ;;  %v1919_v36 = vmul.f32 0.09534626, %v1887_v32  ;;  %v1888_v12 = vadd.f32 0.0001, %v4059_v56  ;;  %v1797_v48 = vsub.f32 %v1756_v6, %v4980_v2  ;;  %v1757_v19 = vsub.f32 %v1092_v58, %v5085_v17  ;;  %2217 = vxpose.xlu1.c.b16.cont [3/4] (short) %v1987_v61, 128 }
 0x323   : > { %v1917_v1 = vmul.f32 0.09534626, %v1885_v16  ;;  %v1886_v53 = vadd.f32 0.0001, %v4061_v43  ;;  %v1857_v3 = vmul.f32 1.442695, %v1799_v24  ;;  %v1800_v42 = vsub.f32 %v1759_v50, %v4980_v2 }
 0x324   : > { %v1920_v59 = vmul.f32 0.09534626, %v1888_v12  ;;  %v1853_v13 = vmul.f32 1.442695, %v1797_v48  ;;  %v1798_v20 = vsub.f32 %v1757_v19, %v4980_v2  ;;  %v1439_v26 = vmul.f32 0.088388346, %v1407_v55 }
 0x325   : > { %v1918_v9 = vmul.f32 0.09534626, %v1886_v53  ;;  %4070 = vpow2.f32 %v1857_v3  ;;  %v1859_v39 = vmul.f32 1.442695, %v1800_v42  ;;  %v1951_v10 = vsel %vm1442_vm5, %v1919_v36, 0.0 }
 0x326   : > { %4072 = vpow2.f32 %v1853_v13  ;;  %v1855_v63 = vmul.f32 1.442695, %v1798_v20  ;;  %2218 = vxpose.xlu1.c.b16.end [4/4] (short) %v1988_v7, 128  ;;  %v3742_v17 = vpop.f32.mrb[60].mxu0  ;;  %v1949_v4 = vsel %vm1442_vm5, %v1917_v1, 0.0  ;;  %v1952_v45 = vsel %vm1442_vm5, %v1920_v59, 0.0 }
 0x327   : > { %v4063_v47 = vpop.eup %4062  ;;  %4074 = vpow2.f32 %v1859_v39  ;;  %v1762_v14 = vsub.f32 %v3742_v17, %v5038_v0  ;;  %v1105_v32 = vpop.f32.mrb[61].mxu0  ;;  %v1950_v6 = vsel %vm1442_vm5, %v1918_v9, 0.0  ;;  %v1990_v57 = vpack.c.bf16 %v1952_v45, %v1951_v10 }
 0x328   : > { %v4065_v61 = vpop.eup %4064  ;;  %v1891_v56 = vadd.f32 0.0001, %v4063_v47  ;;  %4076 = vpow2.f32 %v1855_v63  ;;  %v1760_v7 = vsub.f32 %v1105_v32, %v5033_v21  ;;  %v3743_v16 = vpop.f32.mrb[62].mxu0  ;;  %v1989_v24 = vpack.c.bf16 %v1950_v6, %v1949_v4 }
 0x329   : > { %v4067_v50 = vpop.eup %4066  ;;  %v1889_v58 = vadd.f32 0.0001, %v4065_v61  ;;  %v1803_v55 = vsub.f32 %v1762_v14, %v4980_v2  ;;  %v1763_v43 = vsub.f32 %v3743_v16, %v1439_v26  ;;  %v1108_v36 = vpop.f32.mrb[63].mxu0 }
 0x32a   : > { %v4069_v12 = vpop.eup %4068  ;;  %v1923_v0 = vmul.f32 0.09534626, %v1891_v56  ;;  %v1892_v48 = vadd.f32 0.0001, %v4067_v50  ;;  %v1801_v19 = vsub.f32 %v1760_v7, %v4980_v2  ;;  %v1761_v1 = vsub.f32 %v1108_v36, %v1437_v44  ;;  %2352 = vxpose.xlu0.c.b16.start [1/4] (short) %v1989_v24, 128 }
 0x32b   : > { %v1921_v53 = vmul.f32 0.09534626, %v1889_v58  ;;  %v1890_v3 = vadd.f32 0.0001, %v4069_v12  ;;  %v1865_v42 = vmul.f32 1.442695, %v1803_v55  ;;  %v1804_v21 = vsub.f32 %v1763_v43, %v4980_v2 }
 0x32c   : > { %v1924_v59 = vmul.f32 0.09534626, %v1892_v48  ;;  %v1861_v13 = vmul.f32 1.442695, %v1801_v19  ;;  %v1802_v20 = vsub.f32 %v1761_v1, %v4980_v2  ;;  %v1955_v10 = vsel %vm1442_vm5, %v1923_v0, 0.0 }
 0x32d   : > { %v1922_v9 = vmul.f32 0.09534626, %v1890_v3  ;;  %4078 = vpow2.f32 %v1865_v42  ;;  %v1867_v26 = vmul.f32 1.442695, %v1804_v21  ;;  %v1953_v17 = vsel %vm1442_vm5, %v1921_v53, 0.0 }
 0x32e   : > { %4080 = vpow2.f32 %v1861_v13  ;;  %v1863_v39 = vmul.f32 1.442695, %v1802_v20  ;;  %2353 = vxpose.xlu0.c.b16.cont [2/4] (short) %v1990_v57, 128  ;;  %v1956_v44 = vsel %vm1442_vm5, %v1924_v59, 0.0 }
 0x32f   : > { %v4071_v63 = vpop.eup %4070  ;;  %4082 = vpow2.f32 %v1867_v26  ;;  %v1954_v2 = vsel %vm1442_vm5, %v1922_v9, 0.0  ;;  %v1992_v4 = vpack.c.bf16 %v1956_v44, %v1955_v10 }
 0x330   : > { %v4073_v45 = vpop.eup %4072  ;;  %v1895_v47 = vadd.f32 0.0001, %v4071_v63  ;;  %4084 = vpow2.f32 %v1863_v39  ;;  %v1991_v14 = vpack.c.bf16 %v1954_v2, %v1953_v17 }
 0x331   : > { %v4075_v32 = vpop.eup %4074  ;;  %v1893_v6 = vadd.f32 0.0001, %v4073_v45 }
 0x332   : > { %v4077_v57 = vpop.eup %4076  ;;  %v1927_v61 = vmul.f32 0.09534626, %v1895_v47  ;;  %v1896_v56 = vadd.f32 0.0001, %v4075_v32  ;;  %2354 = vxpose.xlu0.c.b16.cont [3/4] (short) %v1991_v14, 128  ;;  %v4215_v14 = vld [vmem:[%s4477_s13 + $0x10] sm:$0xff] }
 0x333   : > { %v1894_v7 = vadd.f32 0.0001, %v4077_v57  ;;  %v1925_v16 = vmul.f32 0.09534626, %v1893_v6  ;;  %v1122_v32 = vmul.f32 %v4215_v14, %v4215_v14  ;;  %v4216_v57 = vld [vmem:[%s4477_s13 + $0x40] sm:$0xff]  ;;  %v2010_v14 = vld [vmem:[%s4487_s26 + $0x68] sm:$0xff] }
 0x334   : > { %v1928_v24 = vmul.f32 0.09534626, %v1896_v56  ;;  %v1959_v58 = vsel %vm1442_vm5, %v1927_v61, 0.0  ;;  %v1128_v61 = vmul.f32 %v4216_v57, %v4216_v57  ;;  %v4224_v57 = vld [vmem:[%s4477_s13 + $0x60] sm:$0xff] }
 0x335   : > { %v1926_v50 = vmul.f32 0.09534626, %v1894_v7  ;;  %v1957_v36 = vsel %vm1442_vm5, %v1925_v16, 0.0  ;;  %v1158_v6 = vsel %vm734_vm4, %v1122_v32, 0.0  ;;  %v4217_v7 = vld [vmem:[%s4477_s13 + $0x50] sm:$0xff] }
 0x336   : > { %2355 = vxpose.xlu0.c.b16.end [4/4] (short) %v1992_v4, 128  ;;  %v1960_v55 = vsel %vm1442_vm5, %v1928_v24, 0.0  ;;  %v4214_v4 = vld [vmem:[%s4477_s13] sm:$0xff]  ;;  %v1176_v56 = vsel %vm734_vm4, %v1128_v61, 0.0  ;;  %v1130_v16 = vmul.f32 %v4217_v7, %v4217_v7  ;;  %v1132_v61 = vmul.f32 %v4224_v57, %v4224_v57 }
 0x337   : > { %v4079_v43 = vpop.eup %4078  ;;  %v1958_v12 = vsel %vm1442_vm5, %v1926_v50, 0.0  ;;  %v1994_v0 = vpack.c.bf16 %v1960_v55, %v1959_v58  ;;  %v1120_v45 = vmul.f32 %v4214_v4, %v4214_v4  ;;  %v4218_v50 = vld [vmem:[%s4477_s13 + $0x8] sm:$0xff]  ;;  %v1449_v57 = vsel %vm1442_vm5, %v4890_v54, -inf }
 0x338   : > { %v4081_v48 = vpop.eup %4080  ;;  %v1899_v19 = vadd.f32 0.0001, %v4079_v43  ;;  %v1993_v1 = vpack.c.bf16 %v1958_v12, %v1957_v36  ;;  %v1182_v24 = vsel %vm734_vm4, %v1130_v16, 0.0  ;;  %v1121_v58 = vmul.f32 %v4218_v50, %v4218_v50  ;;  %v4219_v43 = vld [vmem:[%s4477_s13 + $0x18] sm:$0xff]  ;;  %v2011_v50 = vld [vmem:[%s4487_s26 + $0x70] sm:$0xff] }
 0x339   : > { %v4083_v53 = vpop.eup %4082  ;;  %v1897_v3 = vadd.f32 0.0001, %v4081_v48  ;;  %v1152_v47 = vsel %vm734_vm4, %v1120_v45, 0.0  ;;  %v1123_v36 = vmul.f32 %v4219_v43, %v4219_v43  ;;  %v1443_v12 = vsel %vm1442_vm5, %v4880_v23, -inf  ;;  %v4220_v48 = vld [vmem:[%s4477_s13 + $0x48] sm:$0xff] }
 0x33a   : > { %v4085_v42 = vpop.eup %4084  ;;  %v1931_v21 = vmul.f32 0.09534626, %v1899_v19  ;;  %v1900_v59 = vadd.f32 0.0001, %v4083_v53  ;;  %2489 = vxpose.xlu1.c.b16.start [1/4] (short) %v1993_v1, 128  ;;  %v1155_v55 = vsel %vm734_vm4, %v1121_v58, 0.0  ;;  %v1129_v19 = vmul.f32 %v4220_v48, %v4220_v48  ;;  %v2012_v58 = vld [vmem:[%s4487_s26 + $0x78] sm:$0xff] }
 0x33b   : > { %v1929_v13 = vmul.f32 0.09534626, %v1897_v3  ;;  %v1898_v20 = vadd.f32 0.0001, %v4085_v42  ;;  %v1445_v1 = vsel %vm1442_vm5, %v4878_v22, -inf  ;;  %v4221_v3 = vld [vmem:[%s4477_s13 + $0x58] sm:$0xff] }
 0x33c   : > { %v1932_v9 = vmul.f32 0.09534626, %v1900_v59  ;;  %v1963_v39 = vsel %vm1442_vm5, %v1931_v21, 0.0  ;;  %v1179_v53 = vsel %vm734_vm4, %v1129_v19, 0.0  ;;  %v1131_v42 = vmul.f32 %v4221_v3, %v4221_v3 }
 0x33d   : > { %v1930_v26 = vmul.f32 0.09534626, %v1898_v20  ;;  %v1961_v44 = vsel %vm1442_vm5, %v1929_v13, 0.0  ;;  %v1451_v21 = vsel %vm1442_vm5, %v4902_v51, -inf  ;;  %v4222_v13 = vld [vmem:[%s4477_s13 + $0x20] sm:$0xff]  ;;  %v1444_v45 = vsel %vm1442_vm5, %v4886_v27, -inf }
 0x33e   : > { %2490 = vxpose.xlu1.c.b16.cont [2/4] (short) %v1994_v0, 128  ;;  %v1964_v10 = vsel %vm1442_vm5, %v1932_v9, 0.0  ;;  %v1161_v0 = vsel %vm734_vm4, %v1123_v36, 0.0  ;;  %v1185_v59 = vsel %vm734_vm4, %v1131_v42, 0.0  ;;  %v1124_v20 = vmul.f32 %v4222_v13, %v4222_v13  ;;  %v4225_v36 = vld [vmem:[%s4477_s13 + $0x70] sm:$0xff] }
 0x33f   : > { %v1962_v63 = vsel %vm1442_vm5, %v1930_v26, 0.0  ;;  %v1996_v17 = vpack.c.bf16 %v1964_v10, %v1963_v39  ;;  %v1453_v9 = vsel %vm1442_vm5, %v4900_v33, -inf  ;;  %v2007_v26 = vld [vmem:[%s4487_s26 + $0x50] sm:$0xff]  ;;  %v2008_v39 = vld [vmem:[%s4487_s26 + $0x58] sm:$0xff]  ;;  %v2042_v16 = vsel %vm734_vm4, %v2010_v14, 1.0  ;;  %v4228_v14 = vld [vmem:[%s4477_s13 + $0x68] sm:$0xff] }
 0x340   : > { %v1995_v2 = vpack.c.bf16 %v1962_v63, %v1961_v44  ;;  %v1164_v44 = vsel %vm734_vm4, %v1124_v20, 0.0  ;;  %v4223_v63 = vld [vmem:[%s4477_s13 + $0x30] sm:$0xff]  ;;  %v2040_v4 = vsel %vm734_vm4, %v2008_v39, 1.0  ;;  %v1188_v43 = vsel %vm734_vm4, %v1132_v61, 0.0 }
 0x341   : > { %v2043_v48 = vsel %vm734_vm4, %v2011_v50, 1.0  ;;  %v1452_v19 = vsel %vm1442_vm5, %v4906_v62, -inf }
 0x342   : > { %2491 = vxpose.xlu1.c.b16.cont [3/4] (short) %v1995_v2, 128  ;;  %v2039_v2 = vsel %vm734_vm4, %v2007_v26, 1.0  ;;  %v1454_v26 = vsel %vm1442_vm5, %v4904_v52, -inf }
 0x346   : > { %2492 = vxpose.xlu1.c.b16.end [4/4] (short) %v1996_v17, 128  ;;  %v1126_v17 = vmul.f32 %v4223_v63, %v4223_v63 }
 0x353   : > { %1153 = vadd.xlane.f32.xlu0 %v1152_v47  ;;  %v2009_v47 = vld [vmem:[%s4487_s26 + $0x60] sm:$0xff] }
 0x354   : > { %v2041_v7 = vsel %vm734_vm4, %v2009_v47, 1.0 }
 0x357   : > { %1159 = vadd.xlane.f32.xlu0 %v1158_v6  ;;  %v1170_v6 = vsel %vm734_vm4, %v1126_v17, 0.0 }
 0x35b   : > { %1177 = vadd.xlane.f32.xlu0 %v1176_v56  ;;  %v2066_v56 = vpack.c.bf16 %v2040_v4, %v2039_v2  ;;  %v1447_v4 = vsel %vm1442_vm5, %v4892_v28, -inf }
 0x35f   : > { %1183 = vadd.xlane.f32.xlu0 %v1182_v24  ;;  %v1446_v24 = vsel %vm1442_vm5, %v4884_v25, -inf }
 0x363   : > { %1475 = vmax.xlane.f32.xlu0 %v1443_v12  ;;  %1156 = vadd.xlane.f32.xlu1 %v1155_v55  ;;  %v1134_v12 = vmul.f32 %v4225_v36, %v4225_v36 }
 0x365   : > { %v1194_v42 = vsel %vm734_vm4, %v1134_v12, 0.0  ;;  %v1457_v12 = vsel %vm1442_vm5, %v4910_v34, -inf }
 0x367   : > { %1479 = vmax.xlane.f32.xlu0 %v1445_v1  ;;  %1162 = vadd.xlane.f32.xlu1 %v1161_v0  ;;  %v2067_v0 = vpack.c.bf16 %v2042_v16, %v2041_v7  ;;  %v2013_v1 = vld [vmem:[%s4487_s26 + $0x80] sm:$0xff]  ;;  %v4229_v7 = vld [vmem:[%s4477_s13 + $0x78] sm:$0xff] }
 0x368   : > { %v2045_v20 = vsel %vm734_vm4, %v2013_v1, 1.0  ;;  %v1135_v16 = vmul.f32 %v4229_v7, %v4229_v7  ;;  %v2022_v7 = vld [vmem:[%s4487_s26 + $0xc8] sm:$0xff] }
 0x36b   : > { %1491 = vmax.xlane.f32.xlu0 %v1451_v21  ;;  %1180 = vadd.xlane.f32.xlu1 %v1179_v53  ;;  %v2014_v53 = vld [vmem:[%s4487_s26 + $0x88] sm:$0xff] }
 0x36c   : > { %v4226_v21 = vld [vmem:[%s4477_s13 + $0x28] sm:$0xff] }
 0x36f   : > { %1495 = vmax.xlane.f32.xlu0 %v1453_v9  ;;  %1186 = vadd.xlane.f32.xlu1 %v1185_v59  ;;  %v1125_v59 = vmul.f32 %v4226_v21, %v4226_v21  ;;  %v2046_v9 = vsel %vm734_vm4, %v2014_v53, 1.0  ;;  %v1448_v21 = vsel %vm1442_vm5, %v4896_v30, -inf }
 0x370   : > { %v2085_v10 = vpop.trf.xlu0  ;;  %v2069_v2 = vpack.c.bf16 %v2046_v9, %v2045_v20  ;;  %v4232_v9 = vld [vmem:[%s4477_s13 + $0xc0] sm:$0xff] }
 0x371   : > { %3752 = vmatprep.mubr.msk.bf16.mxu1 %vm2093_vm6, %v2085_v10  ;;  %v1167_v10 = vsel %vm734_vm4, %v1125_v59, 0.0  ;;  %v2017_v59 = vld [vmem:[%s4487_s26 + $0xa0] sm:$0xff] }
 0x373   : > { %1165 = vadd.xlane.f32.xlu0 %v1164_v44  ;;  %1477 = vmax.xlane.f32.xlu1 %v1444_v45  ;;  %v4227_v44 = vld [vmem:[%s4477_s13 + $0x38] sm:$0xff] }
 0x374   : > { %v2086_v32 = vpop.trf.xlu0  ;;  %v1127_v63 = vmul.f32 %v4227_v44, %v4227_v44 }
 0x375   : > { %3753 = vmatmul.mubr.msk.bf16.vlgmr.msra.gmra.mrb[0].mxu1 %vm2093_vm6, %v2086_v32  ;;  %v1133_v32 = vmul.f32 %v4228_v14, %v4228_v14  ;;  %v4233_v14 = vld [vmem:[%s4477_s13 + $0xd0] sm:$0xff] }
 0x376   : > { %3769 = vmatpush3.bf16.msra.mxu1 %v5078_v46  ;;  %v2044_v46 = vsel %vm734_vm4, %v2012_v58, 1.0  ;;  %v1173_v47 = vsel %vm734_vm4, %v1127_v63, 0.0  ;;  %v1450_v63 = vsel %vm1442_vm5, %v4894_v29, -inf }
 0x377   : > { %1171 = vadd.xlane.f32.xlu0 %v1170_v6  ;;  %1481 = vmax.xlane.f32.xlu1 %v1446_v24  ;;  %v2068_v13 = vpack.c.bf16 %v2044_v46, %v2043_v48  ;;  %v1455_v24 = vsel %vm1442_vm5, %v4912_v35, -inf  ;;  %v2016_v48 = vld [vmem:[%s4487_s26 + $0x98] sm:$0xff] }
 0x378   : > { %v2087_v55 = vpop.trf.xlu0  ;;  %3770 = vmatprep.subr.bf16.mxu1 %v2066_v56 }
 0x379   : > { %3756 = vmatprep.mubr.msk.bf16.mxu1 %vm2093_vm6, %v2087_v55  ;;  %v1197_v55 = vsel %vm734_vm4, %v1135_v16, 0.0 }
 0x37a   : > { %3771 = vmatpush3.bf16.msra.mxu1 %v2066_v56  ;;  %v1191_v56 = vsel %vm734_vm4, %v1133_v32, 0.0  ;;  %v1146_v32 = vmul.f32 %v4233_v14, %v4233_v14  ;;  %v2023_v14 = vld [vmem:[%s4487_s26 + $0xd0] sm:$0xff] }
 0x37b   : > { %1189 = vadd.xlane.f32.xlu0 %v1188_v43  ;;  %1493 = vmax.xlane.f32.xlu1 %v1452_v19  ;;  %v4230_v43 = vld [vmem:[%s4477_s13 + $0x80] sm:$0xff]  ;;  %v4231_v19 = vld [vmem:[%s4477_s13 + $0x90] sm:$0xff] }
 0x37c   : > { %v2088_v3 = vpop.trf.xlu0  ;;  %3772 = vmatprep.subr.bf16.mxu1 %v2067_v0  ;;  %v1136_v36 = vmul.f32 %v4230_v43, %v4230_v43  ;;  %v1138_v1 = vmul.f32 %v4231_v19, %v4231_v19  ;;  %v1230_v16 = vsel %vm734_vm4, %v1146_v32, 0.0  ;;  %v2024_v32 = vld [vmem:[%s4487_s26 + $0xd8] sm:$0xff] }
 0x37d   : > { %3757 = vmatmul.mubr.msk.bf16.gmra.mrb[4].mxu1 %vm2093_vm6, %v2088_v3 }
 0x37e   : > { %3773 = vmatpush3.bf16.msra.mxu1 %v2067_v0  ;;  %v2015_v0 = vld [vmem:[%s4487_s26 + $0x90] sm:$0xff]  ;;  %v1200_v46 = vsel %vm734_vm4, %v1136_v36, 0.0  ;;  %v1206_v20 = vsel %vm734_vm4, %v1138_v1, 0.0  ;;  %v2054_v36 = vsel %vm734_vm4, %v2022_v7, 1.0  ;;  %v2056_v7 = vsel %vm734_vm4, %v2024_v32, 1.0 }
 0x37f   : > { %1195 = vadd.xlane.f32.xlu0 %v1194_v42  ;;  %1497 = vmax.xlane.f32.xlu1 %v1454_v26  ;;  %v2047_v3 = vsel %vm734_vm4, %v2015_v0, 1.0  ;;  %v2048_v42 = vsel %vm734_vm4, %v2016_v48, 1.0  ;;  %v1144_v26 = vmul.f32 %v4232_v9, %v4232_v9 }
 0x380   : > { %v2089_v39 = vpop.trf.xlu0  ;;  %v2223_v17 = vpop.trf.xlu1  ;;  %3774 = vmatprep.subr.bf16.mxu1 %v2068_v13 }
 0x381   : > { %3760 = vmatprep.mubr.msk.bf16.mxu1 %vm2093_vm6, %v2089_v39  ;;  %v2070_v39 = vpack.c.bf16 %v2048_v42, %v2047_v3 }
 0x382   : > { %3775 = vmatpush3.bf16.msra.mxu1 %v2068_v13  ;;  %v2018_v13 = vld [vmem:[%s4487_s26 + $0xa8] sm:$0xff] }
 0x383   : > { %1483 = vmax.xlane.f32.xlu0 %v1447_v4  ;;  %1168 = vadd.xlane.f32.xlu1 %v1167_v10  ;;  %v2049_v10 = vsel %vm734_vm4, %v2017_v59, 1.0  ;;  %v2050_v44 = vsel %vm734_vm4, %v2018_v13, 1.0  ;;  %v2020_v4 = vld [vmem:[%s4487_s26 + $0xb8] sm:$0xff] }
 0x384   : > { %v2090_v45 = vpop.trf.xlu0  ;;  %3792 = vmatprep.subr.bf16.mxu1 %v2069_v2  ;;  %v2224_v6 = vpop.trf.xlu1 }
 0x385   : > { %3761 = vmatmul.mubr.msk.bf16.gmra.mrb[8].mxu1 %vm2093_vm6, %v2090_v45 }
 0x387   : > { %1487 = vmax.xlane.f32.xlu0 %v1449_v57  ;;  %1174 = vadd.xlane.f32.xlu1 %v1173_v47  ;;  %v1224_v47 = vsel %vm734_vm4, %v1144_v26, 0.0  ;;  %v4237_v26 = vld [vmem:[%s4477_s13 + $0xd8] sm:$0xff] }
 0x388   : > { %v2091_v61 = vpop.trf.xlu0  ;;  %v2225_v50 = vpop.trf.xlu1 }
 0x389   : > { %3764 = vmatprep.mubr.msk.bf16.mxu1 %vm2093_vm6, %v2091_v61  ;;  %v2052_v61 = vsel %vm734_vm4, %v2020_v4, 1.0  ;;  %v4238_v4 = vld [vmem:[%s4477_s13 + $0xa0] sm:$0xff] }
 0x38b   : > { %1499 = vmax.xlane.f32.xlu0 %v1455_v24  ;;  %1192 = vadd.xlane.f32.xlu1 %v1191_v56  ;;  %v2021_v56 = vld [vmem:[%s4487_s26 + $0xc0] sm:$0xff]  ;;  %v4234_v24 = vld [vmem:[%s4477_s13 + $0x88] sm:$0xff] }
 0x38c   : > { %v2092_v58 = vpop.trf.xlu0  ;;  %v2226_v53 = vpop.trf.xlu1  ;;  %v2053_v43 = vsel %vm734_vm4, %v2021_v56, 1.0  ;;  %v2055_v56 = vsel %vm734_vm4, %v2023_v14, 1.0  ;;  %v1463_v14 = vsel %vm1442_vm5, %v4934_v18, -inf }
 0x38d   : > { %3765 = vmatmul.mubr.msk.bf16.gmra.mrb[12].mxu1 %vm2093_vm6, %v2092_v58  ;;  %v2073_v1 = vpack.c.bf16 %v2054_v36, %v2053_v43  ;;  %v2074_v36 = vpack.c.bf16 %v2056_v7, %v2055_v56  ;;  %v5837_v56 = vld [vmem:[#allocation7_spill] sm:$0xff] }
 0x38e   : > { %3776 = vmatprep.mubr.msk.bf16.mxu1 %vm2093_vm6, %v2223_v17  ;;  %v2019_v17 = vld [vmem:[%s4487_s26 + $0xb0] sm:$0xff]  ;;  %v1465_v7 = vsel %vm1442_vm5, %v5837_v56, -inf }
 0x38f   : > { %1503 = vmax.xlane.f32.xlu0 %v1457_v12  ;;  %1198 = vadd.xlane.f32.xlu1 %v1197_v55  ;;  %v2051_v57 = vsel %vm734_vm4, %v2019_v17, 1.0  ;;  %v1458_v12 = vsel %vm1442_vm5, %v4916_v37, -inf }
 0x390   : > { %v2227_v45 = vpop.trf.xlu1  ;;  %v2072_v58 = vpack.c.bf16 %v2052_v61, %v2051_v57  ;;  %v2360_v0 = vpop.trf.xlu0  ;;  %v4239_v57 = vld [vmem:[%s4477_s13 + $0xb0] sm:$0xff] }
 0x391   : > { %v1142_v61 = vmul.f32 %v4239_v57, %v4239_v57  ;;  %v4244_v57 = vld [vmem:[%s4477_s13 + $0xe8] sm:$0xff] }
 0x393   : > { %1201 = vadd.xlane.f32.xlu0 %v1200_v46  ;;  %1485 = vmax.xlane.f32.xlu1 %v1448_v21  ;;  %v4235_v46 = vld [vmem:[%s4477_s13 + $0x98] sm:$0xff]  ;;  %v4236_v21 = vld [vmem:[%s4477_s13 + $0xc8] sm:$0xff] }
 0x394   : > { %v2228_v55 = vpop.trf.xlu1  ;;  %v1139_v19 = vmul.f32 %v4235_v46, %v4235_v46  ;;  %v1145_v59 = vmul.f32 %v4236_v21, %v4236_v21  ;;  %v2361_v13 = vpop.trf.xlu0  ;;  %v2027_v46 = vld [vmem:[%s4487_s26 + $0xf0] sm:$0xff] }
 0x395   : > { %3777 = vmatmul.mubr.msk.bf16.vlgmr.msra.gmra.mrb[16].mxu1 %vm2093_vm6, %v2224_v6  ;;  %v2071_v6 = vpack.c.bf16 %v2050_v44, %v2049_v10  ;;  %v1467_v10 = vsel %vm1442_vm5, %v4944_v5, -inf }
 0x396   : > { %3780 = vmatprep.mubr.msk.bf16.mxu1 %vm2093_vm6, %v2225_v50  ;;  %3793 = vmatpush3.bf16.msra.mxu1 %v2069_v2  ;;  %v1456_v2 = vsel %vm1442_vm5, %v4918_v38, -inf  ;;  %v1137_v50 = vmul.f32 %v4234_v24, %v4234_v24  ;;  %v1209_v42 = vsel %vm734_vm4, %v1139_v19, 0.0  ;;  %v1227_v9 = vsel %vm734_vm4, %v1145_v59, 0.0  ;;  %v2025_v24 = vld [vmem:[%s4487_s26 + $0xe0] sm:$0xff]  ;;  %v2028_v19 = vld [vmem:[%s4487_s26 + $0xf8] sm:$0xff] }
 0x397   : > { %1207 = vadd.xlane.f32.xlu0 %v1206_v20  ;;  %1489 = vmax.xlane.f32.xlu1 %v1450_v63  ;;  %v1461_v20 = vsel %vm1442_vm5, %v4922_v8, -inf }
 0x398   : > { %3794 = vmatprep.subr.bf16.mxu1 %v2070_v39  ;;  %v1203_v48 = vsel %vm734_vm4, %v1137_v50, 0.0  ;;  %v2229_v3 = vpop.trf.xlu1  ;;  %v2362_v63 = vpop.trf.xlu0  ;;  %v2026_v50 = vld [vmem:[%s4487_s26 + $0xe8] sm:$0xff]  ;;  %s4347_s26 = smov 96  }
 0x39a   : > { %3795 = vmatpush3.bf16.msra.mxu1 %v2070_v39  ;;  %v1147_v39 = vmul.f32 %v4237_v26, %v4237_v26  ;;  %v4242_v26 = vld [vmem:[%s4477_s13 + $0xa8] sm:$0xff] }
 0x39b   : > { %1225 = vadd.xlane.f32.xlu0 %v1224_v47  ;;  %1501 = vmax.xlane.f32.xlu1 %v1456_v2  ;;  %v1469_v47 = vsel %vm1442_vm5, %v4942_v49, -inf }
 0x39c   : > { %3796 = vmatprep.subr.bf16.mxu1 %v2071_v6  ;;  %v2230_v44 = vpop.trf.xlu1  ;;  %v1233_v17 = vsel %vm734_vm4, %v1147_v39, 0.0  ;;  %v2363_v2 = vpop.trf.xlu0  ;;  %v1141_v39 = vmul.f32 %v4242_v26, %v4242_v26 }
 0x39d   : > { %3781 = vmatmul.mubr.msk.bf16.gmra.mrb[20].mxu1 %vm2093_vm6, %v2226_v53  ;;  %v1459_v53 = vsel %vm1442_vm5, %v4924_v11, -inf }
 0x39e   : > { %3784 = vmatprep.mubr.msk.bf16.mxu1 %vm2093_vm6, %v2227_v45  ;;  %3797 = vmatpush3.bf16.msra.mxu1 %v2071_v6  ;;  %v1140_v45 = vmul.f32 %v4238_v4, %v4238_v4  ;;  %v1215_v4 = vsel %vm734_vm4, %v1141_v39, 0.0 }
 0x39f   : > { %1231 = vadd.xlane.f32.xlu0 %v1230_v16  ;;  %1505 = vmax.xlane.f32.xlu1 %v1458_v12  ;;  %v1460_v16 = vsel %vm1442_vm5, %v4928_v41, -inf  ;;  %v2057_v12 = vsel %vm734_vm4, %v2025_v24, 1.0  ;;  %v4245_v24 = vld [vmem:[%s4477_s13 + $0xf8] sm:$0xff] }
 0x3a0   : > { %3798 = vmatprep.subr.bf16.mxu1 %v2072_v58  ;;  %v1212_v6 = vsel %vm734_vm4, %v1140_v45, 0.0  ;;  %v4243_v45 = vld [vmem:[%s4477_s13 + $0xb8] sm:$0xff] }
 0x3a2   : > { %3799 = vmatpush3.bf16.msra.mxu1 %v2072_v58  ;;  %v1218_v58 = vsel %vm734_vm4, %v1142_v61, 0.0  ;;  %v1149_v61 = vmul.f32 %v4244_v57, %v4244_v57 }
 0x3a3   : > { %1507 = vmax.xlane.f32.xlu0 %v1459_v53  ;;  %1204 = vadd.xlane.f32.xlu1 %v1203_v48  ;;  %v1462_v48 = vsel %vm1442_vm5, %v4926_v40, -inf  ;;  %v2364_v53 = vpop.trf.xlu0 }
 0x3a4   : > { %3816 = vmatprep.subr.bf16.mxu1 %v2073_v1 }
 0x3a5   : > { %3785 = vmatmul.mubr.msk.bf16.gmra.mrb[24].mxu1 %vm2093_vm6, %v2228_v55  ;;  %v4240_v55 = vld [vmem:[%s4477_s13 + $0xe0] sm:$0xff] }
 0x3a6   : > { %3788 = vmatprep.mubr.msk.bf16.mxu1 %vm2093_vm6, %v2229_v3  ;;  %v1148_v43 = vmul.f32 %v4240_v55, %v4240_v55 }
 0x3a7   : > { %1511 = vmax.xlane.f32.xlu0 %v1461_v20  ;;  %1210 = vadd.xlane.f32.xlu1 %v1209_v42  ;;  %v4241_v42 = vld [vmem:[%s4477_s13 + $0xf0] sm:$0xff]  ;;  %v2060_v20 = vsel %vm734_vm4, %v2028_v19, 1.0 }
 0x3a8   : > { %v1236_v3 = vsel %vm734_vm4, %v1148_v43, 0.0  ;;  %v1150_v21 = vmul.f32 %v4241_v42, %v4241_v42  ;;  %v5840_v19 = vld [vmem:[#allocation9_spill] sm:$0xff] }
 0x3ab   : > { %1523 = vmax.xlane.f32.xlu0 %v1467_v10  ;;  %1228 = vadd.xlane.f32.xlu1 %v1227_v9  ;;  %v1242_v9 = vsel %vm734_vm4, %v1150_v21, 0.0 }
 0x3ad   : > { %3789 = vmatmul.mubr.msk.bf16.gmra.mrb[28].mxu1 %vm2093_vm6, %v2230_v44  ;;  %v2365_v44 = vpop.trf.xlu0 }
 0x3ae   : > { %3800 = vmatprep.mubr.msk.bf16.mxu1 %vm2093_vm6, %v2360_v0  ;;  %v2058_v0 = vsel %vm734_vm4, %v2026_v50, 1.0  ;;  %v1151_v50 = vmul.f32 %v4245_v24, %v4245_v24 }
 0x3af   : > { %1527 = vmax.xlane.f32.xlu0 %v1469_v47  ;;  %1234 = vadd.xlane.f32.xlu1 %v1233_v17  ;;  %v2075_v59 = vpack.c.bf16 %v2058_v0, %v2057_v12  ;;  %v2497_v17 = vpop.trf.xlu1  ;;  %v1143_v47 = vmul.f32 %v4243_v45, %v4243_v45  ;;  %v5839_v0 = vld [vmem:[#allocation10_spill] sm:$0xff] }
 0x3b0   : > { %v1245_v12 = vsel %vm734_vm4, %v1151_v50, 0.0 }
 0x3b1   : > { %v2366_v32 = vpop.trf.xlu0 }
 0x3b3   : > { %1213 = vadd.xlane.f32.xlu0 %v1212_v6  ;;  %1509 = vmax.xlane.f32.xlu1 %v1460_v16  ;;  %v1221_v6 = vsel %vm734_vm4, %v1143_v47, 0.0  ;;  %v1239_v16 = vsel %vm734_vm4, %v1149_v61, 0.0 }
 0x3b5   : > { %3801 = vmatmul.mubr.msk.bf16.vlgmr.msra.gmra.mrb[32].mxu1 %vm2093_vm6, %v2361_v13  ;;  %v2059_v13 = vsel %vm734_vm4, %v2027_v46, 1.0  ;;  %v2367_v43 = vpop.trf.xlu0 }
 0x3b6   : > { %3804 = vmatprep.mubr.msk.bf16.mxu1 %vm2093_vm6, %v2362_v63  ;;  %3817 = vmatpush3.bf16.msra.mxu1 %v2073_v1  ;;  %v1468_v1 = vsel %vm1442_vm5, %v4950_v60, -inf  ;;  %v2076_v10 = vpack.c.bf16 %v2060_v20, %v2059_v13  ;;  %v1470_v63 = vsel %vm1442_vm5, %v4948_v31, -inf }
 0x3b7   : > { %1219 = vadd.xlane.f32.xlu0 %v1218_v58  ;;  %1513 = vmax.xlane.f32.xlu1 %v1462_v48  ;;  %v5838_v58 = vld [vmem:[#allocation11_spill] sm:$0xff]  ;;  %v1473_v48 = vsel %vm1442_vm5, %v5839_v0, -inf }
 0x3b8   : > { %3818 = vmatprep.subr.bf16.mxu1 %v2074_v36  ;;  %v1471_v55 = vsel %vm1442_vm5, %v5838_v58, -inf }
 0x3ba   : > { %3819 = vmatpush3.bf16.msra.mxu1 %v2074_v36 }
 0x3bb   : > { %1237 = vadd.xlane.f32.xlu0 %v1236_v3  ;;  %1525 = vmax.xlane.f32.xlu1 %v1468_v1  ;;  %v5841_v3 = vld [vmem:[#allocation8_spill] sm:$0xff] }
 0x3bc   : > { %3820 = vmatprep.subr.bf16.mxu1 %v2075_v59  ;;  %v1466_v42 = vsel %vm1442_vm5, %v5841_v3, -inf  ;;  %v5843_v1 = vld [vmem:[#allocation12_spill] sm:$0xff] }
 0x3bd   : > { %3805 = vmatmul.mubr.msk.bf16.gmra.mrb[36].mxu1 %vm2093_vm6, %v2363_v2  ;;  %v2498_v2 = vpop.trf.xlu1 }
 0x3be   : > { %3808 = vmatprep.mubr.msk.bf16.mxu1 %vm2093_vm6, %v2364_v53  ;;  %3821 = vmatpush3.bf16.msra.mxu1 %v2075_v59  ;;  %v1464_v53 = vsel %vm1442_vm5, %v5840_v19, -inf  ;;  %v5842_v59 = vld [vmem:[#allocation13_spill] sm:$0xff] }
 0x3bf   : > { %1243 = vadd.xlane.f32.xlu0 %v1242_v9  ;;  %1529 = vmax.xlane.f32.xlu1 %v1470_v63  ;;  %v1472_v13 = vsel %vm1442_vm5, %v5842_v59, -inf  ;;  %v1474_v9 = vsel %vm1442_vm5, %v5843_v1, -inf }
 0x3c0   : > { %3822 = vmatprep.subr.bf16.mxu1 %v2076_v10 }
 0x3c1   : > { %v2499_v36 = vpop.trf.xlu1 }
 0x3c2   : > { %3823 = vmatpush3.bf16.msra.mxu1 %v2076_v10 }
 0x3c3   : > { %1515 = vmax.xlane.f32.xlu0 %v1463_v14  ;;  %1216 = vadd.xlane.f32.xlu1 %v1215_v4 }
 0x3c5   : > { %3809 = vmatmul.mubr.msk.bf16.gmra.mrb[40].mxu1 %vm2093_vm6, %v2365_v44  ;;  %v2500_v46 = vpop.trf.xlu1 }
 0x3c6   : > { %3812 = vmatprep.mubr.msk.bf16.mxu1 %vm2093_vm6, %v2366_v32 }
 0x3c7   : > { %1519 = vmax.xlane.f32.xlu0 %v1465_v7  ;;  %1222 = vadd.xlane.f32.xlu1 %v1221_v6 }
 0x3c9   : > { %v2501_v21 = vpop.trf.xlu1 }
 0x3cb   : > { %1531 = vmax.xlane.f32.xlu0 %v1471_v55  ;;  %1240 = vadd.xlane.f32.xlu1 %v1239_v16 }
 0x3cd   : > { %3813 = vmatmul.mubr.msk.bf16.gmra.mrb[44].mxu1 %vm2093_vm6, %v2367_v43  ;;  %v2502_v20 = vpop.trf.xlu1 }
 0x3ce   : > { %3824 = vmatprep.mubr.msk.bf16.mxu1 %vm2093_vm6, %v2497_v17 }
 0x3cf   : > { %1535 = vmax.xlane.f32.xlu0 %v1473_v48  ;;  %1246 = vadd.xlane.f32.xlu1 %v1245_v12 }
 0x3d1   : > { %v2503_v39 = vpop.trf.xlu1 }
 0x3d3   : > { %1517 = vmax.xlane.f32.xlu1 %v1464_v53 }
 0x3d5   : > { %3825 = vmatmul.mubr.msk.bf16.vlgmr.msra.gmra.mrb[48].mxu1 %vm2093_vm6, %v2498_v2  ;;  %v2504_v63 = vpop.trf.xlu1 }
 0x3d6   : > { %3828 = vmatprep.mubr.msk.bf16.mxu1 %vm2093_vm6, %v2499_v36 }
 0x3d7   : > { %1521 = vmax.xlane.f32.xlu1 %v1466_v42 }
 0x3db   : > { %1533 = vmax.xlane.f32.xlu1 %v1472_v13 }
 0x3dd   : > { %3829 = vmatmul.mubr.msk.bf16.gmra.mrb[52].mxu1 %vm2093_vm6, %v2500_v46 }
 0x3de   : > { %3832 = vmatprep.mubr.msk.bf16.mxu1 %vm2093_vm6, %v2501_v21 }
 0x3df   : > { %1537 = vmax.xlane.f32.xlu1 %v1474_v9 }
 0x3e0   : > { %v1154_v26 = vpop.xlane.xlu0 %1153 }
 0x3e1   : > { %v1248_v47 = vmul.f32 0.088388346, %v1154_v26 }
 0x3e3   : > { %v1540_v6 = vsub.f32 %v4880_v23, %v1248_v47 }
 0x3e4   : > { %v1160_v10 = vpop.xlane.xlu0 %1159 }
 0x3e5   : > { %3833 = vmatmul.mubr.msk.bf16.gmra.mrb[56].mxu1 %vm2093_vm6, %v2502_v20  ;;  %v1250_v32 = vmul.f32 0.088388346, %v1160_v10 }
 0x3e6   : > { %3836 = vmatprep.mubr.msk.bf16.mxu1 %vm2093_vm6, %v2503_v39 }
 0x3e7   : > { %v1542_v16 = vsub.f32 %v4878_v22, %v1250_v32 }
 0x3e8   : > { %v1178_v44 = vpop.xlane.xlu0 %1177 }
 0x3e9   : > { %v1256_v7 = vmul.f32 0.088388346, %v1178_v44 }
 0x3eb   : > { %v1548_v48 = vsub.f32 %v4902_v51, %v1256_v7 }
 0x3ec   : > { %v1184_v17 = vpop.xlane.xlu0 %1183 }
 0x3ed   : > { %3837 = vmatmul.mubr.msk.bf16.gmra.mrb[60].mxu1 %vm2093_vm6, %v2504_v63  ;;  %v1258_v12 = vmul.f32 0.088388346, %v1184_v17 }
 0x3ef   : > { %v1550_v9 = vsub.f32 %v4900_v33, %v1258_v12 }
 0x3f0   : > { %v1476_v4 = vpop.xlane.xlu0 %1475  ;;  %v1157_v45 = vpop.xlane.xlu1 %1156 }
 0x3f1   : > { %v1572_v2 = vsub.f32 %v1540_v6, %v1476_v4  ;;  %v1249_v24 = vmul.f32 0.088388346, %v1157_v45 }
 0x3f3   : > { %v1604_v36 = vmul.f32 1.442695, %v1572_v2  ;;  %v1541_v53 = vsub.f32 %v4886_v27, %v1249_v24 }
 0x3f4   : > { %v1480_v15 = vpop.xlane.xlu0 %1479  ;;  %v1163_v14 = vpop.xlane.xlu1 %1162 }
 0x3f5   : > { %v1574_v50 = vsub.f32 %v1542_v16, %v1480_v15  ;;  %v1251_v46 = vmul.f32 0.088388346, %v1163_v14  ;;  %4086 = vpow2.f32 %v1604_v36 }
 0x3f7   : > { %v1608_v42 = vmul.f32 1.442695, %v1574_v50  ;;  %v1543_v39 = vsub.f32 %v4884_v25, %v1251_v46 }
 0x3f8   : > { %v1492_v57 = vpop.xlane.xlu0 %1491  ;;  %v1181_v61 = vpop.xlane.xlu1 %1180 }
 0x3f9   : > { %v1580_v21 = vsub.f32 %v1548_v48, %v1492_v57  ;;  %v1257_v22 = vmul.f32 0.088388346, %v1181_v61  ;;  %4088 = vpow2.f32 %v1608_v42 }
 0x3fb   : > { %v1620_v10 = vmul.f32 1.442695, %v1580_v21  ;;  %v1549_v45 = vsub.f32 %v4906_v62, %v1257_v22 }
 0x3fc   : > { %v1496_v55 = vpop.xlane.xlu0 %1495  ;;  %v1187_v43 = vpop.xlane.xlu1 %1186 }
 0x3fd   : > { %v1582_v44 = vsub.f32 %v1550_v9, %v1496_v55  ;;  %v1259_v27 = vmul.f32 0.088388346, %v1187_v43 }
 0x3ff   : > { %v1624_v47 = vmul.f32 1.442695, %v1582_v44  ;;  %v4087_v32 = vpop.eup %4086  ;;  %v1551_v25 = vsub.f32 %v4904_v52, %v1259_v27 }
 0x400   : > { %v1166_v23 = vpop.xlane.xlu0 %1165  ;;  %v1478_v13 = vpop.xlane.xlu1 %1477  ;;  %v1668_v16 = vadd.f32 0.0001, %v4087_v32 }
 0x401   : > { %v1573_v20 = vsub.f32 %v1541_v53, %v1478_v13  ;;  %v1252_v42 = vmul.f32 0.088388346, %v1166_v23 }
 0x402   : > { %v1700_v48 = vmul.f32 0.09534626, %v1668_v16 }
 0x403   : > { %v1606_v26 = vmul.f32 1.442695, %v1573_v20  ;;  %v4089_v7 = vpop.eup %4088 }
 0x404   : > { %v1172_v63 = vpop.xlane.xlu0 %1171  ;;  %v1482_v51 = vpop.xlane.xlu1 %1481  ;;  %v1670_v12 = vadd.f32 0.0001, %v4089_v7 }
 0x405   : > { %4090 = vpow2.f32 %v1606_v26  ;;  %v1575_v17 = vsub.f32 %v1543_v39, %v1482_v51  ;;  %v1254_v9 = vmul.f32 0.088388346, %v1172_v63  ;;  %v1544_v51 = vsub.f32 %v4892_v28, %v1252_v42 }
 0x406   : > { %4092 = vpow2.f32 %v1620_v10  ;;  %v5400_v26 = vmul.f32 0.09534626, %v1670_v12 }
 0x407   : > { %v1610_v4 = vmul.f32 1.442695, %v1575_v17  ;;  %v1546_v63 = vsub.f32 %v4890_v54, %v1254_v9 }
 0x408   : > { %v1190_v15 = vpop.xlane.xlu0 %1189  ;;  %v1494_v14 = vpop.xlane.xlu1 %1493 }
 0x409   : > { %4094 = vpow2.f32 %v1610_v4  ;;  %v1581_v33 = vsub.f32 %v1549_v45, %v1494_v14  ;;  %v1260_v45 = vmul.f32 0.088388346, %v1190_v15 }
 0x40a   : > { %4096 = vpow2.f32 %v1624_v47 }
 0x40b   : > { %v1622_v6 = vmul.f32 1.442695, %v1581_v33  ;;  %v1552_v15 = vsub.f32 %v4912_v35, %v1260_v45 }
 0x40c   : > { %v1196_v57 = vpop.xlane.xlu0 %1195  ;;  %v1498_v61 = vpop.xlane.xlu1 %1497 }
 0x40d   : > { %4098 = vpow2.f32 %v1622_v6  ;;  %v1583_v2 = vsub.f32 %v1551_v25, %v1498_v61 }
 0x40f   : > { %v4091_v24 = vpop.eup %4090  ;;  %v1626_v50 = vmul.f32 1.442695, %v1583_v2 }
 0x410   : > { %v1669_v62 = vadd.f32 0.0001, %v4091_v24  ;;  %v1484_v55 = vpop.xlane.xlu0 %1483  ;;  %v1169_v43 = vpop.xlane.xlu1 %1168 }
 0x411   : > { %4100 = vpow2.f32 %v1626_v50  ;;  %v4093_v36 = vpop.eup %4092  ;;  %v1576_v47 = vsub.f32 %v1544_v51, %v1484_v55  ;;  %v1253_v25 = vmul.f32 0.088388346, %v1169_v43 }
 0x412   : > { %v1701_v46 = vmul.f32 0.09534626, %v1669_v62  ;;  %v1676_v39 = vadd.f32 0.0001, %v4093_v36  ;;  %v1262_v62 = vmul.f32 0.088388346, %v1196_v57 }
 0x413   : > { %v4095_v53 = vpop.eup %4094  ;;  %v1612_v24 = vmul.f32 1.442695, %v1576_v47  ;;  %v1545_v54 = vsub.f32 %v4896_v30, %v1253_v25 }
 0x414   : > { %v1671_v52 = vadd.f32 0.0001, %v4095_v53  ;;  %v1488_v21 = vpop.xlane.xlu0 %1487  ;;  %v1175_v13 = vpop.xlane.xlu1 %1174  ;;  %v1965_v20 = vpack.c.bf16 %v1701_v46, %v1700_v48  ;;  %v1708_v33 = vmul.f32 0.09534626, %v1676_v39 }
 0x415   : > { %v4097_v22 = vpop.eup %4096  ;;  %v1578_v2 = vsub.f32 %v1546_v63, %v1488_v21  ;;  %v1255_v55 = vmul.f32 0.088388346, %v1175_v13  ;;  %4102 = vpow2.f32 %v1612_v24 }
 0x416   : > { %v5402_v10 = vmul.f32 0.09534626, %v1671_v52  ;;  %3856 = vmatprep.mubr.bf16.mxu0 %v1965_v20  ;;  %v1678_v14 = vadd.f32 0.0001, %v4097_v22  ;;  %v1554_v52 = vsub.f32 %v4910_v34, %v1262_v62 }
 0x417   : > { %v4099_v44 = vpop.eup %4098  ;;  %v1616_v12 = vmul.f32 1.442695, %v1578_v2  ;;  %v1547_v20 = vsub.f32 %v4894_v29, %v1255_v55 }
 0x418   : > { %v1966_v17 = vpack.c.bf16 %v5402_v10, %v5400_v26  ;;  %v1677_v27 = vadd.f32 0.0001, %v4099_v44  ;;  %v1500_v23 = vpop.xlane.xlu0 %1499  ;;  %v1193_v4 = vpop.xlane.xlu1 %1192  ;;  %v5408_v50 = vmul.f32 0.09534626, %v1678_v14 }
 0x419   : > { %v1584_v48 = vsub.f32 %v1552_v15, %v1500_v23  ;;  %v1261_v57 = vmul.f32 0.088388346, %v1193_v4  ;;  %4104 = vpow2.f32 %v1616_v12 }
 0x41a   : > { %v1709_v32 = vmul.f32 0.09534626, %v1677_v27 }
 0x41b   : > { %v4101_v6 = vpop.eup %4100  ;;  %v1628_v35 = vmul.f32 1.442695, %v1584_v48  ;;  %v1553_v51 = vsub.f32 %v4918_v38, %v1261_v57 }
 0x41c   : > { %v1679_v61 = vadd.f32 0.0001, %v4101_v6  ;;  %v1504_v7 = vpop.xlane.xlu0 %1503  ;;  %v1199_v16 = vpop.xlane.xlu1 %1198  ;;  %v1969_v28 = vpack.c.bf16 %v1709_v32, %v1708_v33 }
 0x41d   : > { %v1586_v13 = vsub.f32 %v1554_v52, %v1504_v7  ;;  %v1263_v39 = vmul.f32 0.088388346, %v1199_v16 }
 0x41e   : > { %v5410_v36 = vmul.f32 0.09534626, %v1679_v61  ;;  %3880 = vmatprep.mubr.bf16.mxu1 %v1969_v28 }
 0x41f   : > { %v1632_v27 = vmul.f32 1.442695, %v1586_v13  ;;  %v4103_v4 = vpop.eup %4102  ;;  %v1555_v29 = vsub.f32 %v4916_v37, %v1263_v39 }
 0x420   : > { %v1970_v43 = vpack.c.bf16 %v5410_v36, %v5408_v50  ;;  %v1202_v46 = vpop.xlane.xlu0 %1201  ;;  %v1486_v53 = vpop.xlane.xlu1 %1485  ;;  %v1672_v25 = vadd.f32 0.0001, %v4103_v4 }
 0x421   : > { %v1577_v42 = vsub.f32 %v1545_v54, %v1486_v53  ;;  %v1264_v24 = vmul.f32 0.088388346, %v1202_v46 }
 0x422   : > { %v5424_v62 = vmul.f32 0.09534626, %v1672_v25 }
 0x423   : > { %v1614_v21 = vmul.f32 1.442695, %v1577_v42  ;;  %v4105_v6 = vpop.eup %4104  ;;  %v1556_v46 = vsub.f32 %v4924_v11, %v1264_v24 }
 0x424   : > { %v1208_v9 = vpop.xlane.xlu0 %1207  ;;  %v1490_v30 = vpop.xlane.xlu1 %1489  ;;  %v1674_v15 = vadd.f32 0.0001, %v4105_v6 }
 0x425   : > { %4106 = vpow2.f32 %v1614_v21  ;;  %v1579_v22 = vsub.f32 %v1547_v20, %v1490_v30  ;;  %v1266_v52 = vmul.f32 0.088388346, %v1208_v9 }
 0x426   : > { %4108 = vpow2.f32 %v1628_v35  ;;  %v5430_v57 = vmul.f32 0.09534626, %v1674_v15 }
 0x427   : > { %v1618_v44 = vmul.f32 1.442695, %v1579_v22 }
 0x428   : > { %v1226_v23 = vpop.xlane.xlu0 %1225  ;;  %v1502_v45 = vpop.xlane.xlu1 %1501 }
 0x429   : > { %4110 = vpow2.f32 %v1618_v44  ;;  %v1585_v34 = vsub.f32 %v1553_v51, %v1502_v45  ;;  %v1272_v51 = vmul.f32 0.088388346, %v1226_v23 }
 0x42a   : > { %4112 = vpow2.f32 %v1632_v27 }
 0x42b   : > { %v1630_v47 = vmul.f32 1.442695, %v1585_v34  ;;  %v1558_v34 = vsub.f32 %v4922_v8, %v1266_v52 }
 0x42c   : > { %v1232_v14 = vpop.xlane.xlu0 %1231  ;;  %v1506_v63 = vpop.xlane.xlu1 %1505 }
 0x42d   : > { %4114 = vpow2.f32 %v1630_v47  ;;  %v5420_v33 = vmul.f32 0.088388346, %v1232_v14  ;;  %v1587_v32 = vsub.f32 %v1555_v29, %v1506_v63 }
 0x42f   : > { %v4107_v38 = vpop.eup %4106  ;;  %v1634_v61 = vmul.f32 1.442695, %v1587_v32  ;;  %v1566_v2 = vsub.f32 %v4942_v49, %v5420_v33 }
 0x430   : > { %v1673_v7 = vadd.f32 0.0001, %v4107_v38  ;;  %v1508_v16 = vpop.xlane.xlu0 %1507  ;;  %v1205_v28 = vpop.xlane.xlu1 %1204  ;;  %v1564_v38 = vsub.f32 %v4944_v5, %v1272_v51 }
 0x431   : > { %4116 = vpow2.f32 %v1634_v61  ;;  %v4109_v37 = vpop.eup %4108  ;;  %v1588_v30 = vsub.f32 %v1556_v46, %v1508_v16  ;;  %v1265_v11 = vmul.f32 0.088388346, %v1205_v28 }
 0x432   : > { %v5426_v55 = vmul.f32 0.09534626, %v1673_v7  ;;  %v1680_v21 = vadd.f32 0.0001, %v4109_v37 }
 0x433   : > { %v4111_v54 = vpop.eup %4110  ;;  %v1636_v29 = vmul.f32 1.442695, %v1588_v30  ;;  %v1557_v8 = vsub.f32 %v4928_v41, %v1265_v11 }
 0x434   : > { %v1675_v12 = vadd.f32 0.0001, %v4111_v54  ;;  %v1512_v48 = vpop.xlane.xlu0 %1511  ;;  %v1211_v53 = vpop.xlane.xlu1 %1210  ;;  %v1967_v42 = vpack.c.bf16 %v5426_v55, %v5424_v62  ;;  %v5437_v27 = vmul.f32 0.09534626, %v1680_v21 }
 0x435   : > { %v4113_v49 = vpop.eup %4112  ;;  %v1590_v14 = vsub.f32 %v1558_v34, %v1512_v48  ;;  %v1267_v61 = vmul.f32 0.088388346, %v1211_v53  ;;  %4118 = vpow2.f32 %v1636_v29 }
 0x436   : > { %v5433_v20 = vmul.f32 0.09534626, %v1675_v12  ;;  %v1682_v9 = vadd.f32 0.0001, %v4113_v49 }
 0x437   : > { %v4115_v35 = vpop.eup %4114  ;;  %v1640_v16 = vmul.f32 1.442695, %v1590_v14  ;;  %v1559_v48 = vsub.f32 %v4926_v40, %v1267_v61 }
 0x438   : > { %v1681_v13 = vadd.f32 0.0001, %v4115_v35  ;;  %v1524_v22 = vpop.xlane.xlu0 %1523  ;;  %v1229_v39 = vpop.xlane.xlu1 %1228  ;;  %v1968_v44 = vpack.c.bf16 %v5433_v20, %v5430_v57  ;;  %v5444_v25 = vmul.f32 0.09534626, %v1682_v9 }
 0x439   : > { %v1596_v28 = vsub.f32 %v1564_v38, %v1524_v22  ;;  %4120 = vpow2.f32 %v1640_v16  ;;  %v1273_v5 = vmul.f32 0.088388346, %v1229_v39 }
 0x43a   : > { %v5439_v45 = vmul.f32 0.09534626, %v1681_v13 }
 0x43b   : > { %v4117_v4 = vpop.eup %4116  ;;  %v1652_v52 = vmul.f32 1.442695, %v1596_v28  ;;  %v1565_v13 = vsub.f32 %v4950_v60, %v1273_v5 }
 0x43c   : > { %v1683_v47 = vadd.f32 0.0001, %v4117_v4  ;;  %v1528_v63 = vpop.xlane.xlu0 %1527  ;;  %v1235_v33 = vpop.xlane.xlu1 %1234  ;;  %v1971_v32 = vpack.c.bf16 %v5439_v45, %v5437_v27 }
 0x43d   : > { %v1275_v6 = vmul.f32 0.088388346, %v1235_v33  ;;  %v1598_v41 = vsub.f32 %v1566_v2, %v1528_v63 }
 0x43e   : > { %v5446_v23 = vmul.f32 0.09534626, %v1683_v47 }
 0x43f   : > { %v1567_v7 = vsub.f32 %v4948_v31, %v1275_v6  ;;  %v1656_v30 = vmul.f32 1.442695, %v1598_v41  ;;  %v4119_v9 = vpop.eup %4118 }
 0x440   : > { %v1214_v24 = vpop.xlane.xlu0 %1213  ;;  %v1510_v37 = vpop.xlane.xlu1 %1509  ;;  %v1972_v15 = vpack.c.bf16 %v5446_v23, %v5444_v25  ;;  %v1684_v29 = vadd.f32 0.0001, %v4119_v9 }
 0x441   : > { %v1589_v54 = vsub.f32 %v1557_v8, %v1510_v37 }
 0x442   : > { %v5457_v16 = vmul.f32 0.09534626, %v1684_v29 }
 0x443   : > { %v1638_v12 = vmul.f32 1.442695, %v1589_v54  ;;  %v4121_v63 = vpop.eup %4120 }
 0x444   : > { %v1220_v53 = vpop.xlane.xlu0 %1219  ;;  %v1514_v49 = vpop.xlane.xlu1 %1513 }
 0x445   : > { %4122 = vpow2.f32 %v1638_v12  ;;  %v1591_v31 = vsub.f32 %v1559_v48, %v1514_v49  ;;  %v1686_v12 = vadd.f32 0.0001, %v4121_v63 }
 0x446   : > { %4124 = vpow2.f32 %v1652_v52 }
 0x447   : > { %v1642_v21 = vmul.f32 1.442695, %v1591_v31 }
 0x448   : > { %v3754_v46 = vpop.f32.mrb[0].mxu1  ;;  %v1238_v35 = vpop.xlane.xlu0 %1237 }
 0x449   : > { %4126 = vpow2.f32 %v1642_v21  ;;  %v1526_v22 = vpop.xlane.xlu1 %1525  ;;  %v2152_v51 = vpop.f32.mrb[1].mxu1 }
 0x44a   : > { %v1597_v40 = vsub.f32 %v1565_v13, %v1526_v22  ;;  %v3755_v34 = vpop.f32.mrb[2].mxu1  ;;  %4128 = vpow2.f32 %v1656_v30  ;;  %v5463_v30 = vmul.f32 0.09534626, %v1686_v12 }
 0x44b   : > { %v2627_v4 = vpack.c.bf16 %v3755_v34, %v3754_v46  ;;  %v2155_v39 = vpop.f32.mrb[3].mxu1  ;;  %v1270_v34 = vmul.f32 0.088388346, %v1220_v53 }
 0x44c   : > { %v1654_v11 = vmul.f32 1.442695, %v1597_v40  ;;  %v2626_v47 = vpack.c.bf16 %v2155_v39, %v2152_v51  ;;  %v5455_v2 = vpop.xlane.xlu0 %1243 }
 0x44d   : > { %v1530_v14 = vpop.xlane.xlu1 %1529 }
 0x44e   : > { %4130 = vpow2.f32 %v1654_v11  ;;  %v1599_v33 = vsub.f32 %v1567_v7, %v1530_v14  ;;  %3840 = vmatprep.subr.bf16.mxu0 %v2626_v47  ;;  %v1268_v7 = vmul.f32 0.088388346, %v1214_v24 }
 0x44f   : > { %v4123_v60 = vpop.eup %4122  ;;  %3841 = vmatpush3.bf16.msra.mxu0 %v2626_v47 }
 0x450   : > { %v1685_v6 = vadd.f32 0.0001, %v4123_v60  ;;  %v1658_v38 = vmul.f32 1.442695, %v1599_v33  ;;  %v3758_v61 = vpop.f32.mrb[4].mxu1  ;;  %3842 = vmatprep.subr.bf16.mxu0 %v2627_v4  ;;  %v1516_v8 = vpop.xlane.xlu0 %1515  ;;  %v1560_v24 = vsub.f32 %v4934_v18, %v1268_v7  ;;  %v1562_v18 = vsub.f32 %v5837_v56, %v1270_v34 }
 0x451   : > { %v1217_v28 = vpop.xlane.xlu1 %1216  ;;  %v2168_v37 = vpop.f32.mrb[5].mxu1  ;;  %v1276_v60 = vmul.f32 0.088388346, %v1238_v35 }
 0x452   : > { %v4125_v54 = vpop.eup %4124  ;;  %v5459_v48 = vmul.f32 0.09534626, %v1685_v6  ;;  %4132 = vpow2.f32 %v1658_v38  ;;  %v3759_v52 = vpop.f32.mrb[6].mxu1  ;;  %v1592_v29 = vsub.f32 %v1560_v24, %v1516_v8  ;;  %v1269_v12 = vmul.f32 0.088388346, %v1217_v28 }
 0x453   : > { %v4127_v5 = vpop.eup %4126  ;;  %v2629_v49 = vpack.c.bf16 %v3759_v52, %v3758_v61  ;;  %v2171_v41 = vpop.f32.mrb[7].mxu1  ;;  %3843 = vmatpush3.bf16.msra.mxu0 %v2627_v4  ;;  %v1692_v22 = vadd.f32 0.0001, %v4125_v54 }
 0x454   : > { %v1687_v31 = vadd.f32 0.0001, %v4127_v5  ;;  %v2628_v21 = vpack.c.bf16 %v2171_v41, %v2168_v37  ;;  %v1973_v46 = vpack.c.bf16 %v5459_v48, %v5457_v16  ;;  %v1520_v9 = vpop.xlane.xlu0 %1519  ;;  %v4129_v40 = vpop.eup %4128  ;;  %v1644_v8 = vmul.f32 1.442695, %v1592_v29 }
 0x455   : > { %v1223_v13 = vpop.xlane.xlu1 %1222  ;;  %v5470_v33 = vmul.f32 0.09534626, %v1692_v22  ;;  %v1694_v38 = vadd.f32 0.0001, %v4129_v40  ;;  %v1594_v41 = vsub.f32 %v1562_v18, %v1520_v9  ;;  %v1278_v22 = vmul.f32 0.088388346, %v5455_v2 }
 0x456   : > { %v5465_v51 = vmul.f32 0.09534626, %v1687_v31  ;;  %3844 = vmatprep.subr.bf16.mxu0 %v2628_v21  ;;  %v1271_v28 = vmul.f32 0.088388346, %v1223_v13  ;;  %v1561_v34 = vsub.f32 %v5840_v19, %v1269_v12  ;;  %4134 = vpow2.f32 %v1644_v8 }
 0x457   : > { %3845 = vmatpush3.bf16.msra.mxu0 %v2628_v21  ;;  %v5477_v21 = vmul.f32 0.09534626, %v1694_v38  ;;  %v1648_v24 = vmul.f32 1.442695, %v1594_v41 }
 0x458   : > { %v4131_v39 = vpop.eup %4130  ;;  %v1974_v4 = vpack.c.bf16 %v5465_v51, %v5463_v30  ;;  %v3762_v11 = vpop.f32.mrb[8].mxu1  ;;  %3846 = vmatprep.subr.bf16.mxu0 %v2629_v49  ;;  %v1563_v18 = vsub.f32 %v5841_v3, %v1271_v28 }
 0x459   : > { %v1693_v47 = vadd.f32 0.0001, %v4131_v39  ;;  %v1241_v14 = vpop.xlane.xlu1 %1240  ;;  %v2184_v63 = vpop.f32.mrb[9].mxu1  ;;  %4136 = vpow2.f32 %v1648_v24 }
 0x45a   : > { %v3763_v6 = vpop.f32.mrb[10].mxu1  ;;  %v1532_v52 = vpop.xlane.xlu0 %1531  ;;  %v1277_v13 = vmul.f32 0.088388346, %v1241_v14 }
 0x45b   : > { %v5472_v61 = vmul.f32 0.09534626, %v1693_v47  ;;  %v2631_v53 = vpack.c.bf16 %v3763_v6, %v3762_v11  ;;  %v2187_v37 = vpop.f32.mrb[11].mxu1  ;;  %3847 = vmatpush3.bf16.msra.mxu0 %v2629_v49  ;;  %v1568_v49 = vsub.f32 %v5838_v58, %v1276_v60  ;;  %v1570_v6 = vsub.f32 %v5839_v0, %v1278_v22 }
 0x45c   : > { %v4133_v54 = vpop.eup %4132  ;;  %v2630_v5 = vpack.c.bf16 %v2187_v37, %v2184_v63  ;;  %v1569_v0 = vsub.f32 %v5842_v59, %v1277_v13 }
 0x45d   : > { %v1695_v7 = vadd.f32 0.0001, %v4133_v54  ;;  %v1247_v31 = vpop.xlane.xlu1 %1246  ;;  %v1977_v35 = vpack.c.bf16 %v5472_v61, %v5470_v33  ;;  %v1600_v39 = vsub.f32 %v1568_v49, %v1532_v52 }
 0x45e   : > { %3848 = vmatprep.subr.bf16.mxu0 %v2630_v5  ;;  %v1536_v29 = vpop.xlane.xlu0 %1535 }
 0x45f   : > { %v5480_v56 = vmul.f32 0.09534626, %v1695_v7  ;;  %3849 = vmatpush3.bf16.msra.mxu0 %v2630_v5  ;;  %v1660_v37 = vmul.f32 1.442695, %v1600_v39  ;;  %v1602_v54 = vsub.f32 %v1570_v6, %v1536_v29  ;;  %v1279_v5 = vmul.f32 0.088388346, %v1247_v31 }
 0x460   : > { %v3766_v40 = vpop.f32.mrb[12].mxu1  ;;  %3850 = vmatprep.subr.bf16.mxu0 %v2631_v53  ;;  %v4135_v49 = vpop.eup %4134 }
 0x461   : > { %v1978_v9 = vpack.c.bf16 %v5480_v56, %v5477_v21  ;;  %v1518_v11 = vpop.xlane.xlu1 %1517  ;;  %v2200_v47 = vpop.f32.mrb[13].mxu1  ;;  %v1664_v14 = vmul.f32 1.442695, %v1602_v54  ;;  %v1571_v31 = vsub.f32 %v5843_v1, %v1279_v5 }
 0x462   : > { %v1593_v2 = vsub.f32 %v1561_v34, %v1518_v11  ;;  %v3767_v63 = vpop.f32.mrb[14].mxu1  ;;  %v1688_v11 = vadd.f32 0.0001, %v4135_v49 }
 0x463   : > { %v2633_v58 = vpack.c.bf16 %v3767_v63, %v3766_v40  ;;  %v2203_v60 = vpop.f32.mrb[15].mxu1  ;;  %3851 = vmatpush3.bf16.msra.mxu0 %v2631_v53 }
 0x464   : > { %v1646_v38 = vmul.f32 1.442695, %v1593_v2  ;;  %v2632_v19 = vpack.c.bf16 %v2203_v60, %v2200_v47  ;;  %v4137_v47 = vpop.eup %4136 }
 0x465   : > { %v1522_v12 = vpop.xlane.xlu1 %1521  ;;  %v1690_v26 = vadd.f32 0.0001, %v4137_v47 }
 0x466   : > { %4138 = vpow2.f32 %v1646_v38  ;;  %v1595_v52 = vsub.f32 %v1563_v18, %v1522_v12  ;;  %3852 = vmatprep.subr.bf16.mxu0 %v2632_v19 }
 0x467   : > { %3853 = vmatpush3.bf16.msra.mxu0 %v2632_v19  ;;  %4140 = vpow2.f32 %v1660_v37  ;;  %v5505_v54 = vmul.f32 0.09534626, %v1690_v26 }
 0x468   : > { %v1650_v7 = vmul.f32 1.442695, %v1595_v52  ;;  %v3778_v8 = vpop.f32.mrb[16].mxu1  ;;  %3854 = vmatprep.subr.bf16.mxu0 %v2633_v58 }
 0x469   : > { %v1534_v53 = vpop.xlane.xlu1 %1533  ;;  %v2289_v41 = vpop.f32.mrb[17].mxu1 }
 0x46a   : > { %4142 = vpow2.f32 %v1650_v7  ;;  %v1601_v3 = vsub.f32 %v1569_v0, %v1534_v53  ;;  %v3779_v22 = vpop.f32.mrb[18].mxu1 }
 0x46b   : > { %v2635_v28 = vpack.c.bf16 %v3779_v22, %v3778_v8  ;;  %v2292_v40 = vpop.f32.mrb[19].mxu1  ;;  %3855 = vmatpush3.bf16.msra.mxu0 %v2633_v58  ;;  %4144 = vpow2.f32 %v1664_v14  ;;  %v5496_v58 = vmul.f32 0.09534626, %v1688_v11 }
 0x46c   : > { %v1662_v34 = vmul.f32 1.442695, %v1601_v3  ;;  %v2634_v24 = vpack.c.bf16 %v2292_v40, %v2289_v41 }
 0x46d   : > { %v1538_v39 = vpop.xlane.xlu1 %1537 }
 0x46e   : > { %4146 = vpow2.f32 %v1662_v34  ;;  %v1603_v59 = vsub.f32 %v1571_v31, %v1538_v39  ;;  %3857 = vmatmul.mubr.bf16.vlgmr.msra.gmra.mrb[64].mxu0 %v1966_v17  ;;  %3864 = vmatprep.subr.bf16.mxu1 %v2634_v24 }
 0x46f   : > { %3860 = vmatprep.mubr.bf16.mxu0 %v1967_v42  ;;  %3865 = vmatpush3.bf16.msra.mxu1 %v2634_v24 }
 0x470   : > { %v4139_v29 = vpop.eup %4138  ;;  %v1666_v2 = vmul.f32 1.442695, %v1603_v59  ;;  %v3782_v63 = vpop.f32.mrb[20].mxu1  ;;  %3866 = vmatprep.subr.bf16.mxu1 %v2635_v28 }
 0x471   : > { %v1689_v1 = vadd.f32 0.0001, %v4139_v29  ;;  %v2305_v6 = vpop.f32.mrb[21].mxu1  ;;  %v4141_v13 = vpop.eup %4140 }
 0x472   : > { %4148 = vpow2.f32 %v1666_v2  ;;  %v3783_v60 = vpop.f32.mrb[22].mxu1  ;;  %v1696_v18 = vadd.f32 0.0001, %v4141_v13 }
 0x473   : > { %v5498_v10 = vmul.f32 0.09534626, %v1689_v1  ;;  %v2637_v17 = vpack.c.bf16 %v3783_v60, %v3782_v63  ;;  %v2308_v38 = vpop.f32.mrb[23].mxu1  ;;  %3867 = vmatpush3.bf16.msra.mxu1 %v2635_v28 }
 0x474   : > { %v4143_v62 = vpop.eup %4142  ;;  %v2636_v55 = vpack.c.bf16 %v2308_v38, %v2305_v6  ;;  %v5514_v20 = vmul.f32 0.09534626, %v1696_v18 }
 0x475   : > { %v1691_v42 = vadd.f32 0.0001, %v4143_v62  ;;  %v1975_v19 = vpack.c.bf16 %v5498_v10, %v5496_v58  ;;  %v4145_v37 = vpop.eup %4144 }
 0x476   : > { %3861 = vmatmul.mubr.bf16.gmra.mrb[68].mxu0 %v1968_v44  ;;  %3868 = vmatprep.subr.bf16.mxu1 %v2636_v55  ;;  %v1698_v0 = vadd.f32 0.0001, %v4145_v37 }
 0x477   : > { %v5507_v12 = vmul.f32 0.09534626, %v1691_v42  ;;  %3869 = vmatpush3.bf16.msra.mxu1 %v2636_v55  ;;  %3904 = vmatprep.mubr.bf16.mxu0 %v1973_v46 }
 0x478   : > { %v4147_v52 = vpop.eup %4146  ;;  %v3786_v5 = vpop.f32.mrb[24].mxu1  ;;  %3870 = vmatprep.subr.bf16.mxu1 %v2637_v17  ;;  %v5520_v22 = vmul.f32 0.09534626, %v1698_v0 }
 0x479   : > { %v1697_v7 = vadd.f32 0.0001, %v4147_v52  ;;  %v2321_v8 = vpop.f32.mrb[25].mxu1  ;;  %v1976_v57 = vpack.c.bf16 %v5507_v12, %v5505_v54  ;;  %v4344_v12 = vmov 32  }
 0x47a   : > { %v3787_v44 = vpop.f32.mrb[26].mxu1  ;;  %4020 = vset.pattern.permute.xlu0 %v4344_v12  ;;  %4021 = vset.pattern.permute.xlu1 %v4344_v12 }
 0x47b   : > { %v5516_v14 = vmul.f32 0.09534626, %v1697_v7  ;;  %v2639_v53 = vpack.c.bf16 %v3787_v44, %v3786_v5  ;;  %v2324_v41 = vpop.f32.mrb[27].mxu1  ;;  %3871 = vmatpush3.bf16.msra.mxu1 %v2637_v17 }
 0x47c   : > { %v4149_v3 = vpop.eup %4148  ;;  %v2638_v16 = vpack.c.bf16 %v2324_v41, %v2321_v8 }
 0x47d   : > { %v1699_v48 = vadd.f32 0.0001, %v4149_v3  ;;  %v1979_v46 = vpack.c.bf16 %v5516_v14, %v5514_v20 }
 0x47e   : > { %3872 = vmatprep.subr.bf16.mxu1 %v2638_v16 }
 0x47f   : > { %v5522_v49 = vmul.f32 0.09534626, %v1699_v48  ;;  %3873 = vmatpush3.bf16.msra.mxu1 %v2638_v16 }
 0x480   : > { %v3790_v28 = vpop.f32.mrb[28].mxu1  ;;  %3874 = vmatprep.subr.bf16.mxu1 %v2639_v53 }
 0x481   : > { %v2337_v40 = vpop.f32.mrb[29].mxu1  ;;  %v1980_v34 = vpack.c.bf16 %v5522_v49, %v5520_v22 }
 0x482   : > { %v3791_v24 = vpop.f32.mrb[30].mxu1 }
 0x483   : > { %v2641_v31 = vpack.c.bf16 %v3791_v24, %v3790_v28  ;;  %v2340_v39 = vpop.f32.mrb[31].mxu1  ;;  %3875 = vmatpush3.bf16.msra.mxu1 %v2639_v53 }
 0x484   : > { %v2640_v11 = vpack.c.bf16 %v2340_v39, %v2337_v40 }
 0x486   : > { %3876 = vmatprep.subr.bf16.mxu1 %v2640_v11 }
 0x487   : > { %3877 = vmatpush3.bf16.msra.mxu1 %v2640_v11 }
 0x488   : > { %v3802_v59 = vpop.f32.mrb[32].mxu1  ;;  %3878 = vmatprep.subr.bf16.mxu1 %v2641_v31 }
 0x489   : > { %v2426_v47 = vpop.f32.mrb[33].mxu1 }
 0x48a   : > { %v3803_v29 = vpop.f32.mrb[34].mxu1 }
 0x48b   : > { %v2643_v2 = vpack.c.bf16 %v3803_v29, %v3802_v59  ;;  %v2429_v63 = vpop.f32.mrb[35].mxu1  ;;  %3879 = vmatpush3.bf16.msra.mxu1 %v2641_v31 }
 0x48c   : > { %v2642_v1 = vpack.c.bf16 %v2429_v63, %v2426_v47 }
 0x48e   : > { %3881 = vmatmul.mubr.bf16.vlgmr.msra.gmra.mrb[64].mxu1 %v1970_v43  ;;  %3888 = vmatprep.subr.bf16.mxu0 %v2642_v1 }
 0x48f   : > { %3884 = vmatprep.mubr.bf16.mxu1 %v1971_v32  ;;  %3889 = vmatpush3.bf16.msra.mxu0 %v2642_v1 }
 0x490   : > { %v3806_v6 = vpop.f32.mrb[36].mxu1  ;;  %3890 = vmatprep.subr.bf16.mxu0 %v2643_v2 }
 0x491   : > { %v2442_v60 = vpop.f32.mrb[37].mxu1 }
 0x492   : > { %v3807_v13 = vpop.f32.mrb[38].mxu1 }
 0x493   : > { %v2645_v26 = vpack.c.bf16 %v3807_v13, %v3806_v6  ;;  %v2445_v17 = vpop.f32.mrb[39].mxu1  ;;  %3891 = vmatpush3.bf16.msra.mxu0 %v2643_v2 }
 0x494   : > { %v2644_v38 = vpack.c.bf16 %v2445_v17, %v2442_v60 }
 0x496   : > { %3885 = vmatmul.mubr.bf16.gmra.mrb[68].mxu1 %v1972_v15  ;;  %3892 = vmatprep.subr.bf16.mxu0 %v2644_v38 }
 0x497   : > { %3893 = vmatpush3.bf16.msra.mxu0 %v2644_v38  ;;  %3928 = vmatprep.mubr.bf16.mxu1 %v1977_v35 }
 0x498   : > { %v3810_v50 = vpop.f32.mrb[40].mxu1  ;;  %3894 = vmatprep.subr.bf16.mxu0 %v2645_v26 }
 0x499   : > { %v2458_v36 = vpop.f32.mrb[41].mxu1 }
 0x49a   : > { %v3811_v43 = vpop.f32.mrb[42].mxu1 }
 0x49b   : > { %v2647_v27 = vpack.c.bf16 %v3811_v43, %v3810_v50  ;;  %v2461_v45 = vpop.f32.mrb[43].mxu1  ;;  %3895 = vmatpush3.bf16.msra.mxu0 %v2645_v26 }
 0x49c   : > { %v2646_v32 = vpack.c.bf16 %v2461_v45, %v2458_v36 }
 0x49e   : > { %3896 = vmatprep.subr.bf16.mxu0 %v2646_v32 }
 0x49f   : > { %3897 = vmatpush3.bf16.msra.mxu0 %v2646_v32 }
 0x4a0   : > { %v3814_v62 = vpop.f32.mrb[44].mxu1  ;;  %3898 = vmatprep.subr.bf16.mxu0 %v2647_v27 }
 0x4a1   : > { %v2474_v25 = vpop.f32.mrb[45].mxu1 }
 0x4a2   : > { %v3815_v23 = vpop.f32.mrb[46].mxu1 }
 0x4a3   : > { %v2649_v15 = vpack.c.bf16 %v3815_v23, %v3814_v62  ;;  %v2477_v55 = vpop.f32.mrb[47].mxu1  ;;  %3899 = vmatpush3.bf16.msra.mxu0 %v2647_v27 }
 0x4a4   : > { %v2648_v42 = vpack.c.bf16 %v2477_v55, %v2474_v25 }
 0x4a6   : > { %3900 = vmatprep.subr.bf16.mxu0 %v2648_v42 }
 0x4a7   : > { %3901 = vmatpush3.bf16.msra.mxu0 %v2648_v42 }
 0x4a8   : > { %v3826_v33 = vpop.f32.mrb[48].mxu1  ;;  %3902 = vmatprep.subr.bf16.mxu0 %v2649_v15 }
 0x4a9   : > { %v2563_v61 = vpop.f32.mrb[49].mxu1 }
 0x4aa   : > { %v3827_v35 = vpop.f32.mrb[50].mxu1 }
 0x4ab   : > { %v2651_v18 = vpack.c.bf16 %v3827_v35, %v3826_v33  ;;  %v2566_v37 = vpop.f32.mrb[51].mxu1  ;;  %3903 = vmatpush3.bf16.msra.mxu0 %v2649_v15 }
 0x4ac   : > { %v2650_v52 = vpack.c.bf16 %v2566_v37, %v2563_v61 }
 0x4ae   : > { %3905 = vmatmul.mubr.bf16.vlgmr.msra.gmra.mrb[72].mxu0 %v1974_v4  ;;  %3912 = vmatprep.subr.bf16.mxu1 %v2650_v52 }
 0x4af   : > { %3908 = vmatprep.mubr.bf16.mxu0 %v1975_v19  ;;  %3913 = vmatpush3.bf16.msra.mxu1 %v2650_v52 }
 0x4b0   : > { %v3830_v5 = vpop.f32.mrb[52].mxu1  ;;  %3914 = vmatprep.subr.bf16.mxu1 %v2651_v18 }
 0x4b1   : > { %v2579_v7 = vpop.f32.mrb[53].mxu1 }
 0x4b2   : > { %v3831_v8 = vpop.f32.mrb[54].mxu1 }
 0x4b3   : > { %v2653_v44 = vpack.c.bf16 %v3831_v8, %v3830_v5  ;;  %v2582_v0 = vpop.f32.mrb[55].mxu1  ;;  %3915 = vmatpush3.bf16.msra.mxu1 %v2651_v18 }
 0x4b4   : > { %v2652_v53 = vpack.c.bf16 %v2582_v0, %v2579_v7 }
 0x4b6   : > { %3909 = vmatmul.mubr.bf16.gmra.mrb[76].mxu0 %v1976_v57  ;;  %3916 = vmatprep.subr.bf16.mxu1 %v2652_v53 }
 0x4b7   : > { %3917 = vmatpush3.bf16.msra.mxu1 %v2652_v53 }
 0x4b8   : > { %v3834_v30 = vpop.f32.mrb[56].mxu1  ;;  %3918 = vmatprep.subr.bf16.mxu1 %v2653_v44 }
 0x4b9   : > { %v2595_v51 = vpop.f32.mrb[57].mxu1 }
 0x4ba   : > { %v3835_v4 = vpop.f32.mrb[58].mxu1 }
 0x4bb   : > { %v2655_v58 = vpack.c.bf16 %v3835_v4, %v3834_v30  ;;  %v2598_v10 = vpop.f32.mrb[59].mxu1  ;;  %3919 = vmatpush3.bf16.msra.mxu1 %v2653_v44 }
 0x4bc   : > { %v2654_v19 = vpack.c.bf16 %v2598_v10, %v2595_v51 }
 0x4be   : > { %3920 = vmatprep.subr.bf16.mxu1 %v2654_v19 }
 0x4bf   : > { %3921 = vmatpush3.bf16.msra.mxu1 %v2654_v19 }
 0x4c0   : > { %v3838_v41 = vpop.f32.mrb[60].mxu1  ;;  %3922 = vmatprep.subr.bf16.mxu1 %v2655_v58 }
 0x4c1   : > { %v2611_v3 = vpop.f32.mrb[61].mxu1 }
 0x4c2   : > { %v3839_v16 = vpop.f32.mrb[62].mxu1 }
 0x4c3   : > { %v2657_v48 = vpack.c.bf16 %v3839_v16, %v3838_v41  ;;  %v2614_v28 = vpop.f32.mrb[63].mxu1  ;;  %3923 = vmatpush3.bf16.msra.mxu1 %v2655_v58 }
 0x4c4   : > { %v2656_v54 = vpack.c.bf16 %v2614_v28, %v2611_v3 }
 0x4c6   : > { %3924 = vmatprep.subr.bf16.mxu1 %v2656_v54 }
 0x4c7   : > { %3925 = vmatpush3.bf16.msra.mxu1 %v2656_v54 }
 0x4c8   : > { %3926 = vmatprep.subr.bf16.mxu1 %v2657_v48 }
 0x4cb   : > { %3927 = vmatpush3.bf16.msra.mxu1 %v2657_v48 }
 0x4ce   : > { %3929 = vmatmul.mubr.bf16.vlgmr.msra.gmra.mrb[72].mxu1 %v1978_v9 }
 0x4cf   : > { %3932 = vmatprep.mubr.bf16.mxu1 %v1979_v46 }
 0x4d6   : > { %3933 = vmatmul.mubr.bf16.gmra.mrb[76].mxu1 %v1980_v34 }
 0x541   : > { %v5556_v57 = vpop.f32.mrb[64].mxu0 }
 0x542   : > { %v5558_v40 = vpop.f32.mrb[65].mxu0 }
 0x543   : > { %4150 = vrcp.f32 %v5558_v40  ;;  %v5561_v24 = vpop.f32.mrb[66].mxu0 }
 0x544   : > { %v5563_v21 = vpop.f32.mrb[67].mxu0 }
 0x545   : > { %4152 = vrcp.f32 %v5563_v21 }
 0x549   : > { %v5566_v56 = vpop.f32.mrb[68].mxu0 }
 0x54a   : > { %v5568_v9 = vpop.f32.mrb[69].mxu0 }
 0x54b   : > { %v5570_v20 = vpop.f32.mrb[70].mxu0 }
 0x54c   : > { %v5572_v14 = vpop.f32.mrb[71].mxu0 }
 0x54d   : > { %v4151_v46 = vpop.eup %4150 }
 0x54e   : > { %2952 = vperm.xlu0 %4020, %v4151_v46  }
 0x54f   : > { %v4153_v22 = vpop.eup %4152 }
 0x550   : > { %2957 = vperm.xlu1 %4021, %v4153_v22  }
 0x561   : > { %v5574_v49 = vpop.f32.mrb[64].mxu1 }
 0x562   : > { %4154 = vrcp.f32 %v5574_v49  ;;  %v5577_v34 = vpop.f32.mrb[65].mxu1 }
 0x563   : > { %v5579_v31 = vpop.f32.mrb[66].mxu1  ;;  %4156 = vrcp.f32 %v5577_v34 }
 0x564   : > { %v5581_v39 = vpop.f32.mrb[67].mxu1  ;;  %4158 = vrcp.f32 %v5579_v31 }
 0x569   : > { %v5584_v11 = vpop.f32.mrb[68].mxu1 }
 0x56a   : > { %v5587_v59 = vpop.f32.mrb[69].mxu1 }
 0x56b   : > { %v5589_v47 = vpop.f32.mrb[70].mxu1 }
 0x56c   : > { %v4155_v29 = vpop.eup %4154  ;;  %4160 = vrcp.f32 %v5589_v47  ;;  %v5592_v2 = vpop.f32.mrb[71].mxu1 }
 0x56d   : > { %3002 = vperm.xlu1 %4021, %v4155_v29   ;;  %4162 = vrcp.f32 %v5581_v39  ;;  %v4157_v63 = vpop.eup %4156 }
 0x56e   : > { %4164 = vrcp.f32 %v5584_v11  ;;  %v4159_v1 = vpop.eup %4158 }
 0x56f   : > { %4166 = vrcp.f32 %v5587_v59 }
 0x570   : > { %4168 = vrcp.f32 %v5592_v2 }
 0x571   : > { %2992 = vperm.xlu1 %4021, %v4157_v63  }
 0x575   : > { %3007 = vperm.xlu1 %4021, %v4159_v1  }
 0x576   : > { %v4161_v6 = vpop.eup %4160 }
 0x577   : > { %3027 = vperm.xlu0 %4020, %v4161_v6   ;;  %v4163_v60 = vpop.eup %4162 }
 0x578   : > { %v4165_v13 = vpop.eup %4164 }
 0x579   : > { %2997 = vperm.xlu1 %4021, %v4163_v60   ;;  %v4167_v26 = vpop.eup %4166 }
 0x57a   : > { %v4169_v36 = vpop.eup %4168 }
 0x57d   : > { %3022 = vperm.xlu1 %4021, %v4165_v13  }
 0x581   : > { %3012 = vperm.xlu1 %4021, %v4167_v26   ;;  %v5598_v17 = vpop.f32.mrb[72].mxu0 }
 0x582   : > { %4170 = vrcp.f32 %v5598_v17  ;;  %v5601_v38 = vpop.f32.mrb[73].mxu0 }
 0x583   : > { %v5603_v50 = vpop.f32.mrb[74].mxu0 }
 0x584   : > { %4172 = vrcp.f32 %v5603_v50  ;;  %v5606_v43 = vpop.f32.mrb[75].mxu0 }
 0x585   : > { %3017 = vperm.xlu1 %4021, %v4169_v36   ;;  %4174 = vrcp.f32 %v5601_v38 }
 0x586   : > { %4176 = vrcp.f32 %v5606_v43 }
 0x589   : > { %v5610_v27 = vpop.f32.mrb[76].mxu0 }
 0x58a   : > { %4178 = vrcp.f32 %v5610_v27  ;;  %v5613_v45 = vpop.f32.mrb[77].mxu0 }
 0x58b   : > { %v5615_v32 = vpop.f32.mrb[78].mxu0 }
 0x58c   : > { %v4171_v62 = vpop.eup %4170  ;;  %4180 = vrcp.f32 %v5615_v32  ;;  %v5618_v25 = vpop.f32.mrb[79].mxu0 }
 0x58d   : > { %3042 = vperm.xlu1 %4021, %v4171_v62   ;;  %4182 = vrcp.f32 %v5613_v45 }
 0x58e   : > { %v4173_v23 = vpop.eup %4172  ;;  %4184 = vrcp.f32 %v5618_v25 }
 0x58f   : > { %3047 = vperm.xlu0 %4020, %v4173_v23   ;;  %v4175_v15 = vpop.eup %4174 }
 0x590   : > { %v4177_v55 = vpop.eup %4176 }
 0x591   : > { %3032 = vperm.xlu1 %4021, %v4175_v15  }
 0x593   : > { %3037 = vperm.xlu0 %4020, %v4177_v55  }
 0x594   : > { %v4179_v42 = vpop.eup %4178 }
 0x595   : > { %3062 = vperm.xlu1 %4021, %v4179_v42  }
 0x596   : > { %v4181_v33 = vpop.eup %4180 }
 0x597   : > { %3067 = vperm.xlu0 %4020, %v4181_v33   ;;  %v4183_v61 = vpop.eup %4182 }
 0x598   : > { %v4185_v35 = vpop.eup %4184 }
 0x599   : > { %3052 = vperm.xlu1 %4021, %v4183_v61  }
 0x59b   : > { %3057 = vperm.xlu0 %4020, %v4185_v35  }
 0x5a1   : > { %v5622_v18 = vpop.f32.mrb[72].mxu1 }
 0x5a2   : > { %4186 = vrcp.f32 %v5622_v18  ;;  %v5625_v37 = vpop.f32.mrb[73].mxu1 }
 0x5a3   : > { %v5627_v52 = vpop.f32.mrb[74].mxu1 }
 0x5a4   : > { %4188 = vrcp.f32 %v5627_v52  ;;  %v5630_v5 = vpop.f32.mrb[75].mxu1 }
 0x5a5   : > { %4190 = vrcp.f32 %v5625_v37 }
 0x5a6   : > { %4192 = vrcp.f32 %v5630_v5 }
 0x5a9   : > { %v5634_v7 = vpop.f32.mrb[76].mxu1 }
 0x5aa   : > { %v5636_v8 = vpop.f32.mrb[77].mxu1 }
 0x5ab   : > { %4194 = vrcp.f32 %v5636_v8  ;;  %v5639_v44 = vpop.f32.mrb[78].mxu1 }
 0x5ac   : > { %v4187_v0 = vpop.eup %4186  ;;  %v5641_v53 = vpop.f32.mrb[79].mxu1 }
 0x5ad   : > { %4196 = vrcp.f32 %v5641_v53  ;;  %3082 = vperm.xlu1 %4021, %v4187_v0  }
 0x5ae   : > { %v4189_v30 = vpop.eup %4188  ;;  %4198 = vrcp.f32 %v5634_v7 }
 0x5af   : > { %3087 = vperm.xlu0 %4020, %v4189_v30   ;;  %v4191_v51 = vpop.eup %4190  ;;  %4200 = vrcp.f32 %v5639_v44 }
 0x5b0   : > { %v4193_v4 = vpop.eup %4192  ;;  %4202 = vrcp.f32 %v5556_v57 }
 0x5b1   : > { %3072 = vperm.xlu1 %4021, %v4191_v51   ;;  %4204 = vrcp.f32 %v5561_v24 }
 0x5b2   : > { %4206 = vrcp.f32 %v5568_v9 }
 0x5b3   : > { %3077 = vperm.xlu0 %4020, %v4193_v4   ;;  %4208 = vrcp.f32 %v5572_v14 }
 0x5b4   : > { %4210 = vrcp.f32 %v5566_v56 }
 0x5b5   : > { %v4195_v58 = vpop.eup %4194  ;;  %4212 = vrcp.f32 %v5570_v20 }
 0x5b6   : > { %3092 = vperm.xlu1 %4021, %v4195_v58  }
 0x5b7   : > { %v4197_v10 = vpop.eup %4196 }
 0x5b8   : > { %3097 = vperm.xlu0 %4020, %v4197_v10   ;;  %v4199_v19 = vpop.eup %4198 }
 0x5b9   : > { %v4201_v41 = vpop.eup %4200 }
 0x5ba   : > { %3102 = vperm.xlu1 %4021, %v4199_v19   ;;  %v4203_v3 = vpop.eup %4202 }
 0x5bb   : > { %v4205_v16 = vpop.eup %4204 }
 0x5bc   : > { %3107 = vperm.xlu0 %4020, %v4201_v41   ;;  %v4207_v48 = vpop.eup %4206 }
 0x5bd   : > { %v4209_v28 = vpop.eup %4208 }
 0x5be   : > { %2962 = vperm.xlu1 %4021, %v4203_v3   ;;  %v4211_v54 = vpop.eup %4210 }
 0x5bf   : > { %v4213_v12 = vpop.eup %4212 }
 0x5c0   : > { %2967 = vperm.xlu0 %4020, %v4205_v16  }
 0x5c2   : > { %2972 = vperm.xlu1 %4021, %v4207_v48  }
 0x5c4   : > { %2977 = vperm.xlu0 %4020, %v4209_v28  }
 0x5c6   : > { %2982 = vperm.xlu1 %4021, %v4211_v54  }
 0x5c8   : > { %2987 = vperm.xlu0 %4020, %v4213_v12  }
 0x5cd   : > { %v2953_v46 = vpop.permute.xlu0 %2952 }
 0x5ce   : > { %v3110_v22 = vmul.f32 %v2953_v46, %v5558_v40 }
 0x5cf   : > { %v2958_v29 = vpop.permute.xlu1 %2957 }
 0x5d0   : > { %3142 = vst.msk [vmem:[%s4489_s18] sm:$0xff] %vm734_vm4, %v3110_v22  ;;  %v3111_v63 = vmul.f32 %v2958_v29, %v5563_v21 }
 0x5d2   : > { %3143 = vst.msk [vmem:[%s4489_s18 + $0x8] sm:$0xff] %vm734_vm4, %v3111_v63 }
 0x5ec   : > { %v3003_v1 = vpop.permute.xlu1 %3002 }
 0x5ed   : > { %v3120_v6 = vmul.f32 %v5574_v49, %v3003_v1 }
 0x5ef   : > { %3162 = vrot.lane.b32.xlu1 %v3120_v6, %s4345_s3 }
 0x5f0   : > { %v2993_v60 = vpop.permute.xlu1 %2992 }
 0x5f1   : > { %v3118_v13 = vmul.f32 %v2993_v60, %v5577_v34 }
 0x5f3   : > { %3158 = vrot.lane.b32.xlu1 %v3118_v13, %s4345_s3 }
 0x5f4   : > { %v3008_v26 = vpop.permute.xlu1 %3007 }
 0x5f5   : > { %v3121_v36 = vmul.f32 %v5579_v31, %v3008_v26 }
 0x5f6   : > { %v3028_v23 = vpop.permute.xlu0 %3027 }
 0x5f7   : > { %3164 = vrot.lane.b32.xlu0 %v3121_v36, %s4345_s3  ;;  %v3125_v15 = vmul.f32 %v5589_v47, %v3028_v23 }
 0x5f8   : > { %v2998_v40 = vpop.permute.xlu1 %2997 }
 0x5f9   : > { %v3119_v62 = vmul.f32 %v2998_v40, %v5581_v39 }
 0x5fb   : > { %3160 = vrot.lane.b32.xlu0 %v3119_v62, %s4345_s3 }
 0x5fc   : > { %v3023_v21 = vpop.permute.xlu1 %3022 }
 0x5fd   : > { %v3124_v49 = vmul.f32 %v5584_v11, %v3023_v21 }
 0x5ff   : > { %3172 = vrot.lane.b32.xlu0 %v3125_v15, %s4345_s3  ;;  %3170 = vrot.lane.b32.xlu1 %v3124_v49, %s4345_s3 }
 0x600   : > { %v3013_v55 = vpop.permute.xlu1 %3012 }
 0x601   : > { %v3122_v34 = vmul.f32 %v3013_v55, %v5587_v59 }
 0x603   : > { %3166 = vrot.lane.b32.xlu1 %v3122_v34, %s4345_s3 }
 0x604   : > { %v3018_v42 = vpop.permute.xlu1 %3017 }
 0x605   : > { %v3123_v31 = vmul.f32 %v3018_v42, %v5592_v2 }
 0x607   : > { %3168 = vrot.lane.b32.xlu0 %v3123_v31, %s4345_s3 }
 0x60c   : > { %v3043_v33 = vpop.permute.xlu1 %3042 }
 0x60d   : > { %v3128_v39 = vmul.f32 %v5598_v17, %v3043_v33 }
 0x60e   : > { %v3048_v61 = vpop.permute.xlu0 %3047 }
 0x60f   : > { %v3129_v35 = vmul.f32 %v5603_v50, %v3048_v61  ;;  %3203 = vrot.lane.b32.xlu1 %v3128_v39, %s4346_s19 }
 0x610   : > { %v3033_v47 = vpop.permute.xlu1 %3032 }
 0x611   : > { %v3126_v11 = vmul.f32 %v3033_v47, %v5601_v38  ;;  %3205 = vrot.lane.b32.xlu0 %v3129_v35, %s4346_s19 }
 0x612   : > { %v3038_v0 = vpop.permute.xlu0 %3037 }
 0x613   : > { %v3127_v59 = vmul.f32 %v3038_v0, %v5606_v43  ;;  %3199 = vrot.lane.b32.xlu1 %v3126_v11, %s4346_s19 }
 0x614   : > { %v3063_v30 = vpop.permute.xlu1 %3062 }
 0x615   : > { %v3132_v2 = vmul.f32 %v5610_v27, %v3063_v30  ;;  %3201 = vrot.lane.b32.xlu0 %v3127_v59, %s4346_s19 }
 0x616   : > { %v3068_v51 = vpop.permute.xlu0 %3067 }
 0x617   : > { %v3133_v17 = vmul.f32 %v5615_v32, %v3068_v51  ;;  %3211 = vrot.lane.b32.xlu1 %v3132_v2, %s4346_s19 }
 0x618   : > { %v3053_v4 = vpop.permute.xlu1 %3052 }
 0x619   : > { %v3130_v50 = vmul.f32 %v3053_v4, %v5613_v45  ;;  %3213 = vrot.lane.b32.xlu0 %v3133_v17, %s4346_s19 }
 0x61a   : > { %v3058_v58 = vpop.permute.xlu0 %3057 }
 0x61b   : > { %v3131_v38 = vmul.f32 %v3058_v58, %v5618_v25  ;;  %3207 = vrot.lane.b32.xlu1 %v3130_v50, %s4346_s19 }
 0x61d   : > { %3209 = vrot.lane.b32.xlu0 %v3131_v38, %s4346_s19 }
 0x62c   : > { %v3083_v10 = vpop.permute.xlu1 %3082 }
 0x62d   : > { %v3136_v43 = vmul.f32 %v5622_v18, %v3083_v10 }
 0x62e   : > { %v3088_v19 = vpop.permute.xlu0 %3087 }
 0x62f   : > { %v3137_v27 = vmul.f32 %v5627_v52, %v3088_v19  ;;  %3244 = vrot.lane.b32.xlu1 %v3136_v43, %s4347_s26 }
 0x630   : > { %v3073_v41 = vpop.permute.xlu1 %3072 }
 0x631   : > { %v3134_v32 = vmul.f32 %v3073_v41, %v5625_v37  ;;  %3246 = vrot.lane.b32.xlu0 %v3137_v27, %s4347_s26 }
 0x632   : > { %v3078_v3 = vpop.permute.xlu0 %3077 }
 0x633   : > { %v3135_v45 = vmul.f32 %v3078_v3, %v5630_v5  ;;  %3240 = vrot.lane.b32.xlu1 %v3134_v32, %s4347_s26 }
 0x635   : > { %3242 = vrot.lane.b32.xlu0 %v3135_v45, %s4347_s26  ;;  %v3093_v25 = vpop.permute.xlu1 %3092 }
 0x636   : > { %v3138_v16 = vmul.f32 %v3093_v25, %v5636_v8 }
 0x637   : > { %v3098_v48 = vpop.permute.xlu0 %3097 }
 0x638   : > { %v3139_v18 = vmul.f32 %v3098_v48, %v5641_v53  ;;  %3248 = vrot.lane.b32.xlu1 %v3138_v16, %s4347_s26 }
 0x639   : > { %v3103_v52 = vpop.permute.xlu1 %3102 }
 0x63a   : > { %v3140_v28 = vmul.f32 %v5634_v7, %v3103_v52  ;;  %3250 = vrot.lane.b32.xlu0 %v3139_v18, %s4347_s26 }
 0x63b   : > { %v3108_v37 = vpop.permute.xlu0 %3107 }
 0x63c   : > { %v3141_v5 = vmul.f32 %v5639_v44, %v3108_v37  ;;  %3252 = vrot.lane.b32.xlu1 %v3140_v28, %s4347_s26 }
 0x63d   : > { %v2963_v54 = vpop.permute.xlu1 %2962 }
 0x63e   : > { %v3112_v12 = vmul.f32 %v5556_v57, %v2963_v54  ;;  %3254 = vrot.lane.b32.xlu0 %v3141_v5, %s4347_s26 }
 0x63f   : > { %v2968_v8 = vpop.permute.xlu0 %2967 }
 0x640   : > { %3144 = vst.msk [vmem:[%s4489_s18 + $0x10] sm:$0xff] %vm734_vm4, %v3112_v12  ;;  %v3113_v53 = vmul.f32 %v5561_v24, %v2968_v8 }
 0x641   : > { %v2973_v46 = vpop.permute.xlu1 %2972 }
 0x642   : > { %3145 = vst.msk [vmem:[%s4489_s18 + $0x18] sm:$0xff] %vm734_vm4, %v3113_v53  ;;  %v3114_v7 = vmul.f32 %v2973_v46, %v5568_v9 }
 0x643   : > { %v2978_v44 = vpop.permute.xlu0 %2977 }
 0x644   : > { %3146 = vst.msk [vmem:[%s4489_s18 + $0x20] sm:$0xff] %vm734_vm4, %v3114_v7  ;;  %v3115_v57 = vmul.f32 %v2978_v44, %v5572_v14 }
 0x645   : > { %v2983_v22 = vpop.permute.xlu1 %2982 }
 0x646   : > { %3147 = vst.msk [vmem:[%s4489_s18 + $0x28] sm:$0xff] %vm734_vm4, %v3115_v57  ;;  %v3116_v29 = vmul.f32 %v5566_v56, %v2983_v22 }
 0x647   : > { %v2988_v24 = vpop.permute.xlu0 %2987 }
 0x648   : > { %3148 = vst.msk [vmem:[%s4489_s18 + $0x30] sm:$0xff] %vm734_vm4, %v3116_v29  ;;  %v3117_v63 = vmul.f32 %v5570_v20, %v2988_v24 }
 0x64a   : > { %3149 = vst.msk [vmem:[%s4489_s18 + $0x38] sm:$0xff] %vm734_vm4, %v3117_v63 }
 0x661   : > { %v3163_v9 = vpop.permute.xlu1 %3162 }
 0x662   : > { %3185 = vst.msk [vmem:[%s4489_s18 + $0x10] sm:$0xff] %vm3182_vm7, %v3163_v9 }
 0x665   : > { %v3159_v14 = vpop.permute.xlu1 %3158 }
 0x666   : > { %3183 = vst.msk [vmem:[%s4489_s18] sm:$0xff] %vm3182_vm7, %v3159_v14 }
 0x669   : > { %v3165_v56 = vpop.permute.xlu0 %3164 }
 0x66a   : > { %3186 = vst.msk [vmem:[%s4489_s18 + $0x18] sm:$0xff] %vm3182_vm7, %v3165_v56 }
 0x66d   : > { %v3161_v1 = vpop.permute.xlu0 %3160 }
 0x66e   : > { %3184 = vst.msk [vmem:[%s4489_s18 + $0x8] sm:$0xff] %vm3182_vm7, %v3161_v1 }
 0x671   : > { %v3173_v20 = vpop.permute.xlu0 %3172  ;;  %v3171_v6 = vpop.permute.xlu1 %3170 }
 0x672   : > { %3190 = vst.msk [vmem:[%s4489_s18 + $0x38] sm:$0xff] %vm3182_vm7, %v3173_v20  ;;  %3189 = vst.msk [vmem:[%s4489_s18 + $0x30] sm:$0xff] %vm3182_vm7, %v3171_v6 }
 0x675   : > { %v3167_v60 = vpop.permute.xlu1 %3166 }
 0x676   : > { %3187 = vst.msk [vmem:[%s4489_s18 + $0x20] sm:$0xff] %vm3182_vm7, %v3167_v60 }
 0x679   : > { %v3169_v13 = vpop.permute.xlu0 %3168 }
 0x67a   : > { %3188 = vst.msk [vmem:[%s4489_s18 + $0x28] sm:$0xff] %vm3182_vm7, %v3169_v13 }
 0x681   : > { %v3204_v26 = vpop.permute.xlu1 %3203 }
 0x682   : > { %3226 = vst.msk [vmem:[%s4489_s18 + $0x10] sm:$0xff] %vm3223_vm8, %v3204_v26 }
 0x683   : > { %v3206_v36 = vpop.permute.xlu0 %3205 }
 0x684   : > { %3227 = vst.msk [vmem:[%s4489_s18 + $0x18] sm:$0xff] %vm3223_vm8, %v3206_v36 }
 0x685   : > { %v3200_v40 = vpop.permute.xlu1 %3199 }
 0x686   : > { %3224 = vst.msk [vmem:[%s4489_s18] sm:$0xff] %vm3223_vm8, %v3200_v40 }
 0x687   : > { %v3202_v62 = vpop.permute.xlu0 %3201 }
 0x688   : > { %3225 = vst.msk [vmem:[%s4489_s18 + $0x8] sm:$0xff] %vm3223_vm8, %v3202_v62 }
 0x689   : > { %v3212_v23 = vpop.permute.xlu1 %3211 }
 0x68a   : > { %3230 = vst.msk [vmem:[%s4489_s18 + $0x30] sm:$0xff] %vm3223_vm8, %v3212_v23 }
 0x68b   : > { %v3214_v21 = vpop.permute.xlu0 %3213 }
 0x68c   : > { %3231 = vst.msk [vmem:[%s4489_s18 + $0x38] sm:$0xff] %vm3223_vm8, %v3214_v21 }
 0x68d   : > { %v3208_v15 = vpop.permute.xlu1 %3207 }
 0x68e   : > { %3228 = vst.msk [vmem:[%s4489_s18 + $0x20] sm:$0xff] %vm3223_vm8, %v3208_v15 }
 0x68f   : > { %v3210_v49 = vpop.permute.xlu0 %3209 }
 0x690   : > { %3229 = vst.msk [vmem:[%s4489_s18 + $0x28] sm:$0xff] %vm3223_vm8, %v3210_v49 }
 0x6a1   : > { %v3245_v55 = vpop.permute.xlu1 %3244 }
 0x6a2   : > { %3267 = vst.msk [vmem:[%s4489_s18 + $0x10] sm:$0xff] %vm3264_vm9, %v3245_v55 }
 0x6a3   : > { %v3247_v34 = vpop.permute.xlu0 %3246 }
 0x6a4   : > { %3268 = vst.msk [vmem:[%s4489_s18 + $0x18] sm:$0xff] %vm3264_vm9, %v3247_v34 }
 0x6a5   : > { %v3241_v42 = vpop.permute.xlu1 %3240 }
 0x6a6   : > { %3265 = vst.msk [vmem:[%s4489_s18] sm:$0xff] %vm3264_vm9, %v3241_v42 }
 0x6a7   : > { %v3243_v31 = vpop.permute.xlu0 %3242 }
 0x6a8   : > { %3266 = vst.msk [vmem:[%s4489_s18 + $0x8] sm:$0xff] %vm3264_vm9, %v3243_v31 }
 0x6aa   : > { %v3249_v33 = vpop.permute.xlu1 %3248 }
 0x6ab   : > { %3269 = vst.msk [vmem:[%s4489_s18 + $0x20] sm:$0xff] %vm3264_vm9, %v3249_v33 }
 0x6ac   : > { %v3251_v39 = vpop.permute.xlu0 %3250 }
 0x6ad   : > { %3270 = vst.msk [vmem:[%s4489_s18 + $0x28] sm:$0xff] %vm3264_vm9, %v3251_v39 }
 0x6ae   : > { %v3253_v61 = vpop.permute.xlu1 %3252 }
 0x6af   : > { %3271 = vst.msk [vmem:[%s4489_s18 + $0x30] sm:$0xff] %vm3264_vm9, %v3253_v61 }
 0x6b0   : > { %v3255_v35 = vpop.permute.xlu0 %3254 }
 0x6b1   : > { %3272 = vst.msk [vmem:[%s4489_s18 + $0x38] sm:$0xff] %vm3264_vm9, %v3255_v35 }
 0x6b2 PF: > { %s3491_s8 = sshll.u32 %s4450_s9, 10  ;;  %s3288_s10 = sshll.u32 %s4489_s18, 4  ;;  %s5755_s10 = int_to_ptr.vmem [resolvable:$true] %s3288_s10 }
 0x6b3   : > { %s5752_s6 = scalar_lea.hbm %s5815_s4, %s3491_s8  ;;  %s5844_s11 = sand.u32 1, %s4316_s16  }
 0x6b4   : > { %s5759_s12 = scalar_lea.sflag [#allocation4], %s5844_s11  ;;  %s4246_s13 = scalar_lea.vmem %s5755_s10, 1024 }
 0x6b5   : > { %p4247_p5 = scmp.ne.s32.totalorder %s5755_s10, %s4246_s13  ;;  %s4348_s9 = smov [#allocation3]  }
 0x6b6   : > { %s4250_s14 = sshll.u32 %s4348_s9, 4  ;;  %s4251_s14 = int_to_ptr.vmem [resolvable:$false] %s4250_s14 }
 0x6b7   : > { %p4248_p7 = pnand %p4247_p5, %p4429_p6  ;;  %s4252_s23 = scalar_lea.vmem %s4251_s14, 2048 }
 0x6b8   : > { %p4253_p10 = scmp.lt.s32.totalorder %s5755_s10, %s4251_s14  ;;  %p4254_p11 = scmp.lt.s32.totalorder %s4252_s23, %s4246_s13 }
 0x6b9   : > { %p4249_p9 = pneg %p4248_p7 }
 0x6ba   : > { %p4255_p12 = por %p4254_p11, %p4253_p10 }
 0x6bc   : > { %p4256_p13 = pnand %p4255_p12, %p4249_p9 }
 0x6be   : > { %4259 = shalt.err (!%p4256_p13)
}
 0x6bf   : > { %s4260_s30 = scalar_lea.hbm %s5752_s6, 1024  ;;  %s4264_s3 = scalar_lea.hbm %s5815_s4, 2048 }
 0x6c0   : > { %p4261_p0 = scmp.ne.s32.totalorder %s5752_s6, %s4260_s30  ;;  %p4265_p3 = scmp.lt.u32.totalorder %s5752_s6, %s5815_s4 }
 0x6c1   : > { %p4266_p4 = scmp.lt.u32.totalorder %s4264_s3, %s4260_s30  ;;  %p4268_p7 = scmp.lt.u32.totalorder %s4260_s30, %s5752_s6 }
 0x6c2   : > { %p4262_p1 = pnand %p4261_p0, %p4429_p6 }
 0x6c3   : > { %p4267_p5 = por %p4266_p4, %p4265_p3 }
 0x6c4   : > { %p4263_p2 = pneg %p4262_p1 }
 0x6c5   : > { %p4269_p9 = por %p4268_p7, %p4267_p5 }
 0x6c7   : > { %p4270_p10 = pnand %p4269_p9, %p4263_p2 }
 0x6c9   : > { %4273 = shalt.err (!%p4270_p10)
}
 0x6ca   : > { %s4349_s8 = smov 128   ;;  %s4350_s24 = smov 8  }
 0x6cb   : > { %3940 = dma.vmem_to_hbm [thread:$0]  (%p4429_p6), %s5755_s10, 1024, %s5752_s6, %s5759_s12, %s4349_s8, %s4349_s8, %s4350_s24  }
 0x6cc PF: > { %p3946_p11 = scmp.ge.s32.totalorder %s4340_s22, 2  ;;  %s3303_s27 = sand.u32 1, %s4312_s15  }
 0x6cd   : > { %s3304_s11 = scalar_lea.sflag [#allocation4], %s3303_s27 }
 0x6ce   : > { %p3943_p12 = pnand %p3946_p11, %p4436_p8 }
 0x6d0   : > { %4307 = dma.done.wait (!%p3943_p12), %s3304_s11, 1024  }
 0x6d1   : > { %4309 = vsyncadd (!%p3943_p12), %s3304_s11, 4294966272  ;;  %s17_s22 = sadd.s32 1, %s4340_s22   ;;  %s5845_s28 = sld [smem:[#allocation6_spill]] }
 0x6d2   : > { %p14_p13 = scmp.ge.s32.totalorder %s17_s22, 6   ;;  %s5846_s15 = smov %s4316_s16 }
 0x6d3   : > { %s5847_s16 = smov %s4320_s17  ;;  %s5848_s17 = smov %s4445_s7 }
 0x6d4   : > { %s5849_s18 = smov %s4332_s20  ;;  %s5850_s19 = smov %s4336_s21 }
 0x6d5   : > { %s5851_s20 = smov %s5854_s25  ;;  %16 = sbr.rel (!%p14_p13) target bundleno = 7 (0x7), region = 89 }
 0x6d7   : > { %s5852_s21 = smov %s5845_s28 }
 0x6dc   :  { %3309 = vsyncpa [#allocation4], 1 }
 0x6dd   :  { %3311 = vsyncpa [#allocation4 + $0x1], 1 }

</bundles_post_ra>
